<compile_context>
chip_gen: v7x
topology: tpu7x:2x2x1
jax: 0.10.0
libtpu: 0.0.40
codegen_flags: <defaults>
</compile_context>

<pallas_src>
import functools

import jax
import jax.numpy as jnp
from jax.experimental import pallas as pl
from jax.experimental.pallas import tpu as pltpu

INF = 1e6  # KPConv's "shadow point" coordinate for missing neighbors


def _round_up(x, m):
    return (x + m - 1) // m * m


# --------------------------------------------------------------------------- #
# Pass 1: KPConv + bias + per-tile GroupNorm partial statistics
# --------------------------------------------------------------------------- #
def _make_kpconv_kernel(sigma):
    inv_sigma = 1.0 / float(sigma)

    def kernel(relx_ref, rely_ref, relz_ref, feats_ref, invcnt_ref,
               kpx_ref, kpy_ref, kpz_ref, ksq_ref, w_ref, bias_ref,
               x_ref, sum_ref, sumsq_ref, pack_ref):
        TM, H, Cin = feats_ref.shape
        K = kpx_ref.shape[0]
        Cpad = bias_ref.shape[1]

        # ---- kernel-point influence weights (lane-dense planes) -------------
        rx = relx_ref[...]                                 # (TM, H) f32
        ry = rely_ref[...]
        rz = relz_ref[...]
        n_sq = rx * rx + ry * ry + rz * rz                 # (TM, H)

        kx = kpx_ref[...]                                  # (K, 1)
        ky = kpy_ref[...]
        kz = kpz_ref[...]
        ksq = ksq_ref[...]                                 # (K, 1)

        # (TM,1,H) op (K,1) broadcasts to (TM, K, H): canonical batched layout.
        dots = (rx[:, None, :] * kx + ry[:, None, :] * ky + rz[:, None, :] * kz)
        sq_dist = jnp.maximum(n_sq[:, None, :] + ksq - 2.0 * dots, 0.0)
        nw = jnp.maximum(1.0 - jnp.sqrt(sq_dist) * inv_sigma, 0.0)   # (TM,K,H)

        # ---- stage 1: batched MXU matmul over neighbors ----------------------
        # (m,k,h) x (m,h,c) -> (m,k,c), bf16 operands, f32 accumulation.
        wf = jnp.einsum("mkh,mhc->mkc", nw.astype(jnp.bfloat16), feats_ref[...],
                        preferred_element_type=jnp.float32)          # (TM,K,Cin)

        # ---- stage 2: ONE flat matmul with contraction K*Cin -----------------
        # Portable "reshape": pack wf into (TM, K*Cin) scratch via static
        # lane-slice stores, then a single MXU matmul against (K*Cin, Cpad).
        for k in range(K):  # static unroll
            pack_ref[:, k * Cin:(k + 1) * Cin] = wf[:, k, :]
        wf_flat = pack_ref[...].astype(jnp.bfloat16)                  # (TM,K*Cin)
        acc = jnp.dot(wf_flat, w_ref[...],
                      preferred_element_type=jnp.float32)             # (TM,Cpad)

        # ---- neighbor-count normalization + bias -----------------------------
        invcnt = invcnt_ref[...]                                       # (TM, 1)
        x = acc * invcnt + bias_ref[...]                               # (TM,Cpad)
        x_ref[...] = x

        # ---- GroupNorm partial column statistics (padded rows masked) --------
        mask = (invcnt > 0.0).astype(jnp.float32)                      # (TM, 1)
        xm = x * mask
        sum_ref[...] = jnp.sum(xm.reshape(TM // 8, 8, Cpad), axis=0)[None]
        sumsq_ref[...] = jnp.sum((x * xm).reshape(TM // 8, 8, Cpad), axis=0)[None]

    return kernel


# --------------------------------------------------------------------------- #
# Pass 2: GroupNorm affine apply + LeakyReLU
# --------------------------------------------------------------------------- #
def _make_norm_act_kernel(negative_slope):
    slope = float(negative_slope)

    def kernel(x_ref, scale_ref, shift_ref, out_ref):
        y = x_ref[...] * scale_ref[...] + shift_ref[...]
        out_ref[...] = jnp.where(y >= 0.0, y, slope * y)

    return kernel


def _choose_tile_m(h, cin, k, cpad, budget_bytes=12 * 1024 * 1024, max_tile=512):
    """Pick TILE_M so double-buffered tiles + intermediates fit a VMEM budget.

    The 12 MiB default stays well under the default scoped VMEM limit on all
    generations (16 MiB v5e, 32 MiB v6e/v7x); shrink the budget for v7x-scale
    problems if needed (64 MiB physical VMEM there).
    """
    per_row = (
        2 * (3 * h * 4 + h * cin * 2 + 4)   # rel planes f32 + feats bf16 + invcnt, double-buffered
        + 2 * cpad * 4                       # x output, double-buffered
        + 3 * h * k * 4                      # dots / sq_dist / nw
        + k * cin * 4                        # wf
        + k * cin * 4                        # pack scratch
        + 2 * cpad * 4                       # x / masked x
    )
    resident = k * cin * cpad * 2 + (4 * k + cpad) * 4 + 4 * 8 * cpad * 4
    tile = (budget_bytes - resident) // max(per_row, 1)
    return max(8, min((int(tile) // 8) * 8, max_tile))


def conv_block_forward(s_feats, q_points, s_points, neighbor_indices, params, *,
                       sigma, num_groups, negative_slope=0.1, eps=1e-5,
                       tile_m=None):
    weights = params["weights"]               # (K, C_in, C_out)
    bias = params["bias"]                     # (C_out,)
    kernel_points = params["kernel_points"]   # (K, 3)
    gamma = params["gamma"]                   # (C_out,)
    beta = params["beta"]                     # (C_out,)

    N, Cin = s_feats.shape
    M, H = neighbor_indices.shape
    K, _, Cout = weights.shape
    G = int(num_groups)
    assert Cout % G == 0, "out_channels must be divisible by num_groups"
    cg = Cout // G
    Cpad = _round_up(Cout, 128)               # lane-dense output channels

    # ---- XLA glue: gather neighbors, lane-dense per-axis planes --------------
    # TODO(synk): fuse this gather into pass 1 (scalar-prefetch neighbor indices
    # + manual HBM->VMEM row DMA) to avoid the H-times-amplified neigh_feats
    # HBM round-trip.
    s_points_pad = jnp.concatenate(
        [s_points, jnp.full((1, 3), INF, s_points.dtype)], axis=0)      # (N+1,3)
    s_feats_pad = jnp.concatenate(
        [s_feats, jnp.zeros((1, Cin), s_feats.dtype)], axis=0)          # (N+1,Cin)
    neigh_pts = s_points_pad[neighbor_indices]                          # (M,H,3)
    neigh_feats = s_feats_pad[neighbor_indices]                         # (M,H,Cin)
    rel = neigh_pts - q_points[:, None, :]                              # (M,H,3)

    # valid-neighbor count (same feature-sum>0 rule as the PyTorch KPConv),
    # computed once in the wrapper; kernel just multiplies by the reciprocal.
    feat_sum = jnp.sum(neigh_feats, axis=-1)                            # (M,H)
    cnt = jnp.sum((feat_sum > 0.0).astype(jnp.float32), axis=-1)        # (M,)
    inv_cnt = 1.0 / jnp.maximum(cnt, 1.0)

    # ---- M tiling / padding ---------------------------------------------------
    if tile_m is None:
        tile_m = _choose_tile_m(H, Cin, K, Cpad)
    tile_m = max(8, (int(tile_m) // 8) * 8)
    tile_m = min(tile_m, _round_up(M, 8))
    Mp = _round_up(M, tile_m)
    n_tiles = Mp // tile_m

    def pad_m(a):
        return jnp.pad(a, ((0, Mp - M),) + ((0, 0),) * (a.ndim - 1))

    relx = pad_m(rel[..., 0])                                           # (Mp,H)
    rely = pad_m(rel[..., 1])
    relz = pad_m(rel[..., 2])
    feats_p = pad_m(neigh_feats).astype(jnp.bfloat16)                   # (Mp,H,Cin)
    inv_cnt_p = pad_m(inv_cnt.reshape(M, 1))                            # (Mp,1); 0 marks pad rows

    kpx = kernel_points[:, 0:1]                                         # (K,1)
    kpy = kernel_points[:, 1:2]
    kpz = kernel_points[:, 2:3]
    ksq = jnp.sum(kernel_points * kernel_points, axis=1, keepdims=True) # (K,1)

    w_flat = jnp.zeros((K * Cin, Cpad), jnp.float32)
    w_flat = w_flat.at[:, :Cout].set(weights.reshape(K * Cin, Cout))
    w_flat = w_flat.astype(jnp.bfloat16)                                # (K*Cin,Cpad)
    bias_p = jnp.zeros((1, Cpad), jnp.float32).at[0, :Cout].set(bias)

    const2 = lambda i: (0, 0)
    cparams = pltpu.CompilerParams(dimension_semantics=("parallel",),
                                   vmem_limit_bytes=32 * 1024 * 1024)

    # ---- pass 1: KPConv + bias + per-tile GroupNorm partial sums --------------
    kp_kernel = _make_kpconv_kernel(sigma)
    x_pad, psum, psumsq = pl.pallas_call(
        kp_kernel,
        out_shape=(
            jax.ShapeDtypeStruct((Mp, Cpad), jnp.float32),
            jax.ShapeDtypeStruct((n_tiles, 8, Cpad), jnp.float32),
            jax.ShapeDtypeStruct((n_tiles, 8, Cpad), jnp.float32),
        ),
        grid=(n_tiles,),
        in_specs=[
            pl.BlockSpec((tile_m, H), lambda i: (i, 0)),          # relx
            pl.BlockSpec((tile_m, H), lambda i: (i, 0)),          # rely
            pl.BlockSpec((tile_m, H), lambda i: (i, 0)),          # relz
            pl.BlockSpec((tile_m, H, Cin), lambda i: (i, 0, 0)),  # feats (bf16)
            pl.BlockSpec((tile_m, 1), lambda i: (i, 0)),          # inv_cnt
            pl.BlockSpec((K, 1), const2),                         # kp x
            pl.BlockSpec((K, 1), const2),                         # kp y
            pl.BlockSpec((K, 1), const2),                         # kp z
            pl.BlockSpec((K, 1), const2),                         # kp |.|^2
            pl.BlockSpec((K * Cin, Cpad), const2),                # weights (resident)
            pl.BlockSpec((1, Cpad), const2),                      # bias
        ],
        out_specs=(
            pl.BlockSpec((tile_m, Cpad), lambda i: (i, 0)),
            pl.BlockSpec((1, 8, Cpad), lambda i: (i, 0, 0)),
            pl.BlockSpec((1, 8, Cpad), lambda i: (i, 0, 0)),
        ),
        scratch_shapes=[pltpu.VMEM((tile_m, K * Cin), jnp.float32)],
        compiler_params=cparams,
    )(relx, rely, relz, feats_p, inv_cnt_p, kpx, kpy, kpz, ksq, w_flat, bias_p)

    # ---- tiny global GroupNorm stat combine (O(C_out) scalars, plain JAX) -----
    colsum = jnp.sum(psum, axis=(0, 1))[:Cout]                          # (Cout,)
    colsumsq = jnp.sum(psumsq, axis=(0, 1))[:Cout]
    denom = float(M * cg)
    gsum = colsum.reshape(G, cg).sum(axis=1)
    gsq = colsumsq.reshape(G, cg).sum(axis=1)
    mean_g = gsum / denom
    var_g = jnp.maximum(gsq / denom - mean_g * mean_g, 0.0)   # clamp: no rsqrt(<0)
    inv_g = jax.lax.rsqrt(var_g + eps)
    mean_c = jnp.repeat(mean_g, cg)                                     # (Cout,)
    inv_c = jnp.repeat(inv_g, cg)
    scale_c = inv_c * gamma
    shift_c = beta - mean_c * scale_c
    scale_p = jnp.zeros((1, Cpad), jnp.float32).at[0, :Cout].set(scale_c)
    shift_p = jnp.zeros((1, Cpad), jnp.float32).at[0, :Cout].set(shift_c)

    # ---- pass 2: GroupNorm affine + LeakyReLU ----------------------------------
    na_kernel = _make_norm_act_kernel(negative_slope)
    y_pad = pl.pallas_call(
        na_kernel,
        out_shape=jax.ShapeDtypeStruct((Mp, Cpad), jnp.float32),
        grid=(n_tiles,),
        in_specs=[
            pl.BlockSpec((tile_m, Cpad), lambda i: (i, 0)),
            pl.BlockSpec((1, Cpad), const2),
            pl.BlockSpec((1, Cpad), const2),
        ],
        out_specs=pl.BlockSpec((tile_m, Cpad), lambda i: (i, 0)),
        compiler_params=cparams,
    )(x_pad, scale_p, shift_p)

    return y_pad[:M, :Cout]


# --------------------------------------------------------------------------- #
# Pure-JAX reference (mirrors the PyTorch ConvBlock.forward)
# --------------------------------------------------------------------------- #
def conv_block_reference(s_feats, q_points, s_points, neighbor_indices, params, *,
                         sigma, num_groups, negative_slope=0.1, eps=1e-5):
    weights = params["weights"]
    bias = params["bias"]
    kernel_points = params["kernel_points"]
    gamma = params["gamma"]
    beta = params["beta"]

    N, Cin = s_feats.shape
    M, H = neighbor_indices.shape
    K, _, Cout = weights.shape

    s_points_pad = jnp.concatenate([s_points, jnp.full((1, 3), INF)], axis=0)
    neighbors = s_points_pad[neighbor_indices] - q_points[:, None, :]      # (M,H,3)
    diffs = neighbors[:, :, None, :] - kernel_points[None, None, :, :]     # (M,H,K,3)
    sq = jnp.sum(diffs ** 2, axis=-1)                                      # (M,H,K)
    nw = jnp.clip(1.0 - jnp.sqrt(sq) / sigma, 0.0, None)                   # (M,H,K)
    nw = jnp.transpose(nw, (0, 2, 1))                                      # (M,K,H)

    s_feats_pad = jnp.concatenate([s_feats, jnp.zeros((1, Cin))], axis=0)
    nf = s_feats_pad[neighbor_indices]                                     # (M,H,Cin)
    wf = jnp.matmul(nw, nf)                                                # (M,K,Cin)
    wf = jnp.transpose(wf, (1, 0, 2))                                      # (K,M,Cin)
    ko = jnp.matmul(wf, weights)                                           # (K,M,Cout)
    out = jnp.sum(ko, axis=0)                                              # (M,Cout)

    nsum = jnp.sum(nf, axis=-1)                                            # (M,H)
    nnum = jnp.sum(nsum > 0.0, axis=-1)
    nnum = jnp.maximum(nnum, 1)
    out = out / nnum[:, None].astype(out.dtype) + bias

    G = num_groups
    xt = out.T                                                             # (Cout,M)
    xg = xt.reshape(G, Cout // G, M)
    mean = xg.mean(axis=(1, 2), keepdims=True)
    var = xg.var(axis=(1, 2), keepdims=True)
    xg = (xg - mean) / jnp.sqrt(var + eps)
    xt = xg.reshape(Cout, M) * gamma[:, None] + beta[:, None]
    xn = xt.T                                                              # (M,Cout)
    return jnp.where(xn >= 0.0, xn, negative_slope * xn)


def init_params(key, in_channels, out_channels, kernel_size, radius):
    k1, k2, k3, k4, k5 = jax.random.split(key, 5)
    weights = 0.1 * jax.random.normal(k1, (kernel_size, in_channels, out_channels),
                                      dtype=jnp.float32)
    bias = 0.1 * jax.random.normal(k2, (out_channels,), dtype=jnp.float32)
    # TODO(synk): real KPConv loads precomputed optimized kernel-point dispositions;
    # here they are synthesized deterministically inside the radius ball.
    kernel_points = radius * jax.random.uniform(k3, (kernel_size, 3),
                                                minval=-1.0, maxval=1.0,
                                                dtype=jnp.float32)
    gamma = 1.0 + 0.1 * jax.random.normal(k4, (out_channels,), dtype=jnp.float32)
    beta = 0.1 * jax.random.normal(k5, (out_channels,), dtype=jnp.float32)
    return dict(weights=weights, bias=bias, kernel_points=kernel_points,
                gamma=gamma, beta=beta)


if __name__ == "__main__":
    # Small shapes consistent with KPConv usage.
    N, M, H = 80, 48, 16          # support points, query points, neighbors
    C_in, C_out = 16, 32
    K = 15                        # kernel points (kernel_size)
    num_groups = 8
    radius, sigma = 0.4, 0.8

    key = jax.random.PRNGKey(0)
    kp0, k_sp, k_qp, k_sf, k_idx = jax.random.split(key, 5)

    params = init_params(kp0, C_in, C_out, K, radius)
    s_points = jax.random.uniform(k_sp, (N, 3), dtype=jnp.float32)
    q_points = jax.random.uniform(k_qp, (M, 3), dtype=jnp.float32)
    s_feats = jax.random.uniform(k_sf, (N, C_in), dtype=jnp.float32)
    # indices in [0, N]; value N denotes a missing (padded) neighbor
    neighbor_indices = jax.random.randint(k_idx, (M, H), 0, N + 1, dtype=jnp.int32)

    # tile_m=32 -> two M-tiles at this demo size (exercises multi-tile stats path)
    fwd = jax.jit(functools.partial(conv_block_forward, sigma=sigma,
                                    num_groups=num_groups, tile_m=32))

    out = jax.block_until_ready(fwd(s_feats, q_points, s_points,
                                    neighbor_indices, params))
    ref = jax.block_until_ready(conv_block_reference(
        s_feats, q_points, s_points, neighbor_indices, params,
        sigma=sigma, num_groups=num_groups))

    assert out.shape == (M, C_out)
    err = jnp.max(jnp.abs(out - ref))
    # bf16 MXU operands (per perf review) -> slightly looser tolerance than pure f32
    assert jnp.allclose(out, ref, atol=5e-2, rtol=5e-2), f"max abs err {err}"
    print("KERNEL_OK")
</pallas_src>

<mosaic_0001>
module attributes {stable_mosaic.version = 11 : i64} {
  func.func @kernel(%arg0: i32, %arg1: memref<32x16xf32, #tpu.memory_space<vmem>>, %arg2: memref<32x16xf32, #tpu.memory_space<vmem>>, %arg3: memref<32x16xf32, #tpu.memory_space<vmem>>, %arg4: memref<32x16x16xbf16, #tpu.memory_space<vmem>>, %arg5: memref<32x1xf32, #tpu.memory_space<vmem>>, %arg6: memref<15x1xf32, #tpu.memory_space<vmem>>, %arg7: memref<15x1xf32, #tpu.memory_space<vmem>>, %arg8: memref<15x1xf32, #tpu.memory_space<vmem>>, %arg9: memref<15x1xf32, #tpu.memory_space<vmem>>, %arg10: memref<240x128xbf16, #tpu.memory_space<vmem>>, %arg11: memref<1x128xf32, #tpu.memory_space<vmem>>, %arg12: memref<32x128xf32, #tpu.memory_space<vmem>>, %arg13: memref<1x8x128xf32, #tpu.memory_space<vmem>>, %arg14: memref<1x8x128xf32, #tpu.memory_space<vmem>>, %arg15: memref<32x240xf32, #tpu.memory_space<vmem>>) attributes {dimension_semantics = [#tpu.dimension_semantics<parallel>], iteration_bounds = array<i64: 2>, scalar_prefetch = 0 : i64, scratch_operands = 1 : i64, tpu.core_type = #tpu.core_type<tc>, window_params = [{transform_indices = @transform_0, window_bounds = array<i64: 32, 16>}, {transform_indices = @transform_1, window_bounds = array<i64: 32, 16>}, {transform_indices = @transform_2, window_bounds = array<i64: 32, 16>}, {transform_indices = @transform_3, window_bounds = array<i64: 32, 16, 16>}, {transform_indices = @transform_4, window_bounds = array<i64: 32, 1>}, {pipeline_mode = #tpu.pipeline_mode<synchronous>, transform_indices = @transform_5, window_bounds = array<i64: 15, 1>}, {pipeline_mode = #tpu.pipeline_mode<synchronous>, transform_indices = @transform_6, window_bounds = array<i64: 15, 1>}, {pipeline_mode = #tpu.pipeline_mode<synchronous>, transform_indices = @transform_7, window_bounds = array<i64: 15, 1>}, {pipeline_mode = #tpu.pipeline_mode<synchronous>, transform_indices = @transform_8, window_bounds = array<i64: 15, 1>}, {pipeline_mode = #tpu.pipeline_mode<synchronous>, transform_indices = @transform_9, window_bounds = array<i64: 240, 128>}, {pipeline_mode = #tpu.pipeline_mode<synchronous>, transform_indices = @transform_10, window_bounds = array<i64: 1, 128>}, {transform_indices = @transform_11, window_bounds = array<i64: 32, 128>}, {transform_indices = @transform_12, window_bounds = array<i64: 1, 8, 128>}, {transform_indices = @transform_13, window_bounds = array<i64: 1, 8, 128>}]} {
    %c0 = arith.constant 0 : index
    %c0_0 = arith.constant 0 : index
    %0 = vector.load %arg1[%c0, %c0_0] : memref<32x16xf32, #tpu.memory_space<vmem>>, vector<32x16xf32>
    %c0_1 = arith.constant 0 : index
    %c0_2 = arith.constant 0 : index
    %1 = vector.load %arg2[%c0_1, %c0_2] : memref<32x16xf32, #tpu.memory_space<vmem>>, vector<32x16xf32>
    %c0_3 = arith.constant 0 : index
    %c0_4 = arith.constant 0 : index
    %2 = vector.load %arg3[%c0_3, %c0_4] : memref<32x16xf32, #tpu.memory_space<vmem>>, vector<32x16xf32>
    %3 = arith.mulf %0, %0 : vector<32x16xf32>
    %4 = arith.mulf %1, %1 : vector<32x16xf32>
    %5 = arith.addf %3, %4 : vector<32x16xf32>
    %6 = arith.mulf %2, %2 : vector<32x16xf32>
    %7 = arith.addf %5, %6 : vector<32x16xf32>
    %c0_5 = arith.constant 0 : index
    %c0_6 = arith.constant 0 : index
    %8 = vector.load %arg6[%c0_5, %c0_6] : memref<15x1xf32, #tpu.memory_space<vmem>>, vector<15x1xf32>
    %c0_7 = arith.constant 0 : index
    %c0_8 = arith.constant 0 : index
    %9 = vector.load %arg7[%c0_7, %c0_8] : memref<15x1xf32, #tpu.memory_space<vmem>>, vector<15x1xf32>
    %c0_9 = arith.constant 0 : index
    %c0_10 = arith.constant 0 : index
    %10 = vector.load %arg8[%c0_9, %c0_10] : memref<15x1xf32, #tpu.memory_space<vmem>>, vector<15x1xf32>
    %c0_11 = arith.constant 0 : index
    %c0_12 = arith.constant 0 : index
    %11 = vector.load %arg9[%c0_11, %c0_12] : memref<15x1xf32, #tpu.memory_space<vmem>>, vector<15x1xf32>
    %12 = vector.shape_cast %0 : vector<32x16xf32> to vector<32x1x16xf32>
    %13 = vector.shape_cast %8 : vector<15x1xf32> to vector<1x15x1xf32>
    %14 = vector.broadcast %12 : vector<32x1x16xf32> to vector<32x15x16xf32>
    %15 = vector.broadcast %13 : vector<1x15x1xf32> to vector<32x15x16xf32>
    %16 = arith.mulf %14, %15 : vector<32x15x16xf32>
    %17 = vector.shape_cast %1 : vector<32x16xf32> to vector<32x1x16xf32>
    %18 = vector.shape_cast %9 : vector<15x1xf32> to vector<1x15x1xf32>
    %19 = vector.broadcast %17 : vector<32x1x16xf32> to vector<32x15x16xf32>
    %20 = vector.broadcast %18 : vector<1x15x1xf32> to vector<32x15x16xf32>
    %21 = arith.mulf %19, %20 : vector<32x15x16xf32>
    %22 = arith.addf %16, %21 : vector<32x15x16xf32>
    %23 = vector.shape_cast %2 : vector<32x16xf32> to vector<32x1x16xf32>
    %24 = vector.shape_cast %10 : vector<15x1xf32> to vector<1x15x1xf32>
    %25 = vector.broadcast %23 : vector<32x1x16xf32> to vector<32x15x16xf32>
    %26 = vector.broadcast %24 : vector<1x15x1xf32> to vector<32x15x16xf32>
    %27 = arith.mulf %25, %26 : vector<32x15x16xf32>
    %28 = arith.addf %22, %27 : vector<32x15x16xf32>
    %29 = vector.shape_cast %7 : vector<32x16xf32> to vector<32x1x16xf32>
    %30 = vector.shape_cast %11 : vector<15x1xf32> to vector<1x15x1xf32>
    %31 = vector.broadcast %29 : vector<32x1x16xf32> to vector<32x15x16xf32>
    %32 = vector.broadcast %30 : vector<1x15x1xf32> to vector<32x15x16xf32>
    %33 = arith.addf %31, %32 : vector<32x15x16xf32>
    %cst = arith.constant 2.000000e+00 : f32
    %34 = vector.broadcast %cst : f32 to vector<32x15x16xf32>
    %35 = arith.mulf %34, %28 : vector<32x15x16xf32>
    %36 = arith.subf %33, %35 : vector<32x15x16xf32>
    %cst_13 = arith.constant 0.000000e+00 : f32
    %37 = vector.broadcast %cst_13 : f32 to vector<32x15x16xf32>
    %38 = arith.maximumf %36, %37 : vector<32x15x16xf32>
    %39 = math.sqrt %38 : vector<32x15x16xf32>
    %cst_14 = arith.constant 1.250000e+00 : f32
    %40 = vector.broadcast %cst_14 : f32 to vector<32x15x16xf32>
    %41 = arith.mulf %39, %40 : vector<32x15x16xf32>
    %cst_15 = arith.constant 1.000000e+00 : f32
    %42 = vector.broadcast %cst_15 : f32 to vector<32x15x16xf32>
    %43 = arith.subf %42, %41 : vector<32x15x16xf32>
    %cst_16 = arith.constant 0.000000e+00 : f32
    %44 = vector.broadcast %cst_16 : f32 to vector<32x15x16xf32>
    %45 = arith.maximumf %43, %44 : vector<32x15x16xf32>
    %46 = arith.truncf %45 : vector<32x15x16xf32> to vector<32x15x16xbf16>
    %c0_17 = arith.constant 0 : index
    %c0_18 = arith.constant 0 : index
    %c0_19 = arith.constant 0 : index
    %47 = vector.load %arg4[%c0_17, %c0_18, %c0_19] : memref<32x16x16xbf16, #tpu.memory_space<vmem>>, vector<32x16x16xbf16>
    "tpu.trace_start"() <{level = 10 : i32, message = "mkh,mhc->mkc"}> : () -> ()
    %cst_20 = arith.constant dense<0.000000e+00> : vector<32x15x16xf32>
    %48 = tpu.matmul %46, %47, %cst_20 {dimension_numbers = #tpu.dot_dimension_numbers<[2], [1], [1], [2], [0, 0, 0, 1, 1, 2], [0], [0]>} : vector<32x15x16xbf16>, vector<32x16x16xbf16>, vector<32x15x16xf32> -> vector<32x15x16xf32>
    "tpu.trace_stop"() : () -> ()
    %49 = vector.extract_strided_slice %48 {offsets = [0, 0, 0], sizes = [32, 1, 16], strides = [1, 1, 1]} : vector<32x15x16xf32> to vector<32x1x16xf32>
    %50 = vector.shape_cast %49 : vector<32x1x16xf32> to vector<32x16xf32>
    %c0_21 = arith.constant 0 : index
    %c0_22 = arith.constant 0 : index
    %51 = vector.load %arg15[%c0_21, %c0_22] : memref<32x240xf32, #tpu.memory_space<vmem>>, vector<32x16xf32>
    tpu.vector_store %arg15[%c0_21, %c0_22], %50 {strides = array<i32>} : memref<32x240xf32, #tpu.memory_space<vmem>>, vector<32x16xf32>,
    %52 = vector.extract_strided_slice %48 {offsets = [0, 1, 0], sizes = [32, 1, 16], strides = [1, 1, 1]} : vector<32x15x16xf32> to vector<32x1x16xf32>
    %53 = vector.shape_cast %52 : vector<32x1x16xf32> to vector<32x16xf32>
    %c0_23 = arith.constant 0 : index
    %c16 = arith.constant 16 : index
    %54 = vector.load %arg15[%c0_23, %c16] : memref<32x240xf32, #tpu.memory_space<vmem>>, vector<32x16xf32>
    tpu.vector_store %arg15[%c0_23, %c16], %53 {strides = array<i32>} : memref<32x240xf32, #tpu.memory_space<vmem>>, vector<32x16xf32>,
    %55 = vector.extract_strided_slice %48 {offsets = [0, 2, 0], sizes = [32, 1, 16], strides = [1, 1, 1]} : vector<32x15x16xf32> to vector<32x1x16xf32>
    %56 = vector.shape_cast %55 : vector<32x1x16xf32> to vector<32x16xf32>
    %c0_24 = arith.constant 0 : index
    %c32 = arith.constant 32 : index
    %57 = vector.load %arg15[%c0_24, %c32] : memref<32x240xf32, #tpu.memory_space<vmem>>, vector<32x16xf32>
    tpu.vector_store %arg15[%c0_24, %c32], %56 {strides = array<i32>} : memref<32x240xf32, #tpu.memory_space<vmem>>, vector<32x16xf32>,
    %58 = vector.extract_strided_slice %48 {offsets = [0, 3, 0], sizes = [32, 1, 16], strides = [1, 1, 1]} : vector<32x15x16xf32> to vector<32x1x16xf32>
    %59 = vector.shape_cast %58 : vector<32x1x16xf32> to vector<32x16xf32>
    %c0_25 = arith.constant 0 : index
    %c48 = arith.constant 48 : index
    %60 = vector.load %arg15[%c0_25, %c48] : memref<32x240xf32, #tpu.memory_space<vmem>>, vector<32x16xf32>
    tpu.vector_store %arg15[%c0_25, %c48], %59 {strides = array<i32>} : memref<32x240xf32, #tpu.memory_space<vmem>>, vector<32x16xf32>,
    %61 = vector.extract_strided_slice %48 {offsets = [0, 4, 0], sizes = [32, 1, 16], strides = [1, 1, 1]} : vector<32x15x16xf32> to vector<32x1x16xf32>
    %62 = vector.shape_cast %61 : vector<32x1x16xf32> to vector<32x16xf32>
    %c0_26 = arith.constant 0 : index
    %c64 = arith.constant 64 : index
    %63 = vector.load %arg15[%c0_26, %c64] : memref<32x240xf32, #tpu.memory_space<vmem>>, vector<32x16xf32>
    tpu.vector_store %arg15[%c0_26, %c64], %62 {strides = array<i32>} : memref<32x240xf32, #tpu.memory_space<vmem>>, vector<32x16xf32>,
    %64 = vector.extract_strided_slice %48 {offsets = [0, 5, 0], sizes = [32, 1, 16], strides = [1, 1, 1]} : vector<32x15x16xf32> to vector<32x1x16xf32>
    %65 = vector.shape_cast %64 : vector<32x1x16xf32> to vector<32x16xf32>
    %c0_27 = arith.constant 0 : index
    %c80 = arith.constant 80 : index
    %66 = vector.load %arg15[%c0_27, %c80] : memref<32x240xf32, #tpu.memory_space<vmem>>, vector<32x16xf32>
    tpu.vector_store %arg15[%c0_27, %c80], %65 {strides = array<i32>} : memref<32x240xf32, #tpu.memory_space<vmem>>, vector<32x16xf32>,
    %67 = vector.extract_strided_slice %48 {offsets = [0, 6, 0], sizes = [32, 1, 16], strides = [1, 1, 1]} : vector<32x15x16xf32> to vector<32x1x16xf32>
    %68 = vector.shape_cast %67 : vector<32x1x16xf32> to vector<32x16xf32>
    %c0_28 = arith.constant 0 : index
    %c96 = arith.constant 96 : index
    %69 = vector.load %arg15[%c0_28, %c96] : memref<32x240xf32, #tpu.memory_space<vmem>>, vector<32x16xf32>
    tpu.vector_store %arg15[%c0_28, %c96], %68 {strides = array<i32>} : memref<32x240xf32, #tpu.memory_space<vmem>>, vector<32x16xf32>,
    %70 = vector.extract_strided_slice %48 {offsets = [0, 7, 0], sizes = [32, 1, 16], strides = [1, 1, 1]} : vector<32x15x16xf32> to vector<32x1x16xf32>
    %71 = vector.shape_cast %70 : vector<32x1x16xf32> to vector<32x16xf32>
    %c0_29 = arith.constant 0 : index
    %c112 = arith.constant 112 : index
    %72 = vector.load %arg15[%c0_29, %c112] : memref<32x240xf32, #tpu.memory_space<vmem>>, vector<32x16xf32>
    tpu.vector_store %arg15[%c0_29, %c112], %71 {strides = array<i32>} : memref<32x240xf32, #tpu.memory_space<vmem>>, vector<32x16xf32>,
    %73 = vector.extract_strided_slice %48 {offsets = [0, 8, 0], sizes = [32, 1, 16], strides = [1, 1, 1]} : vector<32x15x16xf32> to vector<32x1x16xf32>
    %74 = vector.shape_cast %73 : vector<32x1x16xf32> to vector<32x16xf32>
    %c0_30 = arith.constant 0 : index
    %c128 = arith.constant 128 : index
    %75 = vector.load %arg15[%c0_30, %c128] : memref<32x240xf32, #tpu.memory_space<vmem>>, vector<32x16xf32>
    tpu.vector_store %arg15[%c0_30, %c128], %74 {strides = array<i32>} : memref<32x240xf32, #tpu.memory_space<vmem>>, vector<32x16xf32>,
    %76 = vector.extract_strided_slice %48 {offsets = [0, 9, 0], sizes = [32, 1, 16], strides = [1, 1, 1]} : vector<32x15x16xf32> to vector<32x1x16xf32>
    %77 = vector.shape_cast %76 : vector<32x1x16xf32> to vector<32x16xf32>
    %c0_31 = arith.constant 0 : index
    %c144 = arith.constant 144 : index
    %78 = vector.load %arg15[%c0_31, %c144] : memref<32x240xf32, #tpu.memory_space<vmem>>, vector<32x16xf32>
    tpu.vector_store %arg15[%c0_31, %c144], %77 {strides = array<i32>} : memref<32x240xf32, #tpu.memory_space<vmem>>, vector<32x16xf32>,
    %79 = vector.extract_strided_slice %48 {offsets = [0, 10, 0], sizes = [32, 1, 16], strides = [1, 1, 1]} : vector<32x15x16xf32> to vector<32x1x16xf32>
    %80 = vector.shape_cast %79 : vector<32x1x16xf32> to vector<32x16xf32>
    %c0_32 = arith.constant 0 : index
    %c160 = arith.constant 160 : index
    %81 = vector.load %arg15[%c0_32, %c160] : memref<32x240xf32, #tpu.memory_space<vmem>>, vector<32x16xf32>
    tpu.vector_store %arg15[%c0_32, %c160], %80 {strides = array<i32>} : memref<32x240xf32, #tpu.memory_space<vmem>>, vector<32x16xf32>,
    %82 = vector.extract_strided_slice %48 {offsets = [0, 11, 0], sizes = [32, 1, 16], strides = [1, 1, 1]} : vector<32x15x16xf32> to vector<32x1x16xf32>
    %83 = vector.shape_cast %82 : vector<32x1x16xf32> to vector<32x16xf32>
    %c0_33 = arith.constant 0 : index
    %c176 = arith.constant 176 : index
    %84 = vector.load %arg15[%c0_33, %c176] : memref<32x240xf32, #tpu.memory_space<vmem>>, vector<32x16xf32>
    tpu.vector_store %arg15[%c0_33, %c176], %83 {strides = array<i32>} : memref<32x240xf32, #tpu.memory_space<vmem>>, vector<32x16xf32>,
    %85 = vector.extract_strided_slice %48 {offsets = [0, 12, 0], sizes = [32, 1, 16], strides = [1, 1, 1]} : vector<32x15x16xf32> to vector<32x1x16xf32>
    %86 = vector.shape_cast %85 : vector<32x1x16xf32> to vector<32x16xf32>
    %c0_34 = arith.constant 0 : index
    %c192 = arith.constant 192 : index
    %87 = vector.load %arg15[%c0_34, %c192] : memref<32x240xf32, #tpu.memory_space<vmem>>, vector<32x16xf32>
    tpu.vector_store %arg15[%c0_34, %c192], %86 {strides = array<i32>} : memref<32x240xf32, #tpu.memory_space<vmem>>, vector<32x16xf32>,
    %88 = vector.extract_strided_slice %48 {offsets = [0, 13, 0], sizes = [32, 1, 16], strides = [1, 1, 1]} : vector<32x15x16xf32> to vector<32x1x16xf32>
    %89 = vector.shape_cast %88 : vector<32x1x16xf32> to vector<32x16xf32>
    %c0_35 = arith.constant 0 : index
    %c208 = arith.constant 208 : index
    %90 = vector.load %arg15[%c0_35, %c208] : memref<32x240xf32, #tpu.memory_space<vmem>>, vector<32x16xf32>
    tpu.vector_store %arg15[%c0_35, %c208], %89 {strides = array<i32>} : memref<32x240xf32, #tpu.memory_space<vmem>>, vector<32x16xf32>,
    %91 = vector.extract_strided_slice %48 {offsets = [0, 14, 0], sizes = [32, 1, 16], strides = [1, 1, 1]} : vector<32x15x16xf32> to vector<32x1x16xf32>
    %92 = vector.shape_cast %91 : vector<32x1x16xf32> to vector<32x16xf32>
    %c0_36 = arith.constant 0 : index
    %c224 = arith.constant 224 : index
    %93 = vector.load %arg15[%c0_36, %c224] : memref<32x240xf32, #tpu.memory_space<vmem>>, vector<32x16xf32>
    tpu.vector_store %arg15[%c0_36, %c224], %92 {strides = array<i32>} : memref<32x240xf32, #tpu.memory_space<vmem>>, vector<32x16xf32>,
    %c0_37 = arith.constant 0 : index
    %c0_38 = arith.constant 0 : index
    %94 = vector.load %arg15[%c0_37, %c0_38] : memref<32x240xf32, #tpu.memory_space<vmem>>, vector<32x240xf32>
    %95 = arith.truncf %94 : vector<32x240xf32> to vector<32x240xbf16>
    %c0_39 = arith.constant 0 : index
    %c0_40 = arith.constant 0 : index
    %96 = vector.load %arg10[%c0_39, %c0_40] : memref<240x128xbf16, #tpu.memory_space<vmem>>, vector<240x128xbf16>
    %cst_41 = arith.constant dense<0.000000e+00> : vector<32x128xf32>
    %97 = tpu.matmul %95, %96, %cst_41 {dimension_numbers = #tpu.dot_dimension_numbers<[1], [0], [0], [1], [0, 0, 1, 1], [], []>} : vector<32x240xbf16>, vector<240x128xbf16>, vector<32x128xf32> -> vector<32x128xf32>
    %c0_42 = arith.constant 0 : index
    %c0_43 = arith.constant 0 : index
    %98 = vector.load %arg5[%c0_42, %c0_43] : memref<32x1xf32, #tpu.memory_space<vmem>>, vector<32x1xf32>
    %99 = vector.broadcast %98 : vector<32x1xf32> to vector<32x128xf32>
    %100 = arith.mulf %97, %99 : vector<32x128xf32>
    %c0_44 = arith.constant 0 : index
    %c0_45 = arith.constant 0 : index
    %101 = vector.load %arg11[%c0_44, %c0_45] : memref<1x128xf32, #tpu.memory_space<vmem>>, vector<1x128xf32>
    %102 = vector.broadcast %101 : vector<1x128xf32> to vector<32x128xf32>
    %103 = arith.addf %100, %102 : vector<32x128xf32>
    %c0_46 = arith.constant 0 : index
    %c0_47 = arith.constant 0 : index
    %104 = vector.load %arg12[%c0_46, %c0_47] : memref<32x128xf32, #tpu.memory_space<vmem>>, vector<32x128xf32>
    tpu.vector_store %arg12[%c0_46, %c0_47], %103 {strides = array<i32>} : memref<32x128xf32, #tpu.memory_space<vmem>>, vector<32x128xf32>,
    %cst_48 = arith.constant 0.000000e+00 : f32
    %105 = vector.broadcast %cst_48 : f32 to vector<32x1xf32>
    %106 = arith.cmpf ogt, %98, %105 : vector<32x1xf32>
    %107 = arith.extui %106 : vector<32x1xi1> to vector<32x1xi32>
    %108 = arith.sitofp %107 : vector<32x1xi32> to vector<32x1xf32>
    %109 = vector.broadcast %108 : vector<32x1xf32> to vector<32x128xf32>
    %110 = arith.mulf %103, %109 : vector<32x128xf32>
    %111 = vector.shape_cast %110 : vector<32x128xf32> to vector<4x8x128xf32>
    %cst_49 = arith.constant dense<0.000000e+00> : vector<8x128xf32>
    %112 = vector.multi_reduction <add>, %111, %cst_49 [0] : vector<4x8x128xf32> to vector<8x128xf32>
    %113 = vector.shape_cast %112 : vector<8x128xf32> to vector<1x8x128xf32>
    %c0_50 = arith.constant 0 : index
    %c0_51 = arith.constant 0 : index
    %c0_52 = arith.constant 0 : index
    %114 = vector.load %arg13[%c0_50, %c0_51, %c0_52] : memref<1x8x128xf32, #tpu.memory_space<vmem>>, vector<1x8x128xf32>
    tpu.vector_store %arg13[%c0_50, %c0_51, %c0_52], %113 {strides = array<i32>} : memref<1x8x128xf32, #tpu.memory_space<vmem>>, vector<1x8x128xf32>,
    %115 = arith.mulf %103, %110 : vector<32x128xf32>
    %116 = vector.shape_cast %115 : vector<32x128xf32> to vector<4x8x128xf32>
    %cst_53 = arith.constant dense<0.000000e+00> : vector<8x128xf32>
    %117 = vector.multi_reduction <add>, %116, %cst_53 [0] : vector<4x8x128xf32> to vector<8x128xf32>
    %118 = vector.shape_cast %117 : vector<8x128xf32> to vector<1x8x128xf32>
    %c0_54 = arith.constant 0 : index
    %c0_55 = arith.constant 0 : index
    %c0_56 = arith.constant 0 : index
    %119 = vector.load %arg14[%c0_54, %c0_55, %c0_56] : memref<1x8x128xf32, #tpu.memory_space<vmem>>, vector<1x8x128xf32>
    tpu.vector_store %arg14[%c0_54, %c0_55, %c0_56], %118 {strides = array<i32>} : memref<1x8x128xf32, #tpu.memory_space<vmem>>, vector<1x8x128xf32>,
    return
  }
  func.func @transform_0(%arg0: i32) -> (i32, i32) {
    %c0_i32 = arith.constant 0 : i32
    %c0_i32_0 = arith.constant 0 : i32
    return %arg0, %c0_i32 : i32, i32
  }
  func.func @transform_1(%arg0: i32) -> (i32, i32) {
    %c0_i32 = arith.constant 0 : i32
    %c0_i32_0 = arith.constant 0 : i32
    return %arg0, %c0_i32 : i32, i32
  }
  func.func @transform_2(%arg0: i32) -> (i32, i32) {
    %c0_i32 = arith.constant 0 : i32
    %c0_i32_0 = arith.constant 0 : i32
    return %arg0, %c0_i32 : i32, i32
  }
  func.func @transform_3(%arg0: i32) -> (i32, i32, i32) {
    %c0_i32 = arith.constant 0 : i32
    %c0_i32_0 = arith.constant 0 : i32
    %c0_i32_1 = arith.constant 0 : i32
    return %arg0, %c0_i32, %c0_i32_0 : i32, i32, i32
  }
  func.func @transform_4(%arg0: i32) -> (i32, i32) {
    %c0_i32 = arith.constant 0 : i32
    %c0_i32_0 = arith.constant 0 : i32
    return %arg0, %c0_i32 : i32, i32
  }
  func.func @transform_5(%arg0: i32) -> (i32, i32) {
    %c0_i32 = arith.constant 0 : i32
    %c0_i32_0 = arith.constant 0 : i32
    %c0_i32_1 = arith.constant 0 : i32
    return %c0_i32, %c0_i32_0 : i32, i32
  }
  func.func @transform_6(%arg0: i32) -> (i32, i32) {
    %c0_i32 = arith.constant 0 : i32
    %c0_i32_0 = arith.constant 0 : i32
    %c0_i32_1 = arith.constant 0 : i32
    return %c0_i32, %c0_i32_0 : i32, i32
  }
  func.func @transform_7(%arg0: i32) -> (i32, i32) {
    %c0_i32 = arith.constant 0 : i32
    %c0_i32_0 = arith.constant 0 : i32
    %c0_i32_1 = arith.constant 0 : i32
    return %c0_i32, %c0_i32_0 : i32, i32
  }
  func.func @transform_8(%arg0: i32) -> (i32, i32) {
    %c0_i32 = arith.constant 0 : i32
    %c0_i32_0 = arith.constant 0 : i32
    %c0_i32_1 = arith.constant 0 : i32
    return %c0_i32, %c0_i32_0 : i32, i32
  }
  func.func @transform_9(%arg0: i32) -> (i32, i32) {
    %c0_i32 = arith.constant 0 : i32
    %c0_i32_0 = arith.constant 0 : i32
    %c0_i32_1 = arith.constant 0 : i32
    return %c0_i32, %c0_i32_0 : i32, i32
  }
  func.func @transform_10(%arg0: i32) -> (i32, i32) {
    %c0_i32 = arith.constant 0 : i32
    %c0_i32_0 = arith.constant 0 : i32
    %c0_i32_1 = arith.constant 0 : i32
    return %c0_i32, %c0_i32_0 : i32, i32
  }
  func.func @transform_11(%arg0: i32) -> (i32, i32) {
    %c0_i32 = arith.constant 0 : i32
    %c0_i32_0 = arith.constant 0 : i32
    return %arg0, %c0_i32 : i32, i32
  }
  func.func @transform_12(%arg0: i32) -> (i32, i32, i32) {
    %c0_i32 = arith.constant 0 : i32
    %c0_i32_0 = arith.constant 0 : i32
    %c0_i32_1 = arith.constant 0 : i32
    return %arg0, %c0_i32, %c0_i32_0 : i32, i32, i32
  }
  func.func @transform_13(%arg0: i32) -> (i32, i32, i32) {
    %c0_i32 = arith.constant 0 : i32
    %c0_i32_0 = arith.constant 0 : i32
    %c0_i32_1 = arith.constant 0 : i32
    return %arg0, %c0_i32, %c0_i32_0 : i32, i32, i32
  }
}

module attributes {stable_mosaic.version = 11 : i64} {
  func.func @kernel(%arg0: i32, %arg1: memref<32x128xf32, #tpu.memory_space<vmem>>, %arg2: memref<1x128xf32, #tpu.memory_space<vmem>>, %arg3: memref<1x128xf32, #tpu.memory_space<vmem>>, %arg4: memref<32x128xf32, #tpu.memory_space<vmem>>) attributes {dimension_semantics = [#tpu.dimension_semantics<parallel>], iteration_bounds = array<i64: 2>, scalar_prefetch = 0 : i64, scratch_operands = 0 : i64, tpu.core_type = #tpu.core_type<tc>, window_params = [{transform_indices = @transform_0, window_bounds = array<i64: 32, 128>}, {pipeline_mode = #tpu.pipeline_mode<synchronous>, transform_indices = @transform_1, window_bounds = array<i64: 1, 128>}, {pipeline_mode = #tpu.pipeline_mode<synchronous>, transform_indices = @transform_2, window_bounds = array<i64: 1, 128>}, {transform_indices = @transform_3, window_bounds = array<i64: 32, 128>}]} {
    %c0 = arith.constant 0 : index
    %c0_0 = arith.constant 0 : index
    %0 = vector.load %arg1[%c0, %c0_0] : memref<32x128xf32, #tpu.memory_space<vmem>>, vector<32x128xf32>
    %c0_1 = arith.constant 0 : index
    %c0_2 = arith.constant 0 : index
    %1 = vector.load %arg2[%c0_1, %c0_2] : memref<1x128xf32, #tpu.memory_space<vmem>>, vector<1x128xf32>
    %2 = vector.broadcast %1 : vector<1x128xf32> to vector<32x128xf32>
    %3 = arith.mulf %0, %2 : vector<32x128xf32>
    %c0_3 = arith.constant 0 : index
    %c0_4 = arith.constant 0 : index
    %4 = vector.load %arg3[%c0_3, %c0_4] : memref<1x128xf32, #tpu.memory_space<vmem>>, vector<1x128xf32>
    %5 = vector.broadcast %4 : vector<1x128xf32> to vector<32x128xf32>
    %6 = arith.addf %3, %5 : vector<32x128xf32>
    %cst = arith.constant 0.000000e+00 : f32
    %7 = vector.broadcast %cst : f32 to vector<32x128xf32>
    %8 = arith.cmpf oge, %6, %7 : vector<32x128xf32>
    %cst_5 = arith.constant 1.000000e-01 : f32
    %9 = vector.broadcast %cst_5 : f32 to vector<32x128xf32>
    %10 = arith.mulf %9, %6 : vector<32x128xf32>
    %11 = arith.select %8, %6, %10 : vector<32x128xi1>, vector<32x128xf32>
    %c0_6 = arith.constant 0 : index
    %c0_7 = arith.constant 0 : index
    %12 = vector.load %arg4[%c0_6, %c0_7] : memref<32x128xf32, #tpu.memory_space<vmem>>, vector<32x128xf32>
    tpu.vector_store %arg4[%c0_6, %c0_7], %11 {strides = array<i32>} : memref<32x128xf32, #tpu.memory_space<vmem>>, vector<32x128xf32>,
    return
  }
  func.func @transform_0(%arg0: i32) -> (i32, i32) {
    %c0_i32 = arith.constant 0 : i32
    %c0_i32_0 = arith.constant 0 : i32
    return %arg0, %c0_i32 : i32, i32
  }
  func.func @transform_1(%arg0: i32) -> (i32, i32) {
    %c0_i32 = arith.constant 0 : i32
    %c0_i32_0 = arith.constant 0 : i32
    %c0_i32_1 = arith.constant 0 : i32
    return %c0_i32, %c0_i32_0 : i32, i32
  }
  func.func @transform_2(%arg0: i32) -> (i32, i32) {
    %c0_i32 = arith.constant 0 : i32
    %c0_i32_0 = arith.constant 0 : i32
    %c0_i32_1 = arith.constant 0 : i32
    return %c0_i32, %c0_i32_0 : i32, i32
  }
  func.func @transform_3(%arg0: i32) -> (i32, i32) {
    %c0_i32 = arith.constant 0 : i32
    %c0_i32_0 = arith.constant 0 : i32
    return %arg0, %c0_i32 : i32, i32
  }
}

</mosaic_0001>

<bundles_post_ra>
// kernel: conv_block_forward.3
= control target key start
LH: loop header
LB: loop body
LE: loop exit
PB: predicated region body
PF: predicated region fallthrough
CT: control target
= control target key end

     0   :  { %s321_s12 = smov 0   ;;  %s344_s0 = inlined_call_operand.vmem [shape: f32[64,128], index: 0, kind: input, shape index: {}]   ;;  %s345_s1 = inlined_call_operand.vmem [shape: f32[1,128], index: 1, kind: input, shape index: {}]   ;;  %s346_s2 = inlined_call_operand.vmem [shape: f32[1,128], index: 2, kind: input, shape index: {}]   ;;  %s347_s3 = inlined_call_operand.vmem [shape: f32[64,128], index: 3, kind: output, shape index: {}]  }
   0x1 LB: > { %s272_s13 = sadd.s32 4294967295, %s299_s12   ;;  %p276_p0 = scmp.ge.s32.totalorder %s299_s12, 1  ;;  %s299_s12 = sphi %s321_s12, %s13_s12  }
   0x2   : > { %p138_p1 = scmp.lt.s32.totalorder %s299_s12, 3 }
   0x4   : > { %p139_p2 = pnand %p276_p0, %p138_p1 }
   0x5   : > { %s277_s14 = sshll.u32 (!%p139_p2), %s272_s13, 2  ;;  %v281_v0 = vld [vmem:[%s345_s1] ss:$0 sm:$0xff] (!%p139_p2) }
   0x6   : > { %142 = sbr.rel (%p139_p2) target bundleno = 26 (0x1a), region = 32  ;;  %p163_p3 = scmp.lt.s32.totalorder (!%p139_p2), %s277_s14, 7  ;;  %v282_v1 = vld [vmem:[%s346_s2] ss:$0 sm:$0xff] (!%p139_p2) }
   0xd   : > { %s349_s14 = smov (!%p163_p3, %s277_s14), 7 }
   0xe   : > { %s278_s15 = sshll.u32 %s349_s14, 3 }
   0xf   : > { %s166_s20 = scalar_lea.vmem %s344_s0, %s278_s15  ;;  %s172_s25 = scalar_lea.vmem %s347_s3, %s278_s15 }
  0x10   : > { %v174_v2 = vld [vmem:[%s166_s20] sm:$0xff]  ;;  %v175_v3 = vld [vmem:[%s166_s20 + $0x8] sm:$0xff]  ;;  %v176_v4 = vld [vmem:[%s166_s20 + $0x10] sm:$0xff] }
  0x11   : > { %v185_v5 = vmul.f32 %v281_v0, %v174_v2  ;;  %v186_v6 = vmul.f32 %v281_v0, %v175_v3  ;;  %v187_v7 = vmul.f32 %v281_v0, %v176_v4  ;;  %v177_v8 = vld [vmem:[%s166_s20 + $0x18] sm:$0xff] }
  0x12   : > { %v188_v9 = vmul.f32 %v281_v0, %v177_v8 }
  0x13   : > { %v196_v10 = vadd.f32 %v282_v1, %v185_v5  ;;  %v197_v11 = vadd.f32 %v282_v1, %v186_v6  ;;  %v198_v12 = vadd.f32 %v282_v1, %v187_v7 }
  0x14   : > { %v199_v13 = vadd.f32 %v282_v1, %v188_v9 }
  0x15   : > { %vm200_vm0 = vcmp.ge.f32.partialorder %v196_v10, 0.0  ;;  %v204_v14 = vmul.f32 0.1, %v196_v10  ;;  %vm201_vm1 = vcmp.ge.f32.partialorder %v197_v11, 0.0  ;;  %v205_v15 = vmul.f32 0.1, %v197_v11 }
  0x16   : > { %vm202_vm2 = vcmp.ge.f32.partialorder %v198_v12, 0.0  ;;  %v206_v16 = vmul.f32 0.1, %v198_v12  ;;  %vm203_vm3 = vcmp.ge.f32.partialorder %v199_v13, 0.0  ;;  %v207_v17 = vmul.f32 0.1, %v199_v13 }
  0x17   : > { %v208_v18 = vsel %vm200_vm0, %v196_v10, %v204_v14  ;;  %v209_v19 = vsel %vm201_vm1, %v197_v11, %v205_v15 }
  0x18   : > { %212 = vst [vmem:[%s172_s25] sm:$0xff] %v208_v18  ;;  %v210_v20 = vsel %vm202_vm2, %v198_v12, %v206_v16  ;;  %v211_v21 = vsel %vm203_vm3, %v199_v13, %v207_v17  ;;  %213 = vst [vmem:[%s172_s25 + $0x8] sm:$0xff] %v209_v19 }
  0x19   : > { %214 = vst [vmem:[%s172_s25 + $0x10] sm:$0xff] %v210_v20  ;;  %215 = vst [vmem:[%s172_s25 + $0x18] sm:$0xff] %v211_v21 }
  0x1a PF: > { %s13_s12 = sadd.s32 1, %s299_s12  }
  0x1b   : > { %p10_p4 = scmp.ge.s32.totalorder %s13_s12, 4  }
  0x1d   :  { %12 = sbr.rel (!%p10_p4) target bundleno = 1 (0x1), region = 62 }

// kernel: conv_block_forward.2
= control target key start
LH: loop header
LB: loop body
LE: loop exit
PB: predicated region body
PF: predicated region fallthrough
CT: control target
= control target key end

     0   :  { %s7244_s25 = smov 0   ;;  %s11064_s0 = inlined_call_operand.vmem [shape: f32[64,16], index: 0, kind: input, shape index: {}]   ;;  %s11065_s1 = inlined_call_operand.vmem [shape: f32[64,16], index: 1, kind: input, shape index: {}]   ;;  %s11066_s2 = inlined_call_operand.vmem [shape: f32[64,16], index: 2, kind: input, shape index: {}]   ;;  %s11067_s3 = inlined_call_operand.vmem [shape: bf16[64,16,16], index: 3, kind: input, shape index: {}]   ;;  %s11068_s4 = inlined_call_operand.vmem [shape: f32[64,1], index: 4, kind: input, shape index: {}]   ;;  %s11069_s5 = inlined_call_operand.vmem [shape: f32[15,1], index: 5, kind: input, shape index: {}]   ;;  %s11070_s6 = inlined_call_operand.vmem [shape: f32[15,1], index: 6, kind: input, shape index: {}]   ;;  %s11071_s7 = inlined_call_operand.vmem [shape: f32[15,1], index: 7, kind: input, shape index: {}]   ;;  %s11072_s8 = inlined_call_operand.vmem [shape: f32[15,1], index: 8, kind: input, shape index: {}]   ;;  %s11073_s9 = inlined_call_operand.vmem [shape: bf16[240,128], index: 9, kind: input, shape index: {}]   ;;  %s11074_s10 = inlined_call_operand.vmem [shape: f32[1,128], index: 10, kind: input, shape index: {}]   ;;  %s11075_s11 = inlined_call_operand.vmem [shape: f32[64,128], index: 11, kind: output, shape index: {0}]   ;;  %s11076_s12 = inlined_call_operand.vmem [shape: f32[2,8,128], index: 12, kind: output, shape index: {1}]   ;;  %s11077_s13 = inlined_call_operand.vmem [shape: f32[2,8,128], index: 13, kind: output, shape index: {2}]  }
   0x1 LB: > { %s7250_s26 = sadd.s32 4294967295, %s7161_s25   ;;  %p6581_p0 = scmp.ge.s32.totalorder %s7161_s25, 1  ;;  %s7161_s25 = sphi %s7244_s25, %s24_s25  }
   0x2   : > { %p438_p1 = scmp.lt.s32.totalorder %s7161_s25, 3 }
   0x4   : > { %p439_p2 = pnand %p6581_p0, %p438_p1 }
   0x6   : > { %442 = sbr.rel (%p439_p2) target bundleno = 1154 (0x482), region = 64 }
   0xd   : > { %v591_v0 = vld [vmem:[%s11070_s6] sm:$0xff]  ;;  %v11078_v2 = vmov 0   ;;  %v592_v3 = vld [vmem:[%s11070_s6 + $0x8] sm:$0x7f]  ;;  %s6588_s28 = sshll.u32 %s7250_s26, 5  ;;  %v11080_v9 = vmov 0.0   ;;  %v605_v14 = vlaneseq }
   0xe   : > { %v589_v1 = vld [vmem:[%s11069_s5] sm:$0xff]  ;;  %6962 = vset.pattern.permute.xlu1 %v11078_v2  ;;  %6961 = vset.pattern.permute.xlu0 %v11078_v2  ;;  %v590_v4 = vld [vmem:[%s11069_s5 + $0x8] sm:$0x7f]  ;;  %p530_p3 = scmp.lt.s32.totalorder %s6588_s28, 63  ;;  %vm7165_vm0 = vmmov 0   ;;  %s6582_s16 = sshll.u32 %s7250_s26, 2 }
   0xf   : > { %1393 = vperm.xlu1 %6962, %v591_v0   ;;  %959 = vperm.xlu0 %6961, %v589_v1   ;;  %v594_v5 = vld [vmem:[%s11071_s7 + $0x8] sm:$0x7f]  ;;  %v593_v6 = vld [vmem:[%s11071_s7] sm:$0xff]  ;;  %p512_p4 = scmp.lt.s32.totalorder %s6582_s16, 7  ;;  %v7166_v12 = vmov 1966171168  }
  0x10   : > { %v596_v7 = vld [vmem:[%s11072_s8 + $0x8] sm:$0x7f]  ;;  %v595_v8 = vld [vmem:[%s11072_s8] sm:$0xff]  ;;  %6750 = vmatprep.subr.bf16.mxu1 %v11080_v9  ;;  %6798 = vmatprep.subr.bf16.mxu0 %v11080_v9  ;;  %s11354_s28 = smov (!%p530_p3, %s6588_s28), 63  ;;  %v603_v13 = vunpack.c.l.s4 %v7166_v12  ;;  %v606_v16 = vshrl.u32 %v605_v14, 7  ;;  %vm3395_vm13 = vcmask 130048  }
  0x11   : > { %6752 = vmatprep.mubr.msk.bf16.mxu1 %vm7165_vm0, %v11080_v9  ;;  %6800 = vmatprep.mubr.msk.bf16.mxu0 %vm7165_vm0, %v11080_v9  ;;  %s6685_s29 = sshll.u32 %s11354_s28, 3  ;;  %s11356_s16 = smov (!%p512_p4, %s6582_s16), 7 }
  0x12   : > { %s7290_s15 = scalar_lea.vmem %s11067_s3, %s6685_s29  ;;  %s7297_s17 = sshll.u32 %s11356_s16, 3  ;;  %v604_v15 = vunpack.c.0.s8 %v603_v13  ;;  %v7362_v38 = vsub.s32 0, %v606_v16 }
  0x13   : > { %1398 = vperm.xlu1 %6962, %v592_v3   ;;  %964 = vperm.xlu0 %6961, %v590_v4   ;;  %v6968_v10 = vld [vmem:[%s7290_s15] sm:$0xff]   ;;  %s7303_s20 = scalar_lea.vmem %s11064_s0, %s7297_s17  ;;  %s7309_s23 = scalar_lea.vmem %s11065_s1, %s7297_s17 }
  0x14   : > { %v6969_v11 = vld [vmem:[%s7290_s15 + $0x40] sm:$0xff]   ;;  %6751 = vmatpush3.bf16.msra.mxu1 %v6968_v10  ;;  %s7315_s28 = scalar_lea.vmem %s11066_s2, %s7297_s17  ;;  %v7330_v22 = vsub.s32 %v604_v15, %v606_v16  ;;  %v7333_v23 = vld [vmem:[%s7303_s20 + $0x8] sm:$0xff]  ;;  %s7167_s29 = smov 112  }
  0x15   : > { %6799 = vmatpush3.bf16.msra.mxu0 %v6969_v11  ;;  %6756 = vmatprep.subr.bf16.mxu1 %v11080_v9  ;;  %v7318_v17 = vld [vmem:[%s7303_s20] sm:$0xff]  ;;  %v7336_v24 = vld [vmem:[%s7309_s23 + $0x8] sm:$0xff]  ;;  %v570_v25 = vmul.f32 %v7333_v23, %v7333_v23  ;;  %v650_v1 = vcombine.high %v7333_v23, %v7333_v23  ;;  %s7168_s30 = smov 16   ;;  %s7169_s14 = smov 32  }
  0x16   : > { %6810 = vmatprep.subr.bf16.mxu0 %v11080_v9  ;;  %v7321_v18 = vld [vmem:[%s7309_s23] sm:$0xff]  ;;  %v569_v19 = vmul.f32 %v7318_v17, %v7318_v17  ;;  %v574_v26 = vmul.f32 %v7336_v24, %v7336_v24  ;;  %v7343_v27 = vld [vmem:[%s7315_s28 + $0x8] sm:$0xff]  ;;  %v608_v30 = vrot.slane %v7318_v17, %v7330_v22  ;;  %v601_v37 = vcombine.high %v7318_v17, %v7318_v17  ;;  %s7171_s16 = smov 64   ;;  %s7172_s18 = smov 80  }
  0x17   : > { %1896 = vperm.xlu1 %6962, %v594_v5   ;;  %1891 = vperm.xlu0 %6961, %v593_v6   ;;  %v573_v20 = vmul.f32 %v7321_v18, %v7321_v18  ;;  %v7328_v21 = vld [vmem:[%s7315_s28] sm:$0xff]  ;;  %v582_v32 = vmul.f32 %v7343_v27, %v7343_v27  ;;  %v1042_v34 = vrot.slane %v7321_v18, %v7330_v22  ;;  %s7173_s19 = smov 96   ;;  %s10879_s24 = scalar_lea.vmem %s11068_s4, %s7297_s17 }
  0x18   : > { %v581_v29 = vmul.f32 %v7328_v21, %v7328_v21  ;;  %v578_v31 = vadd.f32 %v574_v26, %v570_v25  ;;  %v7352_v33 = vrot.slane %v608_v30, %v7330_v22  ;;  %v1540_v35 = vrot.slane %v7328_v21, %v7330_v22  ;;  %p548_p5 = scmp.lt.s32.totalorder %s7250_s26, 1 }
  0x19   : > { %v577_v28 = vadd.f32 %v573_v20, %v569_v19  ;;  %v616_v39 = vcombine.high %v608_v30, %v608_v30  ;;  %v1035_v40 = vcombine.high %v7321_v18, %v7321_v18  ;;  %v1058_v41 = vrot.slane %v1042_v34, %v7330_v22 }
  0x1a   : > { %v1533_v42 = vcombine.high %v7328_v21, %v7328_v21  ;;  %v1556_v43 = vrot.slane %v1540_v35, %v7330_v22  ;;  %v586_v45 = vadd.f32 %v582_v32, %v578_v31  ;;  %v7374_v46 = vrot.slane %v7333_v23, %v7330_v22  ;;  %s11358_s26 = smov (!%p548_p5, %s7250_s26), 1 }
  0x1b   : > { %2394 = vperm.xlu1 %6962, %v596_v7   ;;  %2389 = vperm.xlu0 %6961, %v595_v8   ;;  %v7358_v36 = vadd.f32 %v581_v29, %v577_v28  ;;  %v646_v47 = vcombine.high %v7352_v33, %v7352_v33  ;;  %v1050_v48 = vcombine.high %v1042_v34, %v1042_v34 }
  0x1c   : > { %11147 = vst [vmem:[#allocation3_spill] sm:$0xff] %v7374_v46  ;;  %v1548_v49 = vcombine.high %v1540_v35, %v1540_v35  ;;  %v7380_v50 = vrot.slane %v7336_v24, %v7330_v22  ;;  %v673_v52 = vrot.slane %v7374_v46, %v7330_v22  ;;  %v7387_v53 = vrot.slane %v7343_v27, %v7330_v22 }
  0x1d   : > { %v2038_v44 = vrot.slane %v7358_v36, %v7330_v22  ;;  %v7390_v54 = vrot.slane %v586_v45, %v7330_v22  ;;  %v7394_v55 = vrot.slane %v7352_v33, %v7362_v38  ;;  %v1080_v56 = vcombine.high %v1058_v41, %v1058_v41 }
  0x1e   : > { %11148 = vst [vmem:[#allocation4_spill] sm:$0xff] %v7380_v50  ;;  %11149 = vst [vmem:[#allocation5_spill] sm:$0xff] %v7387_v53  ;;  %v7397_v57 = vrot.slane %v1058_v41, %v7362_v38  ;;  %v1107_v58 = vrot.slane %v7380_v50, %v7330_v22  ;;  %v1578_v59 = vcombine.high %v1556_v43, %v1556_v43 }
  0x1f   : > { %v2054_v51 = vrot.slane %v2038_v44, %v7330_v22  ;;  %11150 = vst [vmem:[#allocation6_spill] sm:$0xff] %v7390_v54  ;;  %v7402_v60 = vrot.slane %v1556_v43, %v7362_v38  ;;  %v1605_v61 = vrot.slane %v7387_v53, %v7330_v22  ;;  %v2103_v62 = vrot.slane %v7390_v54, %v7330_v22 }
  0x20   : > { %v2031_v63 = vcombine.high %v7358_v36, %v7358_v36  ;;  %v2046_v0 = vcombine.high %v2038_v44, %v2038_v44  ;;  %v1084_v3 = vcombine.high %v7336_v24, %v7336_v24  ;;  %v695_v6 = vcombine.high %v673_v52, %v673_v52 }
  0x21   : > { %v2076_v4 = vcombine.high %v2054_v51, %v2054_v51  ;;  %v7415_v5 = vrot.slane %v2054_v51, %v7362_v38  ;;  %v1582_v7 = vcombine.high %v7343_v27, %v7343_v27  ;;  %v7422_v10 = vrot.slane %v673_v52, %v7362_v38 }
  0x22   : > { %v1129_v11 = vcombine.high %v1107_v58, %v1107_v58  ;;  %v2080_v12 = vcombine.high %v586_v45, %v586_v45  ;;  %v7425_v13 = vrot.slane %v1107_v58, %v7362_v38  ;;  %v1627_v14 = vcombine.high %v1605_v61, %v1605_v61  ;;  %v7490_v58 = vld [vmem:[%s7309_s23 + $0x10] sm:$0xff] }
  0x23   : > { %v2125_v15 = vcombine.high %v2103_v62, %v2103_v62  ;;  %v638_v16 = vrot.slane %v616_v39, %v7330_v22  ;;  %v7429_v19 = vrot.slane %v1605_v61, %v7362_v38  ;;  %v1072_v20 = vrot.slane %v1050_v48, %v7330_v22 }
  0x24   : > { %v1570_v23 = vrot.slane %v1548_v49, %v7330_v22  ;;  %v2068_v24 = vrot.slane %v2046_v0, %v7330_v22  ;;  %v7435_v25 = vrot.slane %v2103_v62, %v7362_v38  ;;  %v7441_v27 = vrot.slane %v695_v6, %v7362_v38 }
  0x25   : > { %v7438_v26 = vrot.slane %v638_v16, %v7362_v38  ;;  %v7444_v28 = vrot.slane %v650_v1, %v7330_v22  ;;  %v7447_v29 = vrot.slane %v1072_v20, %v7362_v38  ;;  %v7453_v31 = vrot.slane %v1129_v11, %v7362_v38 }
  0x26   : > { %v7450_v30 = vrot.slane %v1570_v23, %v7362_v38  ;;  %v7456_v32 = vrot.slane %v1084_v3, %v7330_v22  ;;  %v7459_v33 = vrot.slane %v2068_v24, %v7362_v38  ;;  %v7462_v34 = vrot.slane %v1627_v14, %v7362_v38 }
  0x27   : > { %11151 = vst [vmem:[#allocation7_spill] sm:$0xff] %v7444_v28  ;;  %v7465_v35 = vrot.slane %v2125_v15, %v7362_v38  ;;  %v680_v39 = vrot.slane %v7444_v28, %v7330_v22  ;;  %v7470_v41 = vrot.slane %v646_v47, %v7362_v38  ;;  %v7473_v43 = vrot.slane %v1080_v56, %v7362_v38  ;;  %v7487_v47 = vld [vmem:[%s7303_s20 + $0x10] sm:$0xff] }
  0x28   : > { %11152 = vst [vmem:[#allocation8_spill] sm:$0xff] %v7456_v32  ;;  %v1114_v44 = vrot.slane %v7456_v32, %v7330_v22  ;;  %v7478_v45 = vrot.slane %v1582_v7, %v7330_v22  ;;  %v7481_v48 = vrot.slane %v1578_v59, %v7362_v38  ;;  %v7484_v49 = vrot.slane %v2080_v12, %v7330_v22  ;;  %v7507_v7 = vld [vmem:[%s7315_s28 + $0x10] sm:$0xff] }
  0x29   : > { %v648_v51 = vcombine.high %v638_v16, %v638_v16  ;;  %v1082_v52 = vcombine.high %v1072_v20, %v1072_v20  ;;  %v7493_v56 = vrot.slane %v2076_v4, %v7362_v38  ;;  %v571_v62 = vmul.f32 %v7487_v47, %v7487_v47 }
  0x2a   : > { %11153 = vst [vmem:[#allocation9_spill] sm:$0xff] %v7478_v45  ;;  %11154 = vst [vmem:[#allocation10_spill] sm:$0xff] %v7484_v49  ;;  %v1612_v61 = vrot.slane %v7478_v45, %v7330_v22  ;;  %v575_v59 = vmul.f32 %v7490_v58, %v7490_v58  ;;  %v7502_v0 = vrot.slane %v680_v39, %v7362_v38 }
  0x2b   : > { %v2110_v1 = vrot.slane %v7484_v49, %v7330_v22  ;;  %v1580_v3 = vcombine.high %v1570_v23, %v1570_v23  ;;  %v696_v6 = vcombine.high %v680_v39, %v680_v39  ;;  %v7510_v4 = vrot.slane %v1114_v44, %v7362_v38 }
  0x2c   : > { %v2078_v11 = vcombine.high %v2068_v24, %v2068_v24  ;;  %v1130_v12 = vcombine.high %v1114_v44, %v1114_v44  ;;  %v615_v14 = vrot.slane %v601_v37, %v7330_v22  ;;  %v7517_v15 = vrot.slane %v1612_v61, %v7362_v38 }
  0x2d   : > { %v7520_v16 = vrot.slane %v2110_v1, %v7362_v38  ;;  %v7523_v20 = vrot.slane %v648_v51, %v7362_v38  ;;  %v7526_v23 = vrot.slane %v1082_v52, %v7362_v38  ;;  %v1628_v39 = vcombine.high %v1612_v61, %v1612_v61 }
  0x2e   : > { %v631_v24 = vrot.slane %v615_v14, %v7330_v22  ;;  %v579_v44 = vadd.f32 %v575_v59, %v571_v62  ;;  %v583_v17 = vmul.f32 %v7507_v7, %v7507_v7  ;;  %v7532_v37 = vrot.slane %v1580_v3, %v7362_v38 }
  0x2f   : > { %v7535_v2 = vrot.slane %v696_v6, %v7362_v38  ;;  %v1049_v51 = vrot.slane %v1035_v40, %v7330_v22  ;;  %v7543_v52 = vrot.slane %v7487_v47, %v7330_v22  ;;  %v7546_v61 = vrot.slane %v2078_v11, %v7362_v38 }
  0x30   : > { %v7549_v62 = vrot.slane %v1130_v12, %v7362_v38  ;;  %v2126_v59 = vcombine.high %v2110_v1, %v2110_v1  ;;  %v7552_v3 = vrot.slane %v631_v24, %v7362_v38  ;;  %v1547_v18 = vrot.slane %v1533_v42, %v7330_v22 }
  0x31   : > { %11155 = vst [vmem:[#allocation11_spill] sm:$0xff] %v7543_v52  ;;  %v1065_v6 = vrot.slane %v1049_v51, %v7330_v22  ;;  %v722_v40 = vrot.slane %v7543_v52, %v7330_v22  ;;  %v617_v8 = vcombine.high %v615_v14, %v615_v14  ;;  %v7562_v11 = vrot.slane %v1628_v39, %v7362_v38 }
  0x32   : > { %v2045_v1 = vrot.slane %v2031_v63, %v7330_v22  ;;  %v7568_v12 = vadd.f32 %v583_v17, %v579_v44  ;;  %v7572_v9 = vrot.slane %v7490_v58, %v7330_v22  ;;  %v1563_v42 = vrot.slane %v1547_v18, %v7330_v22 }
  0x33   : > { %v7575_v21 = vrot.slane %v1065_v6, %v7362_v38  ;;  %v7579_v14 = vrot.slane %v722_v40, %v7362_v38  ;;  %v1051_v39 = vcombine.high %v1049_v51, %v1049_v51  ;;  %v7582_v52 = vrot.slane %v2126_v59, %v7362_v38 }
  0x34   : > { %11156 = vst [vmem:[#allocation12_spill] sm:$0xff] %v7572_v9  ;;  %v1156_v36 = vrot.slane %v7572_v9, %v7330_v22  ;;  %v7588_v63 = vrot.slane %v7507_v7, %v7330_v22  ;;  %v7592_v44 = vrot.slane %v7568_v12, %v7330_v22  ;;  %v7595_v17 = vrot.slane %v1563_v42, %v7362_v38 }
  0x35   : > { %11157 = vst [vmem:[#allocation13_spill] sm:$0xff] %v7579_v14  ;;  %v645_v49 = vrot.slane %v617_v8, %v7330_v22  ;;  %v1549_v51 = vcombine.high %v1547_v18, %v1547_v18  ;;  %v744_v45 = vcombine.high %v722_v40, %v722_v40  ;;  %v2061_v59 = vrot.slane %v2045_v1, %v7330_v22 }
  0x36   : > { %11158 = vst [vmem:[#allocation14_spill] sm:$0xff] %v7588_v63  ;;  %11159 = vst [vmem:[#allocation15_spill] sm:$0xff] %v7592_v44  ;;  %v1654_v9 = vrot.slane %v7588_v63, %v7330_v22  ;;  %v2152_v32 = vrot.slane %v7592_v44, %v7330_v22  ;;  %v2047_v28 = vcombine.high %v2045_v1, %v2045_v1 }
  0x37   : > { %11160 = vst [vmem:[#allocation16_spill] sm:$0xff] %v7595_v17  ;;  %v7604_v54 = vrot.slane %v1156_v36, %v7362_v38  ;;  %v7607_v53 = vrot.slane %v1051_v39, %v7330_v22  ;;  %v699_v8 = vcombine.high %v7487_v47, %v7487_v47  ;;  %v1133_v18 = vcombine.high %v7490_v58, %v7490_v58 }
  0x38   : > { %v7614_v40 = vrot.slane %v2061_v59, %v7362_v38  ;;  %v7617_v63 = vrot.slane %v1654_v9, %v7362_v38  ;;  %v7620_v1 = vrot.slane %v645_v49, %v7362_v38  ;;  %v1178_v44 = vcombine.high %v1156_v36, %v1156_v36 }
  0x39   : > { %11161 = vst [vmem:[#allocation17_spill] sm:$0xff] %v7604_v54  ;;  %v7624_v39 = vrot.slane %v7607_v53, %v7362_v38  ;;  %v7627_v50 = vrot.slane %v1549_v51, %v7330_v22  ;;  %v7630_v47 = vrot.slane %v744_v45, %v7362_v38  ;;  %v647_v58 = vcombine.high %v631_v24, %v631_v24 }
  0x3a   : > { %11162 = vst [vmem:[#allocation18_spill] sm:$0xff] %v7614_v40  ;;  %11163 = vst [vmem:[#allocation19_spill] sm:$0xff] %v7617_v63  ;;  %v7633_v46 = vrot.slane %v2047_v28, %v7330_v22  ;;  %v1676_v54 = vcombine.high %v1654_v9, %v1654_v9  ;;  %v2174_v63 = vcombine.high %v2152_v32, %v2152_v32 }
  0x3b   : > { %11164 = vst [vmem:[#allocation20_spill] sm:$0xff] %v7620_v1  ;;  %11165 = vst [vmem:[#allocation21_spill] sm:$0xff] %v7624_v39  ;;  %v1081_v14 = vcombine.high %v1065_v6, %v1065_v6  ;;  %v1579_v40 = vcombine.high %v1563_v42, %v1563_v42  ;;  %v7636_v36 = vrot.slane %v699_v8, %v7330_v22 }
  0x3c   : > { %11166 = vst [vmem:[#allocation22_spill] sm:$0xff] %v7627_v50  ;;  %11167 = vst [vmem:[#allocation23_spill] sm:$0xff] %v7630_v47  ;;  %v7639_v1 = vrot.slane %v1133_v18, %v7330_v22  ;;  %v1631_v51 = vcombine.high %v7507_v7, %v7507_v7  ;;  %v7644_v45 = vrot.slane %v2152_v32, %v7362_v38 }
  0x3d   : > { %11168 = vst [vmem:[#allocation24_spill] sm:$0xff] %v7633_v46  ;;  %11169 = vst [vmem:[#allocation25_spill] sm:$0xff] %v7636_v36  ;;  %v7648_v28 = vrot.slane %v7627_v50, %v7362_v38  ;;  %v7651_v9 = vrot.slane %v1178_v44, %v7362_v38  ;;  %v649_v24 = vcombine.high %v645_v49, %v645_v49 }
  0x3e   : > { %11170 = vst [vmem:[#allocation26_spill] sm:$0xff] %v7639_v1  ;;  %11171 = vst [vmem:[#allocation27_spill] sm:$0xff] %v7644_v45  ;;  %v7655_v6 = vrot.slane %v7633_v46, %v7362_v38  ;;  %v7658_v42 = vrot.slane %v647_v58, %v7362_v38  ;;  %v7662_v7 = vrot.slane %v7636_v36, %v7330_v22 }
  0x3f   : > { %11172 = vst [vmem:[#allocation28_spill] sm:$0xff] %v7648_v28  ;;  %11173 = vst [vmem:[#allocation29_spill] sm:$0xff] %v7651_v9  ;;  %v7666_v32 = vrot.slane %v7639_v1, %v7330_v22  ;;  %v7673_v49 = vrot.slane %v1676_v54, %v7362_v38  ;;  %v7676_v18 = vrot.slane %v2174_v63, %v7362_v38 }
  0x40   : > { %11174 = vst [vmem:[#allocation30_spill] sm:$0xff] %v7655_v6  ;;  %11175 = vst [vmem:[#allocation31_spill] sm:$0xff] %v7658_v42  ;;  %v7679_v58 = vrot.slane %v1081_v14, %v7362_v38  ;;  %v2077_v46 = vcombine.high %v2061_v59, %v2061_v59  ;;  %v7682_v36 = vrot.slane %v1579_v40, %v7362_v38 }
  0x41   : > { %11176 = vst [vmem:[#allocation32_spill] sm:$0xff] %v7666_v32  ;;  %11177 = vst [vmem:[#allocation33_spill] sm:$0xff] %v7673_v49  ;;  %v7686_v1 = vrot.slane %v7662_v7, %v7362_v38  ;;  %v7690_v50 = vrot.slane %v7666_v32, %v7362_v38  ;;  %v7693_v54 = vrot.slane %v1631_v51, %v7330_v22 }
  0x42   : > { %11178 = vst [vmem:[#allocation34_spill] sm:$0xff] %v7676_v18  ;;  %11179 = vst [vmem:[#allocation35_spill] sm:$0xff] %v7679_v58  ;;  %v2129_v59 = vcombine.high %v7568_v12, %v7568_v12  ;;  %v7702_v40 = vrot.slane %v649_v24, %v7362_v38 }
  0x43   : > { %11180 = vst [vmem:[#allocation36_spill] sm:$0xff] %v7682_v36  ;;  %11181 = vst [vmem:[#allocation37_spill] sm:$0xff] %v7686_v1  ;;  %v7725_v42 = vrot.slane %v7693_v54, %v7330_v22 }
  0x44   : > { %11182 = vst [vmem:[#allocation38_spill] sm:$0xff] %v7690_v50  ;;  %11183 = vst [vmem:[#allocation39_spill] sm:$0xff] %v7693_v54  ;;  %v7740_v54 = vrot.slane %v2129_v59, %v7330_v22 }
  0x45   : > { %11184 = vst [vmem:[#allocation40_spill] sm:$0xff] %v7702_v40  ;;  %v7721_v40 = vrot.slane %v2077_v46, %v7362_v38 }
  0x47   : > { %11185 = vst [vmem:[#allocation41_spill] sm:$0xff] %v7721_v40 }
  0x8e   : > { %v7668_v8 = vpop.permute.xlu1 %1393  ;;  %v7670_v44 = vpop.permute.xlu0 %959 }
  0x8f   : > { %v967_v63 = vmul.f32 %v7670_v44, %v7394_v55  ;;  %v1401_v14 = vmul.f32 %v7668_v8, %v7397_v57  ;;  %v983_v1 = vmul.f32 %v7670_v44, %v7422_v10  ;;  %v1417_v32 = vmul.f32 %v7668_v8, %v7425_v13 }
  0x90   : > { %v969_v51 = vmul.f32 %v7670_v44, %v7438_v26  ;;  %v1403_v50 = vmul.f32 %v7668_v8, %v7447_v29  ;;  %v987_v12 = vmul.f32 %v7670_v44, %v7441_v27  ;;  %v1421_v24 = vmul.f32 %v7668_v8, %v7453_v31 }
  0x91   : > { %v1465_v6 = vadd.f32 %v1401_v14, %v967_v63 }
  0x92   : > { %v7712_v36 = vpop.permute.xlu1 %1398  ;;  %v7714_v58 = vpop.permute.xlu0 %964  ;;  %v1467_v28 = vadd.f32 %v1403_v50, %v969_v51  ;;  %v1485_v59 = vadd.f32 %v1421_v24, %v987_v12 }
  0x93   : > { %v968_v18 = vmul.f32 %v7714_v58, %v7394_v55  ;;  %v1402_v49 = vmul.f32 %v7712_v36, %v7397_v57  ;;  %v984_v9 = vmul.f32 %v7714_v58, %v7422_v10  ;;  %v1418_v47 = vmul.f32 %v7712_v36, %v7425_v13 }
  0x94   : > { %v970_v46 = vmul.f32 %v7714_v58, %v7438_v26  ;;  %v1404_v40 = vmul.f32 %v7712_v36, %v7447_v29  ;;  %v1481_v57 = vadd.f32 %v1417_v32, %v983_v1  ;;  %v971_v10 = vmul.f32 %v7670_v44, %v7470_v41 }
  0x95   : > { %v1466_v26 = vadd.f32 %v1402_v49, %v968_v18  ;;  %v1482_v45 = vadd.f32 %v1418_v47, %v984_v9  ;;  %v988_v29 = vmul.f32 %v7714_v58, %v7441_v27  ;;  %v1422_v9 = vmul.f32 %v7712_v36, %v7453_v31 }
  0x96   : > { %v7746_v39 = vpop.permute.xlu1 %1896  ;;  %v7748_v13 = vpop.permute.xlu0 %1891  ;;  %v1468_v63 = vadd.f32 %v1404_v40, %v970_v46 }
  0x97   : > { %v1899_v17 = vmul.f32 %v7748_v13, %v7402_v60  ;;  %v1900_v1 = vmul.f32 %v7746_v39, %v7402_v60  ;;  %v1915_v50 = vmul.f32 %v7748_v13, %v7429_v19  ;;  %v1916_v32 = vmul.f32 %v7746_v39, %v7429_v19 }
  0x98   : > { %v1901_v47 = vmul.f32 %v7748_v13, %v7450_v30  ;;  %v1902_v27 = vmul.f32 %v7746_v39, %v7450_v30  ;;  %v1919_v40 = vmul.f32 %v7748_v13, %v7462_v34  ;;  %v1920_v46 = vmul.f32 %v7746_v39, %v7462_v34 }
  0x99   : > { %v1963_v49 = vadd.f32 %v1899_v17, %v1465_v6  ;;  %v1964_v18 = vadd.f32 %v1900_v1, %v1466_v26  ;;  %v1979_v14 = vadd.f32 %v1915_v50, %v1481_v57  ;;  %v1980_v60 = vadd.f32 %v1916_v32, %v1482_v45 }
  0x9a   : > { %v7766_v51 = vpop.permute.xlu1 %2394  ;;  %v7768_v12 = vpop.permute.xlu0 %2389  ;;  %v1965_v24 = vadd.f32 %v1901_v47, %v1467_v28  ;;  %v1966_v19 = vadd.f32 %v1902_v27, %v1468_v63  ;;  %v1486_v55 = vadd.f32 %v1422_v9, %v988_v29  ;;  %v991_v29 = vmul.f32 %v7670_v44, %v7502_v0 }
  0x9b   : > { %v2397_v30 = vadd.f32 %v7768_v12, %v7415_v5  ;;  %v2398_v31 = vadd.f32 %v7766_v51, %v7415_v5  ;;  %v2461_v17 = vmul.f32 2.0, %v1963_v49  ;;  %v2462_v45 = vmul.f32 2.0, %v1964_v18 }
  0x9c   : > { %v2413_v6 = vadd.f32 %v7768_v12, %v7435_v25  ;;  %v2414_v28 = vadd.f32 %v7766_v51, %v7435_v25  ;;  %v2477_v57 = vmul.f32 2.0, %v1979_v14  ;;  %v2478_v26 = vmul.f32 2.0, %v1980_v60 }
  0x9d   : > { %v2525_v1 = vsub.f32 %v2397_v30, %v2461_v17  ;;  %v2526_v50 = vsub.f32 %v2398_v31, %v2462_v45  ;;  %v2399_v34 = vadd.f32 %v7768_v12, %v7459_v33  ;;  %v2400_v32 = vadd.f32 %v7766_v51, %v7459_v33 }
  0x9e   : > { %v2541_v63 = vsub.f32 %v2413_v6, %v2477_v57  ;;  %v2542_v5 = vsub.f32 %v2414_v28, %v2478_v26  ;;  %v2463_v47 = vmul.f32 2.0, %v1965_v24  ;;  %v2464_v27 = vmul.f32 2.0, %v1966_v19 }
  0x9f   : > { %v7786_v49 = vmax.f32 %v2525_v1, 0.0  ;;  %v7788_v18 = vmax.f32 %v2526_v50, 0.0  ;;  %v1405_v25 = vmul.f32 %v7668_v8, %v7473_v43  ;;  %v1983_v30 = vadd.f32 %v1919_v40, %v1485_v59 }
  0xa0   : > { %v7792_v14 = vmax.f32 %v2541_v63, 0.0  ;;  %v7794_v60 = vmax.f32 %v2542_v5, 0.0  ;;  %v7798_v33 = vrot.slane %v7725_v42, %v7362_v38  ;;  %v2527_v24 = vsub.f32 %v2399_v34, %v2463_v47 }
  0xa1   : > { %7027 = vrsqrt.f32 %v7786_v49  ;;  %v2528_v19 = vsub.f32 %v2400_v32, %v2464_v27  ;;  %v1984_v31 = vadd.f32 %v1920_v46, %v1486_v55  ;;  %v1425_v9 = vmul.f32 %v7668_v8, %v7510_v4 }
  0xa2   : > { %7029 = vrsqrt.f32 %v7788_v18  ;;  %v7808_v59 = vrot.slane %v7740_v54, %v7330_v22  ;;  %v972_v40 = vmul.f32 %v7714_v58, %v7470_v41  ;;  %v1406_v55 = vmul.f32 %v7712_v36, %v7473_v43 }
  0xa3   : > { %7031 = vrsqrt.f32 %v7792_v14  ;;  %v1469_v46 = vadd.f32 %v1405_v25, %v971_v10  ;;  %v2417_v17 = vadd.f32 %v7768_v12, %v7465_v35  ;;  %v2418_v45 = vadd.f32 %v7766_v51, %v7465_v35 }
  0xa4   : > { %7033 = vrsqrt.f32 %v7794_v60  ;;  %v992_v6 = vmul.f32 %v7714_v58, %v7502_v0  ;;  %vm2655_vm1 = vcmp.eq.f32.partialorder %v7786_v49, inf  ;;  %v7823_v28 = vmax.f32 %v2527_v24, 0.0 }
  0xa5   : > { %v7825_v41 = vmax.f32 %v2528_v19, 0.0  ;;  %v2481_v57 = vmul.f32 2.0, %v1983_v30  ;;  %v2482_v43 = vmul.f32 2.0, %v1984_v31  ;;  %vm2657_vm2 = vcmp.eq.f32.partialorder %v7786_v49, 0.0 }
  0xa6   : > { %v2658_v10 = vand.u32 2147483648, %v7786_v49  ;;  %vm2662_vm3 = vcmp.eq.f32.partialorder %v7788_v18, inf  ;;  %v1903_v35 = vmul.f32 %v7748_v13, %v7481_v48  ;;  %v1904_v0 = vmul.f32 %v7746_v39, %v7481_v48 }
  0xa7   : > { %vm2664_vm4 = vcmp.eq.f32.partialorder %v7788_v18, 0.0  ;;  %v2665_v26 = vand.u32 2147483648, %v7788_v18  ;;  %vm2767_vm5 = vcmp.eq.f32.partialorder %v7792_v14, inf  ;;  %7035 = vrsqrt.f32 %v7823_v28 }
  0xa8   : > { %v1470_v1 = vadd.f32 %v1406_v55, %v972_v40  ;;  %vm2769_vm6 = vcmp.eq.f32.partialorder %v7792_v14, 0.0  ;;  %v2770_v50 = vand.u32 2147483648, %v7792_v14  ;;  %vm2774_vm7 = vcmp.eq.f32.partialorder %v7794_v60, inf }
  0xa9   : > { %7037 = vrsqrt.f32 %v7825_v41  ;;  %v2545_v34 = vsub.f32 %v2417_v17, %v2481_v57  ;;  %v2546_v32 = vsub.f32 %v2418_v45, %v2482_v43  ;;  %v1967_v48 = vadd.f32 %v1903_v35, %v1469_v46 }
  0xaa   : > { %v1968_v63 = vadd.f32 %v1904_v0, %v1470_v1  ;;  %vm2776_vm8 = vcmp.eq.f32.partialorder %v7794_v60, 0.0  ;;  %v2777_v5 = vand.u32 2147483648, %v7794_v60  ;;  %v2401_v47 = vadd.f32 %v7768_v12, %v7493_v56 }
  0xab   : > { %v1426_v27 = vmul.f32 %v7712_v36, %v7510_v4  ;;  %v7028_v25 = vpop.eup %7027  ;;  %vm2669_vm9 = vcmp.eq.f32.partialorder %v7823_v28, inf  ;;  %v2672_v30 = vand.u32 2147483648, %v7823_v28  ;;  %v2679_v24 = vand.u32 2147483648, %v7825_v41 }
  0xac   : > { %v7851_v19 = vmax.f32 %v2545_v34, 0.0  ;;  %v7853_v31 = vmax.f32 %v2546_v32, 0.0  ;;  %v7030_v40 = vpop.eup %7029  ;;  %v2654_v55 = vmul.f32 %v7028_v25, %v7786_v49  ;;  %vm2671_vm10 = vcmp.eq.f32.partialorder %v7823_v28, 0.0 }
  0xad   : > { %vm2676_vm11 = vcmp.eq.f32.partialorder %v7825_v41, inf  ;;  %v2402_v4 = vadd.f32 %v7766_v51, %v7493_v56  ;;  %v1489_v46 = vadd.f32 %v1425_v9, %v991_v29  ;;  %v1923_v17 = vmul.f32 %v7748_v13, %v7517_v15  ;;  %v7032_v45 = vpop.eup %7031 }
  0xae   : > { %v2661_v57 = vmul.f32 %v7030_v40, %v7788_v18  ;;  %vm2678_vm12 = vcmp.eq.f32.partialorder %v7825_v41, 0.0  ;;  %7039 = vrsqrt.f32 %v7851_v19  ;;  %v2465_v43 = vmul.f32 2.0, %v1967_v48  ;;  %v7034_v0 = vpop.eup %7033 }
  0xaf   : > { %v2466_v35 = vmul.f32 2.0, %v1968_v63  ;;  %v2656_v1 = vsel %vm2655_vm1, %v7786_v49, %v2654_v55  ;;  %v2766_v56 = vmul.f32 %v7032_v45, %v7792_v14  ;;  %7041 = vrsqrt.f32 %v7853_v31 }
  0xb0   : > { %v7870_v29 = vadd.f32 %v1426_v27, %v992_v6  ;;  %v2659_v9 = vsel %vm2657_vm2, %v2658_v10, %v2656_v1  ;;  %v2663_v34 = vsel %vm2662_vm3, %v7788_v18, %v2661_v57  ;;  %v2773_v32 = vmul.f32 %v7034_v0, %v7794_v60 }
  0xb1   : > { %v7880_v48 = vmul.f32 %v7746_v39, %v7517_v15  ;;  %v2666_v63 = vsel %vm2664_vm4, %v2665_v26, %v2663_v34  ;;  %v3101_v25 = vmul.f32 1.25, %v2659_v9  ;;  %v2768_v6 = vsel %vm2767_vm5, %v7792_v14, %v2766_v56  ;;  %v7036_v10 = vpop.eup %7035 }
  0xb2   : > { %v7887_v49 = vadd.f32 %v1923_v17, %v1489_v46  ;;  %v3102_v27 = vmul.f32 1.25, %v2666_v63  ;;  %v2771_v40 = vsel %vm2769_vm6, %v2770_v50, %v2768_v6  ;;  %v2775_v15 = vsel %vm2774_vm7, %v7794_v60, %v2773_v32  ;;  %v6973_v63 = vld [vmem:[%s7290_s15 + $0x8] sm:$0xff]  }
  0xb3   : > { %vm2795_vm14 = vcmp.eq.f32.partialorder %v7851_v19, inf  ;;  %v7038_v18 = vpop.eup %7037  ;;  %v3165_v26 = vsub.f32 1.0, %v3101_v25  ;;  %v2778_v55 = vsel %vm2776_vm8, %v2777_v5, %v2775_v15  ;;  %v3117_v45 = vmul.f32 1.25, %v2771_v40 }
  0xb4   : > { %v2668_v46 = vmul.f32 %v7036_v10, %v7823_v28  ;;  %vm2797_vm15 = vcmp.eq.f32.partialorder %v7851_v19, 0.0  ;;  %v3166_v17 = vsub.f32 1.0, %v3102_v27  ;;  %v3118_v14 = vmul.f32 1.25, %v2778_v55 }
  0xb5   : > { %v2675_v50 = vmul.f32 %v7038_v18, %v7825_v41  ;;  %v2529_v57 = vsub.f32 %v2401_v47, %v2465_v43  ;;  %v3229_v0 = vmax.f32 %v3165_v26, 0.0  ;;  %v3181_v1 = vsub.f32 1.0, %v3117_v45 }
  0xb6   : > { %v2670_v56 = vsel %vm2669_vm9, %v7823_v28, %v2668_v46  ;;  %v2530_v9 = vsub.f32 %v2402_v4, %v2466_v35  ;;  %v3230_v60 = vmax.f32 %v3166_v17, 0.0  ;;  %v3182_v5 = vsub.f32 1.0, %v3118_v14 }
  0xb7   : > { %v2673_v34 = vsel %vm2671_vm10, %v2672_v30, %v2670_v56  ;;  %v2677_v32 = vsel %vm2676_vm11, %v7825_v41, %v2675_v50  ;;  %v3245_v25 = vmax.f32 %v3181_v1, 0.0  ;;  %v7911_v6 = vmax.f32 %v2529_v57, 0.0  ;;  %v6977_v30 = vld [vmem:[%s7290_s15 + $0x50] sm:$0xff]  }
  0xb8   : > { %v2680_v47 = vsel %vm2678_vm12, %v2679_v24, %v2677_v32  ;;  %v3103_v43 = vmul.f32 1.25, %v2673_v34  ;;  %v7040_v10 = vpop.eup %7039  ;;  %v3293_v4 = vpack.c.bf16 %v3230_v60, %v3229_v0  ;;  %v3246_v35 = vmax.f32 %v3182_v5, 0.0 }
  0xb9   : > { %v3104_v27 = vmul.f32 1.25, %v2680_v47  ;;  %v7913_v40 = vmax.f32 %v2530_v9, 0.0  ;;  %v7042_v28 = vpop.eup %7041  ;;  %v2794_v18 = vmul.f32 %v7040_v10, %v7851_v19  ;;  %v2798_v26 = vand.u32 2147483648, %v7851_v19 }
  0xba   : > { %v3167_v15 = vsub.f32 1.0, %v3103_v43  ;;  %7043 = vrsqrt.f32 %v7911_v6  ;;  %6753 = vmatmul.mubr.msk.bf16.vlgmr.msra.gmra.mrb[0].mxu1 %vm3395_vm13, %v3293_v4  ;;  %v3301_v41 = vpack.c.bf16 %v3246_v35, %v3245_v25  ;;  %v2801_v55 = vmul.f32 %v7042_v28, %v7853_v31 }
  0xbb   : > { %v3168_v24 = vsub.f32 1.0, %v3104_v27  ;;  %vm2802_vm1 = vcmp.eq.f32.partialorder %v7853_v31, inf  ;;  %6757 = vmatpush3.bf16.msra.mxu1 %v6973_v63  ;;  %v11186_v45 = vmov 0.0   ;;  %v2796_v17 = vsel %vm2795_vm14, %v7851_v19, %v2794_v18  ;;  %v6978_v63 = vld [vmem:[%s7290_s15 + $0x10] sm:$0xff]  }
  0xbc   : > { %6758 = vmatprep.mubr.msk.bf16.mxu1 %vm7165_vm0, %v11186_v45  ;;  %v3231_v46 = vmax.f32 %v3167_v15, 0.0  ;;  %v2805_v14 = vand.u32 2147483648, %v7853_v31  ;;  %7045 = vrsqrt.f32 %v7913_v40  ;;  %6801 = vmatmul.mubr.msk.bf16.vlgmr.msra.gmra.mrb[0].mxu0 %vm3395_vm13, %v3301_v41  ;;  %v2799_v57 = vsel %vm2797_vm15, %v2798_v26, %v2796_v17 }
  0xbd   : > { %6762 = vmatprep.subr.bf16.mxu1 %v11186_v45  ;;  %v3232_v50 = vmax.f32 %v3168_v24, 0.0  ;;  %v2803_v0 = vsel %vm2802_vm1, %v7853_v31, %v2801_v55  ;;  %vm2804_vm2 = vcmp.eq.f32.partialorder %v7853_v31, 0.0  ;;  %6811 = vmatpush3.bf16.msra.mxu0 %v6977_v30  ;;  %v3121_v56 = vmul.f32 1.25, %v2799_v57 }
  0xbe   : > { %6812 = vmatprep.mubr.msk.bf16.mxu0 %vm7165_vm0, %v11186_v45  ;;  %v2806_v1 = vsel %vm2804_vm2, %v2805_v14, %v2803_v0  ;;  %v11187_v9 = vcombine.high %v7607_v53, %v7607_v53  ;;  %v745_v19 = vcombine.high %v7662_v7, %v7662_v7  ;;  %6822 = vmatprep.subr.bf16.mxu0 %v11186_v45  ;;  %v2485_v47 = vmul.f32 2.0, %v7887_v49 }
  0xbf   : > { %v3294_v5 = vpack.c.bf16 %v3232_v50, %v3231_v46  ;;  %v3122_v34 = vmul.f32 1.25, %v2806_v1  ;;  %v1988_v31 = vadd.f32 %v7880_v48, %v7870_v29  ;;  %v2421_v32 = vadd.f32 %v7768_v12, %v7520_v16 }
  0xc0   : > { %v7941_v60 = vrot.slane %v11187_v9, %v7362_v38  ;;  %v3185_v25 = vsub.f32 1.0, %v3121_v56  ;;  %v2422_v53 = vadd.f32 %v7766_v51, %v7520_v16  ;;  %v973_v43 = vmul.f32 %v7670_v44, %v7523_v20 }
  0xc1   : > { %v3186_v10 = vsub.f32 1.0, %v3122_v34  ;;  %v2486_v4 = vmul.f32 2.0, %v1988_v31  ;;  %v974_v35 = vmul.f32 %v7714_v58, %v7523_v20  ;;  %v1407_v29 = vmul.f32 %v7668_v8, %v7526_v23  ;;  %v6979_v20 = vld [vmem:[%s7290_s15 + $0x60] sm:$0xff]  }
  0xc2   : > { %v3249_v48 = vmax.f32 %v3185_v25, 0.0  ;;  %v2549_v27 = vsub.f32 %v2421_v32, %v2485_v47  ;;  %v1408_v28 = vmul.f32 %v7712_v36, %v7526_v23  ;;  %v1905_v16 = vmul.f32 %v7748_v13, %v7532_v37  ;;  %6759 = vmatmul.mubr.msk.bf16.vlgmr.msra.gmra.mrb[4].mxu1 %vm3395_vm13, %v3294_v5 }
  0xc3   : > { %v3250_v49 = vmax.f32 %v3186_v10, 0.0  ;;  %vm2683_vm3 = vcmp.eq.f32.partialorder %v7911_v6, inf  ;;  %v2550_v30 = vsub.f32 %v2422_v53, %v2486_v4  ;;  %v1471_v15 = vadd.f32 %v1407_v29, %v973_v43  ;;  %6763 = vmatpush3.bf16.msra.mxu1 %v6978_v63  ;;  %6764 = vmatprep.mubr.msk.bf16.mxu1 %vm7165_vm0, %v11186_v45 }
  0xc4   : > { %v7044_v18 = vpop.eup %7043  ;;  %vm2685_vm4 = vcmp.eq.f32.partialorder %v7911_v6, 0.0  ;;  %v2686_v23 = vand.u32 2147483648, %v7911_v6  ;;  %v7971_v26 = vmax.f32 %v2549_v27, 0.0  ;;  %v1906_v41 = vmul.f32 %v7746_v39, %v7532_v37  ;;  %6768 = vmatprep.subr.bf16.mxu1 %v11186_v45 }
  0xc5   : > { %v3303_v24 = vpack.c.bf16 %v3250_v49, %v3249_v48  ;;  %v2682_v55 = vmul.f32 %v7044_v18, %v7911_v6  ;;  %v7977_v46 = vmax.f32 %v2550_v30, 0.0  ;;  %v1969_v17 = vadd.f32 %v1905_v16, %v1471_v15 }
  0xc6   : > { %v7046_v14 = vpop.eup %7045  ;;  %vm2690_vm5 = vcmp.eq.f32.partialorder %v7913_v40, inf  ;;  %vm2692_vm6 = vcmp.eq.f32.partialorder %v7913_v40, 0.0  ;;  %7047 = vrsqrt.f32 %v7971_v26  ;;  %v1472_v50 = vadd.f32 %v1408_v28, %v974_v35 }
  0xc7   : > { %6813 = vmatmul.mubr.msk.bf16.vlgmr.msra.gmra.mrb[4].mxu0 %vm3395_vm13, %v3303_v24  ;;  %v2684_v37 = vsel %vm2683_vm3, %v7911_v6, %v2682_v55  ;;  %v2689_v57 = vmul.f32 %v7046_v14, %v7913_v40  ;;  %7049 = vrsqrt.f32 %v7977_v46  ;;  %v2403_v0 = vadd.f32 %v7768_v12, %v7546_v61 }
  0xc8   : > { %6823 = vmatpush3.bf16.msra.mxu0 %v6979_v20  ;;  %6824 = vmatprep.mubr.msk.bf16.mxu0 %vm7165_vm0, %v11186_v45  ;;  %v2687_v1 = vsel %vm2685_vm4, %v2686_v23, %v2684_v37  ;;  %v2693_v56 = vand.u32 2147483648, %v7913_v40  ;;  %v1970_v9 = vadd.f32 %v1906_v41, %v1472_v50  ;;  %v2404_v5 = vadd.f32 %v7766_v51, %v7546_v61  ;;  %v6980_v23 = vld [vmem:[%s7290_s15 + $0x18] sm:$0xff]  }
  0xc9   : > { %v2691_v34 = vsel %vm2690_vm5, %v7913_v40, %v2689_v57  ;;  %v3105_v31 = vmul.f32 1.25, %v2687_v1  ;;  %6834 = vmatprep.subr.bf16.mxu0 %v11186_v45  ;;  %v2467_v32 = vmul.f32 2.0, %v1969_v17  ;;  %v995_v63 = vmul.f32 %v7670_v44, %v7535_v2 }
  0xca   : > { %v2694_v25 = vsel %vm2692_vm6, %v2693_v56, %v2691_v34  ;;  %v2468_v6 = vmul.f32 2.0, %v1970_v9  ;;  %v996_v53 = vmul.f32 %v7714_v58, %v7535_v2  ;;  %v1429_v47 = vmul.f32 %v7668_v8, %v7549_v62 }
  0xcb   : > { %v3106_v61 = vmul.f32 1.25, %v2694_v25  ;;  %v3169_v43 = vsub.f32 1.0, %v3105_v31  ;;  %v2531_v10 = vsub.f32 %v2403_v0, %v2467_v32  ;;  %v1430_v4 = vmul.f32 %v7712_v36, %v7549_v62 }
  0xcc   : > { %v2532_v35 = vsub.f32 %v2404_v5, %v2468_v6  ;;  %v1493_v29 = vadd.f32 %v1429_v47, %v995_v63  ;;  %v1927_v40 = vmul.f32 %v7748_v13, %v7562_v11  ;;  %v8013_v48 = vrot.slane %v7808_v59, %v7362_v38 }
  0xcd   : > { %v3170_v2 = vsub.f32 1.0, %v3106_v61  ;;  %v3233_v27 = vmax.f32 %v3169_v43, 0.0  ;;  %v8015_v28 = vmax.f32 %v2531_v10, 0.0  ;;  %v1928_v16 = vmul.f32 %v7746_v39, %v7562_v11  ;;  %v11188_v43 = vld [vmem:[#allocation16_spill] sm:$0xff] }
  0xce   : > { %vm2823_vm7 = vcmp.eq.f32.partialorder %v7971_v26, inf  ;;  %vm2825_vm8 = vcmp.eq.f32.partialorder %v7971_v26, 0.0  ;;  %v8021_v62 = vmax.f32 %v2532_v35, 0.0  ;;  %v1991_v49 = vadd.f32 %v1927_v40, %v1493_v29 }
  0xcf   : > { %v3234_v30 = vmax.f32 %v3170_v2, 0.0  ;;  %v2826_v15 = vand.u32 2147483648, %v7971_v26  ;;  %7051 = vrsqrt.f32 %v8015_v28  ;;  %v1494_v18 = vadd.f32 %v1430_v4, %v996_v53 }
  0xd0   : > { %v7048_v20 = vpop.eup %7047  ;;  %vm2830_vm9 = vcmp.eq.f32.partialorder %v7977_v46, inf  ;;  %vm2832_vm10 = vcmp.eq.f32.partialorder %v7977_v46, 0.0  ;;  %7053 = vrsqrt.f32 %v8021_v62  ;;  %v2425_v11 = vadd.f32 %v7768_v12, %v7582_v52 }
  0xd1   : > { %v7050_v41 = vpop.eup %7049  ;;  %v3295_v24 = vpack.c.bf16 %v3234_v30, %v3233_v27  ;;  %v2822_v55 = vmul.f32 %v7048_v20, %v7971_v26  ;;  %v1992_v17 = vadd.f32 %v1928_v16, %v1494_v18  ;;  %v2426_v14 = vadd.f32 %v7766_v51, %v7582_v52  ;;  %v11189_v30 = vld [vmem:[#allocation18_spill] sm:$0xff]  ;;  %v6981_v18 = vld [vmem:[%s7290_s15 + $0x70] sm:$0xff]  }
  0xd2   : > { %v2829_v50 = vmul.f32 %v7050_v41, %v7977_v46  ;;  %v2833_v37 = vand.u32 2147483648, %v7977_v46  ;;  %v2489_v57 = vmul.f32 2.0, %v1991_v49  ;;  %v975_v0 = vmul.f32 %v7670_v44, %v7552_v3 }
  0xd3   : > { %6765 = vmatmul.mubr.msk.bf16.vlgmr.msra.gmra.mrb[8].mxu1 %vm3395_vm13, %v3295_v24  ;;  %v2824_v1 = vsel %vm2823_vm7, %v7971_v26, %v2822_v55  ;;  %v2490_v56 = vmul.f32 2.0, %v1992_v17  ;;  %v976_v9 = vmul.f32 %v7714_v58, %v7552_v3  ;;  %v1409_v52 = vmul.f32 %v7668_v8, %v7575_v21  ;;  %v11190_v17 = vld [vmem:[#allocation13_spill] sm:$0xff] }
  0xd4   : > { %6769 = vmatpush3.bf16.msra.mxu1 %v6980_v23  ;;  %v2827_v5 = vsel %vm2825_vm8, %v2826_v15, %v2824_v1  ;;  %v2831_v34 = vsel %vm2830_vm9, %v7977_v46, %v2829_v50  ;;  %6770 = vmatprep.mubr.msk.bf16.mxu1 %vm7165_vm0, %v11186_v45  ;;  %vm2697_vm11 = vcmp.eq.f32.partialorder %v8015_v28, inf  ;;  %v2553_v31 = vsub.f32 %v2425_v11, %v2489_v57 }
  0xd5   : > { %v2834_v3 = vsel %vm2832_vm10, %v2833_v37, %v2831_v34  ;;  %v3125_v32 = vmul.f32 1.25, %v2827_v5  ;;  %6774 = vmatprep.subr.bf16.mxu1 %v11186_v45  ;;  %v2554_v63 = vsub.f32 %v2426_v14, %v2490_v56  ;;  %v1410_v26 = vmul.f32 %v7712_v36, %v7575_v21 }
  0xd6   : > { %v3126_v25 = vmul.f32 1.25, %v2834_v3  ;;  %vm2699_vm12 = vcmp.eq.f32.partialorder %v8015_v28, 0.0  ;;  %v2700_v6 = vand.u32 2147483648, %v8015_v28  ;;  %v8061_v53 = vmax.f32 %v2553_v31, 0.0 }
  0xd7   : > { %v3189_v47 = vsub.f32 1.0, %v3125_v32  ;;  %v8063_v61 = vmax.f32 %v2554_v63, 0.0  ;;  %v1907_v46 = vmul.f32 %v7748_v13, %v11188_v43  ;;  %v1908_v10 = vmul.f32 %v7746_v39, %v11188_v43  ;;  %v11192_v32 = vld [vmem:[#allocation19_spill] sm:$0xff] }
  0xd8   : > { %v3190_v4 = vsub.f32 1.0, %v3126_v25  ;;  %vm2704_vm14 = vcmp.eq.f32.partialorder %v8021_v62, inf  ;;  %vm2706_vm15 = vcmp.eq.f32.partialorder %v8021_v62, 0.0  ;;  %7055 = vrsqrt.f32 %v8061_v53 }
  0xd9   : > { %v7052_v21 = vpop.eup %7051  ;;  %v3253_v35 = vmax.f32 %v3189_v47, 0.0  ;;  %7057 = vrsqrt.f32 %v8063_v61  ;;  %v1473_v29 = vadd.f32 %v1409_v52, %v975_v0  ;;  %v1474_v40 = vadd.f32 %v1410_v26, %v976_v9  ;;  %v11191_v52 = vld [vmem:[#allocation17_spill] sm:$0xff] }
  0xda   : > { %v7054_v2 = vpop.eup %7053  ;;  %v3254_v27 = vmax.f32 %v3190_v4, 0.0  ;;  %v2696_v16 = vmul.f32 %v7052_v21, %v8015_v28  ;;  %v2707_v49 = vand.u32 2147483648, %v8021_v62  ;;  %v2405_v15 = vadd.f32 %v7768_v12, %v11189_v30 }
  0xdb   : > { %v2703_v20 = vmul.f32 %v7054_v2, %v8021_v62  ;;  %v1971_v23 = vadd.f32 %v1907_v46, %v1473_v29  ;;  %v1972_v11 = vadd.f32 %v1908_v10, %v1474_v40  ;;  %v2406_v41 = vadd.f32 %v7766_v51, %v11189_v30  ;;  %v11193_v30 = vld [vmem:[#allocation27_spill] sm:$0xff] }
  0xdc   : > { %v3305_v24 = vpack.c.bf16 %v3254_v27, %v3253_v35  ;;  %v2698_v55 = vsel %vm2697_vm11, %v8015_v28, %v2696_v16  ;;  %v999_v14 = vmul.f32 %v7670_v44, %v11190_v17  ;;  %v1000_v50 = vmul.f32 %v7714_v58, %v11190_v17  ;;  %v6982_v16 = vld [vmem:[%s7290_s15 + $0x20] sm:$0xff]  }
  0xdd   : > { %v2701_v37 = vsel %vm2699_vm12, %v2700_v6, %v2698_v55  ;;  %v2705_v57 = vsel %vm2704_vm14, %v8021_v62, %v2703_v20  ;;  %v2469_v0 = vmul.f32 2.0, %v1971_v23  ;;  %v2470_v1 = vmul.f32 2.0, %v1972_v11 }
  0xde   : > { %6825 = vmatmul.mubr.msk.bf16.vlgmr.msra.gmra.mrb[8].mxu0 %vm3395_vm13, %v3305_v24  ;;  %v2708_v56 = vsel %vm2706_vm15, %v2707_v49, %v2705_v57  ;;  %v3107_v9 = vmul.f32 1.25, %v2701_v37  ;;  %v1433_v5 = vmul.f32 %v7668_v8, %v11191_v52  ;;  %v1434_v34 = vmul.f32 %v7712_v36, %v11191_v52 }
  0xdf   : > { %6835 = vmatpush3.bf16.msra.mxu0 %v6981_v18  ;;  %6836 = vmatprep.mubr.msk.bf16.mxu0 %vm7165_vm0, %v11186_v45  ;;  %v3108_v28 = vmul.f32 1.25, %v2708_v56  ;;  %v2533_v31 = vsub.f32 %v2405_v15, %v2469_v0  ;;  %v2534_v3 = vsub.f32 %v2406_v41, %v2470_v1  ;;  %v1931_v63 = vmul.f32 %v7748_v13, %v11192_v32  ;;  %v11195_v1 = vld [vmem:[#allocation21_spill] sm:$0xff] }
  0xe0   : > { %v3171_v26 = vsub.f32 1.0, %v3107_v9  ;;  %vm2851_vm1 = vcmp.eq.f32.partialorder %v8061_v53, inf  ;;  %6846 = vmatprep.subr.bf16.mxu0 %v11186_v45  ;;  %v1497_v62 = vadd.f32 %v1433_v5, %v999_v14  ;;  %v1932_v25 = vmul.f32 %v7746_v39, %v11192_v32 }
  0xe1   : > { %v3172_v6 = vsub.f32 1.0, %v3108_v28  ;;  %v8108_v47 = vmax.f32 %v2533_v31, 0.0  ;;  %v8110_v43 = vmax.f32 %v2534_v3, 0.0  ;;  %v1498_v46 = vadd.f32 %v1434_v34, %v1000_v50  ;;  %v11196_v31 = vld [vmem:[#allocation28_spill] sm:$0xff] }
  0xe2   : > { %v7056_v10 = vpop.eup %7055  ;;  %v3235_v4 = vmax.f32 %v3171_v26, 0.0  ;;  %vm2853_vm2 = vcmp.eq.f32.partialorder %v8061_v53, 0.0  ;;  %v2854_v21 = vand.u32 2147483648, %v8061_v53  ;;  %v1995_v35 = vadd.f32 %v1931_v63, %v1497_v62 }
  0xe3   : > { %v7058_v29 = vpop.eup %7057  ;;  %v3236_v40 = vmax.f32 %v3172_v6, 0.0  ;;  %v2850_v2 = vmul.f32 %v7056_v10, %v8061_v53  ;;  %7059 = vrsqrt.f32 %v8108_v47  ;;  %v1996_v27 = vadd.f32 %v1932_v25, %v1498_v46  ;;  %v6983_v10 = vld [vmem:[%s7290_s15 + $0x80] sm:$0xff]  }
  0xe4   : > { %v2857_v49 = vmul.f32 %v7058_v29, %v8063_v61  ;;  %vm2858_vm3 = vcmp.eq.f32.partialorder %v8063_v61, inf  ;;  %7061 = vrsqrt.f32 %v8110_v43  ;;  %v2429_v15 = vadd.f32 %v7768_v12, %v11193_v30 }
  0xe5   : > { %v3296_v18 = vpack.c.bf16 %v3236_v40, %v3235_v4  ;;  %v2852_v20 = vsel %vm2851_vm1, %v8061_v53, %v2850_v2  ;;  %v2861_v23 = vand.u32 2147483648, %v8063_v61  ;;  %v2430_v11 = vadd.f32 %v7766_v51, %v11193_v30  ;;  %v11194_v53 = vld [vmem:[#allocation20_spill] sm:$0xff] }
  0xe6   : > { %v2855_v41 = vsel %vm2853_vm2, %v2854_v21, %v2852_v20  ;;  %v2859_v24 = vsel %vm2858_vm3, %v8063_v61, %v2857_v49  ;;  %vm2860_vm4 = vcmp.eq.f32.partialorder %v8063_v61, 0.0  ;;  %v2493_v55 = vmul.f32 2.0, %v1995_v35 }
  0xe7   : > { %6771 = vmatmul.mubr.msk.bf16.vlgmr.msra.gmra.mrb[12].mxu1 %vm3395_vm13, %v3296_v18  ;;  %v2862_v17 = vsel %vm2860_vm4, %v2861_v23, %v2859_v24  ;;  %v3129_v14 = vmul.f32 1.25, %v2855_v41  ;;  %vm2711_vm5 = vcmp.eq.f32.partialorder %v8108_v47, inf  ;;  %v2494_v50 = vmul.f32 2.0, %v1996_v27  ;;  %v11197_v27 = vld [vmem:[#allocation30_spill] sm:$0xff]  ;;  %v11198_v18 = vld [vmem:[#allocation23_spill] sm:$0xff]  ;;  %v11199_v41 = vld [vmem:[#allocation29_spill] sm:$0xff] }
  0xe8   : > { %6775 = vmatpush3.bf16.msra.mxu1 %v6982_v16  ;;  %v3130_v37 = vmul.f32 1.25, %v2862_v17  ;;  %6776 = vmatprep.mubr.msk.bf16.mxu1 %vm7165_vm0, %v11186_v45  ;;  %v2557_v57 = vsub.f32 %v2429_v15, %v2493_v55  ;;  %v977_v0 = vmul.f32 %v7670_v44, %v11194_v53  ;;  %v1411_v61 = vmul.f32 %v7668_v8, %v11195_v1 }
  0xe9   : > { %v3193_v56 = vsub.f32 1.0, %v3129_v14  ;;  %6780 = vmatprep.subr.bf16.mxu1 %v11186_v45  ;;  %v2558_v9 = vsub.f32 %v2430_v11, %v2494_v50  ;;  %v978_v52 = vmul.f32 %v7714_v58, %v11194_v53  ;;  %v1412_v5 = vmul.f32 %v7712_v36, %v11195_v1 }
  0xea   : > { %v3194_v34 = vsub.f32 1.0, %v3130_v37  ;;  %vm2713_vm6 = vcmp.eq.f32.partialorder %v8108_v47, 0.0  ;;  %v8146_v28 = vmax.f32 %v2557_v57, 0.0  ;;  %v1909_v3 = vmul.f32 %v7748_v13, %v11196_v31 }
  0xeb   : > { %v3257_v32 = vmax.f32 %v3193_v56, 0.0  ;;  %v2714_v63 = vand.u32 2147483648, %v8108_v47  ;;  %v8151_v26 = vmax.f32 %v2558_v9, 0.0  ;;  %v1910_v62 = vmul.f32 %v7746_v39, %v11196_v31  ;;  %v11200_v56 = vld [vmem:[#allocation33_spill] sm:$0xff] }
  0xec   : > { %v3258_v25 = vmax.f32 %v3194_v34, 0.0  ;;  %vm2718_vm7 = vcmp.eq.f32.partialorder %v8110_v43, inf  ;;  %7063 = vrsqrt.f32 %v8146_v28  ;;  %v1475_v6 = vadd.f32 %v1411_v61, %v977_v0 }
  0xed   : > { %v7060_v46 = vpop.eup %7059  ;;  %vm2720_vm8 = vcmp.eq.f32.partialorder %v8110_v43, 0.0  ;;  %v2721_v4 = vand.u32 2147483648, %v8110_v43  ;;  %7065 = vrsqrt.f32 %v8151_v26  ;;  %v1476_v21 = vadd.f32 %v1412_v5, %v978_v52 }
  0xee   : > { %v7062_v35 = vpop.eup %7061  ;;  %v3307_v29 = vpack.c.bf16 %v3258_v25, %v3257_v32  ;;  %v2710_v40 = vmul.f32 %v7060_v46, %v8108_v47  ;;  %v1973_v2 = vadd.f32 %v1909_v3, %v1475_v6  ;;  %v2407_v16 = vadd.f32 %v7768_v12, %v11197_v27 }
  0xef   : > { %v2717_v49 = vmul.f32 %v7062_v35, %v8110_v43  ;;  %v1974_v30 = vadd.f32 %v1910_v62, %v1476_v21  ;;  %v2408_v15 = vadd.f32 %v7766_v51, %v11197_v27  ;;  %v1003_v20 = vmul.f32 %v7670_v44, %v11198_v18  ;;  %v6984_v35 = vld [vmem:[%s7290_s15 + $0x28] sm:$0xff]  }
  0xf0   : > { %6837 = vmatmul.mubr.msk.bf16.vlgmr.msra.gmra.mrb[12].mxu0 %vm3395_vm13, %v3307_v29  ;;  %v2712_v23 = vsel %vm2711_vm5, %v8108_v47, %v2710_v40  ;;  %vm2879_vm9 = vcmp.eq.f32.partialorder %v8146_v28, inf  ;;  %v2471_v11 = vmul.f32 2.0, %v1973_v2  ;;  %v1437_v24 = vmul.f32 %v7668_v8, %v11199_v41 }
  0xf1   : > { %6847 = vmatpush3.bf16.msra.mxu0 %v6983_v10  ;;  %6848 = vmatprep.mubr.msk.bf16.mxu0 %vm7165_vm0, %v11186_v45  ;;  %v2715_v55 = vsel %vm2713_vm6, %v2714_v63, %v2712_v23  ;;  %v2719_v17 = vsel %vm2718_vm7, %v8110_v43, %v2717_v49  ;;  %v2472_v14 = vmul.f32 2.0, %v1974_v30  ;;  %v1004_v50 = vmul.f32 %v7714_v58, %v11198_v18 }
  0xf2   : > { %v2722_v37 = vsel %vm2720_vm8, %v2721_v4, %v2719_v17  ;;  %v3109_v57 = vmul.f32 1.25, %v2715_v55  ;;  %6858 = vmatprep.subr.bf16.mxu0 %v11186_v45  ;;  %v2535_v53 = vsub.f32 %v2407_v16, %v2471_v11  ;;  %v1438_v0 = vmul.f32 %v7712_v36, %v11199_v41  ;;  %v11201_v4 = vld [vmem:[#allocation34_spill] sm:$0xff] }
  0xf3   : > { %v3110_v47 = vmul.f32 1.25, %v2722_v37  ;;  %v2536_v1 = vsub.f32 %v2408_v15, %v2472_v14  ;;  %v1501_v61 = vadd.f32 %v1437_v24, %v1003_v20  ;;  %v1935_v9 = vmul.f32 %v7748_v13, %v11200_v56  ;;  %v11202_v20 = vld [vmem:[#allocation31_spill] sm:$0xff]  ;;  %v11204_v37 = vld [vmem:[#allocation36_spill] sm:$0xff] }
  0xf4   : > { %v3173_v52 = vsub.f32 1.0, %v3109_v57  ;;  %vm2881_vm10 = vcmp.eq.f32.partialorder %v8146_v28, 0.0  ;;  %v2882_v5 = vand.u32 2147483648, %v8146_v28  ;;  %v8194_v43 = vmax.f32 %v2535_v53, 0.0 }
  0xf5   : > { %v3174_v34 = vsub.f32 1.0, %v3110_v47  ;;  %v8196_v31 = vmax.f32 %v2536_v1, 0.0  ;;  %v1936_v3 = vmul.f32 %v7746_v39, %v11200_v56  ;;  %v1999_v32 = vadd.f32 %v1935_v9, %v1501_v61 }
  0xf6   : > { %v7064_v63 = vpop.eup %7063  ;;  %v3237_v62 = vmax.f32 %v3173_v52, 0.0  ;;  %vm2886_vm11 = vcmp.eq.f32.partialorder %v8151_v26, inf  ;;  %7067 = vrsqrt.f32 %v8194_v43  ;;  %v1502_v25 = vadd.f32 %v1438_v0, %v1004_v50 }
  0xf7   : > { %v7066_v6 = vpop.eup %7065  ;;  %v3238_v46 = vmax.f32 %v3174_v34, 0.0  ;;  %v2878_v10 = vmul.f32 %v7064_v63, %v8146_v28  ;;  %7069 = vrsqrt.f32 %v8196_v31  ;;  %v2433_v21 = vadd.f32 %v7768_v12, %v11201_v4 }
  0xf8   : > { %v2885_v29 = vmul.f32 %v7066_v6, %v8151_v26  ;;  %vm2888_vm12 = vcmp.eq.f32.partialorder %v8151_v26, 0.0  ;;  %v2889_v40 = vand.u32 2147483648, %v8151_v26  ;;  %v2434_v2 = vadd.f32 %v7766_v51, %v11201_v4  ;;  %v11205_v6 = vld [vmem:[#allocation41_spill] sm:$0xff] }
  0xf9   : > { %v3297_v27 = vpack.c.bf16 %v3238_v46, %v3237_v62  ;;  %v2880_v16 = vsel %vm2879_vm9, %v8146_v28, %v2878_v10  ;;  %v2000_v49 = vadd.f32 %v1936_v3, %v1502_v25  ;;  %v2497_v30 = vmul.f32 2.0, %v1999_v32  ;;  %v11203_v28 = vld [vmem:[#allocation35_spill] sm:$0xff]  ;;  %v6985_v62 = vld [vmem:[%s7290_s15 + $0x90] sm:$0xff]  }
  0xfa   : > { %v2883_v15 = vsel %vm2881_vm10, %v2882_v5, %v2880_v16  ;;  %v2887_v18 = vsel %vm2886_vm11, %v8151_v26, %v2885_v29  ;;  %v979_v23 = vmul.f32 %v7670_v44, %v11202_v20  ;;  %v980_v11 = vmul.f32 %v7714_v58, %v11202_v20 }
  0xfb   : > { %6777 = vmatmul.mubr.msk.bf16.vlgmr.msra.gmra.mrb[16].mxu1 %vm3395_vm13, %v3297_v27  ;;  %v2890_v41 = vsel %vm2888_vm12, %v2889_v40, %v2887_v18  ;;  %v3133_v24 = vmul.f32 1.25, %v2883_v15  ;;  %v2498_v55 = vmul.f32 2.0, %v2000_v49  ;;  %v2561_v17 = vsub.f32 %v2433_v21, %v2497_v30  ;;  %v11206_v30 = vld [vmem:[#allocation37_spill] sm:$0xff] }
  0xfc   : > { %6781 = vmatpush3.bf16.msra.mxu1 %v6984_v35  ;;  %v3134_v14 = vmul.f32 1.25, %v2890_v41  ;;  %6782 = vmatprep.mubr.msk.bf16.mxu1 %vm7165_vm0, %v11186_v45  ;;  %v1413_v26 = vmul.f32 %v7668_v8, %v11203_v28  ;;  %v1414_v50 = vmul.f32 %v7712_v36, %v11203_v28  ;;  %v1911_v57 = vmul.f32 %v7748_v13, %v11204_v37 }
  0xfd   : > { %v3197_v53 = vsub.f32 1.0, %v3133_v24  ;;  %6786 = vmatprep.subr.bf16.mxu1 %v11186_v45  ;;  %v2562_v0 = vsub.f32 %v2434_v2, %v2498_v55  ;;  %v8234_v47 = vmax.f32 %v2561_v17, 0.0  ;;  %v8240_v1 = vrot.slane %v745_v19, %v7362_v38 }
  0xfe   : > { %v3198_v61 = vsub.f32 1.0, %v3134_v14  ;;  %vm2725_vm14 = vcmp.eq.f32.partialorder %v8194_v43, inf  ;;  %v1477_v56 = vadd.f32 %v1413_v26, %v979_v23  ;;  %v1912_v9 = vmul.f32 %v7746_v39, %v11204_v37 }
  0xff   : > { %v3261_v52 = vmax.f32 %v3197_v53, 0.0  ;;  %vm2727_vm15 = vcmp.eq.f32.partialorder %v8194_v43, 0.0  ;;  %v8246_v5 = vmax.f32 %v2562_v0, 0.0  ;;  %7071 = vrsqrt.f32 %v8234_v47 }
 0x100   : > { %v7068_v34 = vpop.eup %7067  ;;  %v3262_v3 = vmax.f32 %v3198_v61, 0.0  ;;  %v2728_v7 = vand.u32 2147483648, %v8194_v43  ;;  %v1478_v19 = vadd.f32 %v1414_v50, %v980_v11  ;;  %v1975_v32 = vadd.f32 %v1911_v57, %v1477_v56  ;;  %v11207_v11 = vld [vmem:[#allocation38_spill] sm:$0xff] }
 0x101   : > { %v7070_v63 = vpop.eup %7069  ;;  %v2724_v25 = vmul.f32 %v7068_v34, %v8194_v43  ;;  %vm2732_vm1 = vcmp.eq.f32.partialorder %v8196_v31, inf  ;;  %7073 = vrsqrt.f32 %v8246_v5  ;;  %v2409_v46 = vadd.f32 %v7768_v12, %v11205_v6 }
 0x102   : > { %v3309_v10 = vpack.c.bf16 %v3262_v3, %v3261_v52  ;;  %v2731_v4 = vmul.f32 %v7070_v63, %v8196_v31  ;;  %vm2734_vm2 = vcmp.eq.f32.partialorder %v8196_v31, 0.0  ;;  %v1976_v21 = vadd.f32 %v1912_v9, %v1478_v19  ;;  %v6986_v3 = vld [vmem:[%s7290_s15 + $0x30] sm:$0xff]  }
 0x103   : > { %v2726_v35 = vsel %vm2725_vm14, %v8194_v43, %v2724_v25  ;;  %v2735_v29 = vand.u32 2147483648, %v8196_v31  ;;  %v2410_v40 = vadd.f32 %v7766_v51, %v11205_v6  ;;  %v2473_v2 = vmul.f32 2.0, %v1975_v32 }
 0x104   : > { %6849 = vmatmul.mubr.msk.bf16.vlgmr.msra.gmra.mrb[16].mxu0 %vm3395_vm13, %v3309_v10  ;;  %v2729_v27 = vsel %vm2727_vm15, %v2728_v7, %v2726_v35  ;;  %v2733_v16 = vsel %vm2732_vm1, %v8196_v31, %v2731_v4  ;;  %v2474_v49 = vmul.f32 2.0, %v1976_v21  ;;  %v1007_v15 = vmul.f32 %v7670_v44, %v11206_v30 }
 0x105   : > { %6859 = vmatpush3.bf16.msra.mxu0 %v6985_v62  ;;  %6860 = vmatprep.mubr.msk.bf16.mxu0 %vm7165_vm0, %v11186_v45  ;;  %v2736_v18 = vsel %vm2734_vm2, %v2735_v29, %v2733_v16  ;;  %v3111_v20 = vmul.f32 1.25, %v2729_v27  ;;  %v2537_v23 = vsub.f32 %v2409_v46, %v2473_v2  ;;  %v1441_v41 = vmul.f32 %v7668_v8, %v11207_v11 }
 0x106   : > { %v3112_v24 = vmul.f32 1.25, %v2736_v18  ;;  %6870 = vmatprep.subr.bf16.mxu0 %v11186_v45  ;;  %v2538_v43 = vsub.f32 %v2410_v40, %v2474_v49  ;;  %v1008_v31 = vmul.f32 %v7714_v58, %v11206_v30  ;;  %v1442_v55 = vmul.f32 %v7712_v36, %v11207_v11  ;;  %v11209_v18 = vld [vmem:[#allocation22_spill] sm:$0xff] }
 0x107   : > { %v3175_v17 = vsub.f32 1.0, %v3111_v20  ;;  %vm2907_vm3 = vcmp.eq.f32.partialorder %v8234_v47, inf  ;;  %v8280_v14 = vmax.f32 %v2537_v23, 0.0  ;;  %v1939_v28 = vmul.f32 %v7748_v13, %v7798_v33 }
 0x108   : > { %v3176_v26 = vsub.f32 1.0, %v3112_v24  ;;  %vm2909_vm4 = vcmp.eq.f32.partialorder %v8234_v47, 0.0  ;;  %v8285_v50 = vmax.f32 %v2538_v43, 0.0  ;;  %v1940_v37 = vmul.f32 %v7746_v39, %v7798_v33  ;;  %v11210_v24 = vld [vmem:[#allocation24_spill] sm:$0xff] }
 0x109   : > { %v7072_v57 = vpop.eup %7071  ;;  %v3239_v53 = vmax.f32 %v3175_v17, 0.0  ;;  %v2910_v0 = vand.u32 2147483648, %v8234_v47  ;;  %7075 = vrsqrt.f32 %v8280_v14  ;;  %v1505_v61 = vadd.f32 %v1441_v41, %v1007_v15 }
 0x10a   : > { %v3240_v56 = vmax.f32 %v3176_v26, 0.0  ;;  %v2906_v9 = vmul.f32 %v7072_v57, %v8234_v47  ;;  %7077 = vrsqrt.f32 %v8285_v50  ;;  %v1506_v52 = vadd.f32 %v1442_v55, %v1008_v31 }
 0x10b   : > { %v7074_v34 = vpop.eup %7073  ;;  %vm2914_vm5 = vcmp.eq.f32.partialorder %v8246_v5, inf  ;;  %vm2916_vm6 = vcmp.eq.f32.partialorder %v8246_v5, 0.0  ;;  %v2003_v33 = vadd.f32 %v1939_v28, %v1505_v61  ;;  %v2437_v7 = vadd.f32 %v7768_v12, %v8013_v48 }
 0x10c   : > { %v3298_v19 = vpack.c.bf16 %v3240_v56, %v3239_v53  ;;  %v2908_v32 = vsel %vm2907_vm3, %v8234_v47, %v2906_v9  ;;  %v2913_v63 = vmul.f32 %v7074_v34, %v8246_v5  ;;  %v2004_v62 = vadd.f32 %v1940_v37, %v1506_v52  ;;  %v6987_v37 = vld [vmem:[%s7290_s15 + $0xa0] sm:$0xff]  }
 0x10d   : > { %v2911_v25 = vsel %vm2909_vm4, %v2910_v0, %v2908_v32  ;;  %v2917_v6 = vand.u32 2147483648, %v8246_v5  ;;  %v2438_v46 = vadd.f32 %v7766_v51, %v8013_v48  ;;  %v2501_v10 = vmul.f32 2.0, %v2003_v33  ;;  %v11208_v48 = vld [vmem:[#allocation40_spill] sm:$0xff] }
 0x10e   : > { %6783 = vmatmul.mubr.msk.bf16.vlgmr.msra.gmra.mrb[20].mxu1 %vm3395_vm13, %v3298_v19  ;;  %v2915_v4 = vsel %vm2914_vm5, %v8246_v5, %v2913_v63  ;;  %v3137_v21 = vmul.f32 1.25, %v2911_v25  ;;  %vm2739_vm7 = vcmp.eq.f32.partialorder %v8280_v14, inf  ;;  %v2502_v35 = vmul.f32 2.0, %v2004_v62 }
 0x10f   : > { %6787 = vmatpush3.bf16.msra.mxu1 %v6986_v3  ;;  %v2918_v29 = vsel %vm2916_vm6, %v2917_v6, %v2915_v4  ;;  %6788 = vmatprep.mubr.msk.bf16.mxu1 %vm7165_vm0, %v11186_v45  ;;  %vm2741_vm8 = vcmp.eq.f32.partialorder %v8280_v14, 0.0  ;;  %v2565_v47 = vsub.f32 %v2437_v7, %v2501_v10  ;;  %v981_v40 = vmul.f32 %v7670_v44, %v11208_v48 }
 0x110   : > { %v3138_v2 = vmul.f32 1.25, %v2918_v29  ;;  %v3201_v27 = vsub.f32 1.0, %v3137_v21  ;;  %6792 = vmatprep.subr.bf16.mxu1 %v11186_v45  ;;  %v2566_v16 = vsub.f32 %v2438_v46, %v2502_v35  ;;  %v982_v49 = vmul.f32 %v7714_v58, %v11208_v48 }
 0x111   : > { %v8320_v30 = vmax.f32 %v2565_v47, 0.0  ;;  %v1415_v5 = vmul.f32 %v7668_v8, %v7941_v60  ;;  %v1416_v15 = vmul.f32 %v7712_v36, %v7941_v60  ;;  %v1581_v20 = vcombine.high %v11209_v18, %v11209_v18 }
 0x112   : > { %v3202_v23 = vsub.f32 1.0, %v3138_v2  ;;  %v3265_v11 = vmax.f32 %v3201_v27, 0.0  ;;  %v8328_v41 = vmax.f32 %v2566_v16, 0.0  ;;  %v2079_v43 = vcombine.high %v11210_v24, %v11210_v24 }
 0x113   : > { %v7076_v31 = vpop.eup %7075  ;;  %v2742_v55 = vand.u32 2147483648, %v8280_v14  ;;  %vm2746_vm9 = vcmp.eq.f32.partialorder %v8285_v50, inf  ;;  %vm2748_vm10 = vcmp.eq.f32.partialorder %v8285_v50, 0.0  ;;  %7079 = vrsqrt.f32 %v8320_v30 }
 0x114   : > { %v7078_v60 = vpop.eup %7077  ;;  %v3266_v17 = vmax.f32 %v3202_v23, 0.0  ;;  %v2738_v28 = vmul.f32 %v7076_v31, %v8280_v14  ;;  %v2749_v26 = vand.u32 2147483648, %v8285_v50  ;;  %7081 = vrsqrt.f32 %v8328_v41  ;;  %v6988_v23 = vld [vmem:[%s7290_s15 + $0x38] sm:$0xff]  }
 0x115   : > { %v2745_v57 = vmul.f32 %v7078_v60, %v8285_v50  ;;  %v1479_v53 = vadd.f32 %v1415_v5, %v981_v40  ;;  %v1480_v0 = vadd.f32 %v1416_v15, %v982_v49  ;;  %v1760_v61 = vrot.slane %v1581_v20, %v7362_v38 }
 0x116   : > { %v3311_v56 = vpack.c.bf16 %v3266_v17, %v3265_v11  ;;  %v2740_v9 = vsel %vm2739_vm7, %v8280_v14, %v2738_v28  ;;  %v2938_v52 = vand.u32 2147483648, %v8320_v30  ;;  %v2258_v34 = vrot.slane %v2079_v43, %v7362_v38 }
 0x117   : > { %v2743_v3 = vsel %vm2741_vm8, %v2742_v55, %v2740_v9  ;;  %v2747_v33 = vsel %vm2746_vm9, %v8285_v50, %v2745_v57  ;;  %vm2935_vm11 = vcmp.eq.f32.partialorder %v8320_v30, inf  ;;  %v1913_v7 = vmul.f32 %v7748_v13, %v1760_v61  ;;  %v11211_v50 = vld [vmem:[#allocation32_spill] sm:$0xff] }
 0x118   : > { %v1914_v19 = vmul.f32 %v7746_v39, %v1760_v61  ;;  %6861 = vmatmul.mubr.msk.bf16.vlgmr.msra.gmra.mrb[20].mxu0 %vm3395_vm13, %v3311_v56  ;;  %v2750_v32 = vsel %vm2748_vm10, %v2749_v26, %v2747_v33  ;;  %v3113_v63 = vmul.f32 1.25, %v2743_v3  ;;  %vm2937_vm12 = vcmp.eq.f32.partialorder %v8320_v30, 0.0 }
 0x119   : > { %vm2942_vm14 = vcmp.eq.f32.partialorder %v8328_v41, inf  ;;  %v2411_v14 = vadd.f32 %v7768_v12, %v2258_v34  ;;  %6871 = vmatpush3.bf16.msra.mxu0 %v6987_v37  ;;  %6872 = vmatprep.mubr.msk.bf16.mxu0 %vm7165_vm0, %v11186_v45  ;;  %v3114_v62 = vmul.f32 1.25, %v2750_v32  ;;  %v1977_v25 = vadd.f32 %v1913_v7, %v1479_v53  ;;  %v11215_v7 = vld [vmem:[#allocation5_spill] sm:$0xff] }
 0x11a   : > { %v1978_v6 = vadd.f32 %v1914_v19, %v1480_v0  ;;  %v2412_v46 = vadd.f32 %v7766_v51, %v2258_v34  ;;  %v3177_v10 = vsub.f32 1.0, %v3113_v63  ;;  %vm2944_vm15 = vcmp.eq.f32.partialorder %v8328_v41, 0.0  ;;  %6882 = vmatprep.subr.bf16.mxu0 %v11186_v45 }
 0x11b   : > { %v1179_v4 = vcombine.high %v11211_v50, %v11211_v50  ;;  %v1677_v21 = vcombine.high %v7725_v42, %v7725_v42  ;;  %v3178_v35 = vsub.f32 1.0, %v3114_v62  ;;  %v2945_v29 = vand.u32 2147483648, %v8328_v41 }
 0x11c   : > { %v2475_v47 = vmul.f32 2.0, %v1977_v25  ;;  %v2476_v48 = vmul.f32 2.0, %v1978_v6  ;;  %v3241_v40 = vmax.f32 %v3177_v10, 0.0  ;;  %v1011_v2 = vmul.f32 %v7670_v44, %v8240_v1  ;;  %v11216_v25 = vld [vmem:[#allocation6_spill] sm:$0xff] }
 0x11d   : > { %v1322_v27 = vrot.slane %v1179_v4, %v7362_v38  ;;  %v1820_v16 = vrot.slane %v1677_v21, %v7362_v38  ;;  %v7080_v49 = vpop.eup %7079  ;;  %v3242_v5 = vmax.f32 %v3178_v35, 0.0  ;;  %v2175_v42 = vcombine.high %v7808_v59, %v7808_v59 }
 0x11e   : > { %v2539_v15 = vsub.f32 %v2411_v14, %v2475_v47  ;;  %v2540_v18 = vsub.f32 %v2412_v46, %v2476_v48  ;;  %v7082_v20 = vpop.eup %7081  ;;  %v2934_v11 = vmul.f32 %v7080_v49, %v8320_v30  ;;  %v1012_v24 = vmul.f32 %v7714_v58, %v8240_v1  ;;  %v11212_v1 = vld [vmem:[#allocation3_spill] sm:$0xff] }
 0x11f   : > { %v1445_v43 = vmul.f32 %v7668_v8, %v1322_v27  ;;  %v1446_v31 = vmul.f32 %v7712_v36, %v1322_v27  ;;  %v3299_v55 = vpack.c.bf16 %v3242_v5, %v3241_v40  ;;  %v2941_v60 = vmul.f32 %v7082_v20, %v8328_v41  ;;  %v6992_v40 = vld [vmem:[%s7290_s15 + $0xb0] sm:$0xff]   ;;  %v8442_v20 = vld [vmem:[%s7303_s20 + $0x18] sm:$0xff] }
 0x120   : > { %v8384_v17 = vmax.f32 %v2539_v15, 0.0  ;;  %v8386_v28 = vmax.f32 %v2540_v18, 0.0  ;;  %v2936_v59 = vsel %vm2935_vm11, %v8320_v30, %v2934_v11  ;;  %v1943_v26 = vmul.f32 %v7748_v13, %v1820_v16  ;;  %v11214_v30 = vld [vmem:[#allocation4_spill] sm:$0xff] }
 0x121   : > { %v1944_v37 = vmul.f32 %v7746_v39, %v1820_v16  ;;  %v11213_v57 = vcombine.high %v11212_v1, %v11212_v1  ;;  %6789 = vmatmul.mubr.msk.bf16.vlgmr.msra.gmra.mrb[24].mxu1 %vm3395_vm13, %v3299_v55  ;;  %v2939_v0 = vsel %vm2937_vm12, %v2938_v52, %v2936_v59  ;;  %v2943_v61 = vsel %vm2942_vm14, %v8328_v41, %v2941_v60 }
 0x122   : > { %7083 = vrsqrt.f32 %v8384_v17  ;;  %v2318_v56 = vrot.slane %v2175_v42, %v7362_v38  ;;  %6793 = vmatpush3.bf16.msra.mxu1 %v6988_v23  ;;  %v2946_v9 = vsel %vm2944_vm15, %v2945_v29, %v2943_v61  ;;  %v3141_v34 = vmul.f32 1.25, %v2939_v0  ;;  %6794 = vmatprep.mubr.msk.bf16.mxu1 %vm7165_vm0, %v11186_v45  ;;  %v8445_v23 = vld [vmem:[%s7309_s23 + $0x18] sm:$0xff] }
 0x123   : > { %v8397_v53 = vrot.slane %v11213_v57, %v7330_v22  ;;  %v1509_v3 = vadd.f32 %v1445_v43, %v1011_v2  ;;  %v1510_v33 = vadd.f32 %v1446_v31, %v1012_v24  ;;  %v1099_v52 = vcombine.high %v11214_v30, %v11214_v30  ;;  %6804 = vmatprep.subr.bf16.mxu1 %v11186_v45  ;;  %v8468_v0 = vld [vmem:[%s7315_s28 + $0x18] sm:$0xff] }
 0x124   : > { %v1597_v19 = vcombine.high %v11215_v7, %v11215_v7  ;;  %v3142_v32 = vmul.f32 1.25, %v2946_v9  ;;  %7085 = vrsqrt.f32 %v8386_v28  ;;  %v3205_v63 = vsub.f32 1.0, %v3141_v34 }
 0x125   : > { %v2007_v41 = vadd.f32 %v1943_v26, %v1509_v3  ;;  %v2008_v14 = vadd.f32 %v1944_v37, %v1510_v33  ;;  %v836_v62 = vrot.slane %v8397_v53, %v7362_v38  ;;  %v2095_v6 = vcombine.high %v11216_v25, %v11216_v25 }
 0x126   : > { %v3206_v46 = vsub.f32 1.0, %v3142_v32  ;;  %v2441_v10 = vadd.f32 %v7768_v12, %v2318_v56  ;;  %v2442_v50 = vadd.f32 %v7766_v51, %v2318_v56  ;;  %v3269_v4 = vmax.f32 %v3205_v63, 0.0 }
 0x127   : > { %vm2753_vm1 = vcmp.eq.f32.partialorder %v8384_v17, inf  ;;  %v2505_v21 = vmul.f32 2.0, %v2007_v41  ;;  %v2506_v35 = vmul.f32 2.0, %v2008_v14  ;;  %vm2755_vm2 = vcmp.eq.f32.partialorder %v8384_v17, 0.0 }
 0x128   : > { %v3270_v29 = vmax.f32 %v3206_v46, 0.0  ;;  %v8426_v47 = vrot.slane %v1099_v52, %v7330_v22  ;;  %v8429_v48 = vrot.slane %v1597_v19, %v7330_v22  ;;  %v2756_v2 = vand.u32 2147483648, %v8384_v17 }
 0x129   : > { %v2569_v27 = vsub.f32 %v2441_v10, %v2505_v21  ;;  %v2570_v16 = vsub.f32 %v2442_v50, %v2506_v35  ;;  %v985_v49 = vmul.f32 %v7670_v44, %v836_v62  ;;  %v8439_v42 = vrot.slane %v2095_v6, %v7330_v22 }
 0x12a   : > { %v3313_v5 = vpack.c.bf16 %v3270_v29, %v3269_v4  ;;  %v1270_v15 = vrot.slane %v8426_v47, %v7362_v38  ;;  %v1768_v18 = vrot.slane %v8429_v48, %v7362_v38  ;;  %v572_v43 = vmul.f32 %v8442_v20, %v8442_v20 }
 0x12b   : > { %v8447_v11 = vmax.f32 %v2569_v27, 0.0  ;;  %v8449_v24 = vmax.f32 %v2570_v16, 0.0  ;;  %v576_v31 = vmul.f32 %v8445_v23, %v8445_v23  ;;  %vm2760_vm3 = vcmp.eq.f32.partialorder %v8386_v28, inf }
 0x12c   : > { %v7084_v55 = vpop.eup %7083  ;;  %6873 = vmatmul.mubr.msk.bf16.vlgmr.msra.gmra.mrb[24].mxu0 %vm3395_vm13, %v3313_v5  ;;  %v986_v60 = vmul.f32 %v7714_v58, %v836_v62  ;;  %v1419_v59 = vmul.f32 %v7668_v8, %v1270_v15  ;;  %v1420_v26 = vmul.f32 %v7712_v36, %v1270_v15  ;;  %v1917_v1 = vmul.f32 %v7748_v13, %v1768_v18 }
 0x12d   : > { %6883 = vmatpush3.bf16.msra.mxu0 %v6992_v40  ;;  %6884 = vmatprep.mubr.msk.bf16.mxu0 %vm7165_vm0, %v11186_v45  ;;  %v2752_v37 = vmul.f32 %v7084_v55, %v8384_v17  ;;  %7087 = vrsqrt.f32 %v8447_v11  ;;  %v2266_v57 = vrot.slane %v8439_v42, %v7362_v38  ;;  %vm2762_vm4 = vcmp.eq.f32.partialorder %v8386_v28, 0.0 }
 0x12e   : > { %v7086_v61 = vpop.eup %7085  ;;  %v2763_v56 = vand.u32 2147483648, %v8386_v28  ;;  %7089 = vrsqrt.f32 %v8449_v24  ;;  %6894 = vmatprep.subr.bf16.mxu0 %v11186_v45  ;;  %v1918_v9 = vmul.f32 %v7746_v39, %v1768_v18  ;;  %v1483_v33 = vadd.f32 %v1419_v59, %v985_v49 }
 0x12f   : > { %v2754_v34 = vsel %vm2753_vm1, %v8384_v17, %v2752_v37  ;;  %v2759_v3 = vmul.f32 %v7086_v61, %v8386_v28  ;;  %v580_v30 = vadd.f32 %v576_v31, %v572_v43  ;;  %v2966_v7 = vand.u32 2147483648, %v8447_v11 }
 0x130   : > { %v2757_v52 = vsel %vm2755_vm2, %v2756_v2, %v2754_v34  ;;  %v1484_v19 = vadd.f32 %v1420_v26, %v986_v60  ;;  %v584_v32 = vmul.f32 %v8468_v0, %v8468_v0  ;;  %vm2963_vm5 = vcmp.eq.f32.partialorder %v8447_v11, inf  ;;  %v6993_v26 = vld [vmem:[%s7290_s15 + $0x48] sm:$0xff]  }
 0x131   : > { %v2761_v63 = vsel %vm2760_vm3, %v8386_v28, %v2759_v3  ;;  %v3115_v41 = vmul.f32 1.25, %v2757_v52  ;;  %v1981_v14 = vadd.f32 %v1917_v1, %v1483_v33  ;;  %v2415_v62 = vadd.f32 %v7768_v12, %v2266_v57 }
 0x132   : > { %v2764_v17 = vsel %vm2762_vm4, %v2763_v56, %v2761_v63  ;;  %vm2965_vm6 = vcmp.eq.f32.partialorder %v8447_v11, 0.0  ;;  %v1982_v25 = vadd.f32 %v1918_v9, %v1484_v19  ;;  %v2416_v6 = vadd.f32 %v7766_v51, %v2266_v57 }
 0x133   : > { %v8495_v46 = vrot.slane %v8442_v20, %v7330_v22  ;;  %v3116_v10 = vmul.f32 1.25, %v2764_v17  ;;  %v3179_v50 = vsub.f32 1.0, %v3115_v41  ;;  %vm2970_vm7 = vcmp.eq.f32.partialorder %v8449_v24, inf }
 0x134   : > { %v2479_v4 = vmul.f32 2.0, %v1981_v14  ;;  %vm2972_vm8 = vcmp.eq.f32.partialorder %v8449_v24, 0.0  ;;  %v2480_v21 = vmul.f32 2.0, %v1982_v25  ;;  %v8505_v35 = vrot.slane %v8445_v23, %v7330_v22 }
 0x135   : > { %v8501_v28 = vrot.slane %v8495_v46, %v7330_v22  ;;  %v3180_v29 = vsub.f32 1.0, %v3116_v10  ;;  %v3243_v40 = vmax.f32 %v3179_v50, 0.0  ;;  %v8509_v27 = vrot.slane %v8468_v0, %v7330_v22 }
 0x136   : > { %v2543_v2 = vsub.f32 %v2415_v62, %v2479_v4  ;;  %v2544_v16 = vsub.f32 %v2416_v6, %v2480_v21  ;;  %v8511_v49 = vadd.f32 %v584_v32, %v580_v30  ;;  %v8517_v15 = vrot.slane %v8505_v35, %v7330_v22 }
 0x137   : > { %v896_v5 = vrot.slane %v8501_v28, %v7362_v38  ;;  %v7088_v18 = vpop.eup %7087  ;;  %v3244_v43 = vmax.f32 %v3180_v29, 0.0  ;;  %v2973_v31 = vand.u32 2147483648, %v8449_v24  ;;  %v8524_v60 = vrot.slane %v8509_v27, %v7330_v22 }
 0x138   : > { %v8520_v55 = vmax.f32 %v2543_v2, 0.0  ;;  %v7090_v59 = vpop.eup %7089  ;;  %v2962_v37 = vmul.f32 %v7088_v18, %v8447_v11  ;;  %v8528_v1 = vmax.f32 %v2544_v16, 0.0  ;;  %v1330_v57 = vrot.slane %v8517_v15, %v7362_v38 }
 0x139   : > { %v8534_v61 = vrot.slane %v8511_v49, %v7330_v22  ;;  %v3300_v56 = vpack.c.bf16 %v3244_v43, %v3243_v40  ;;  %v2969_v9 = vmul.f32 %v7090_v59, %v8449_v24  ;;  %v1828_v34 = vrot.slane %v8524_v60, %v7362_v38 }
 0x13a   : > { %7091 = vrsqrt.f32 %v8520_v55  ;;  %v2964_v3 = vsel %vm2963_vm5, %v8447_v11, %v2962_v37  ;;  %v1015_v33 = vmul.f32 %v7670_v44, %v896_v5  ;;  %v697_v30 = vcombine.high %v8397_v53, %v8397_v53  ;;  %v6994_v37 = vld [vmem:[%s7290_s15 + $0xc0] sm:$0xff]  }
 0x13b   : > { %7093 = vrsqrt.f32 %v8528_v1  ;;  %6795 = vmatmul.mubr.msk.bf16.vlgmr.msra.gmra.mrb[28].mxu1 %vm3395_vm13, %v3300_v56  ;;  %v2967_v52 = vsel %vm2965_vm6, %v2966_v7, %v2964_v3  ;;  %v2971_v19 = vsel %vm2970_vm7, %v8449_v24, %v2969_v9  ;;  %v1016_v32 = vmul.f32 %v7714_v58, %v896_v5 }
 0x13c   : > { %v8556_v63 = vrot.slane %v8534_v61, %v7330_v22  ;;  %6805 = vmatpush3.bf16.msra.mxu1 %v6993_v26  ;;  %v2974_v41 = vsel %vm2972_vm8, %v2973_v31, %v2971_v19  ;;  %v3145_v53 = vmul.f32 1.25, %v2967_v52  ;;  %6806 = vmatprep.mubr.msk.bf16.mxu1 %vm7165_vm0, %v11186_v45  ;;  %v2784_v11 = vand.u32 2147483648, %v8520_v55 }
 0x13d   : > { %v1449_v7 = vmul.f32 %v7668_v8, %v1330_v57  ;;  %v3146_v14 = vmul.f32 1.25, %v2974_v41  ;;  %6816 = vmatprep.subr.bf16.mxu1 %v11186_v45  ;;  %vm2781_vm9 = vcmp.eq.f32.partialorder %v8520_v55, inf  ;;  %v1450_v62 = vmul.f32 %v7712_v36, %v1330_v57 }
 0x13e   : > { %v1947_v17 = vmul.f32 %v7748_v13, %v1828_v34  ;;  %v1948_v24 = vmul.f32 %v7746_v39, %v1828_v34  ;;  %v3209_v25 = vsub.f32 1.0, %v3145_v53  ;;  %vm2783_vm10 = vcmp.eq.f32.partialorder %v8520_v55, 0.0 }
 0x13f   : > { %vm2788_vm11 = vcmp.eq.f32.partialorder %v8528_v1, inf  ;;  %v1513_v6 = vadd.f32 %v1449_v7, %v1015_v33  ;;  %v2326_v10 = vrot.slane %v8556_v63, %v7362_v38  ;;  %v844_v50 = vrot.slane %v697_v30, %v7362_v38 }
 0x140   : > { %v3210_v4 = vsub.f32 1.0, %v3146_v14  ;;  %vm2790_vm12 = vcmp.eq.f32.partialorder %v8528_v1, 0.0  ;;  %v1514_v21 = vadd.f32 %v1450_v62, %v1016_v32  ;;  %v1131_v29 = vcombine.high %v8426_v47, %v8426_v47 }
 0x141   : > { %v1629_v40 = vcombine.high %v8429_v48, %v8429_v48  ;;  %v3273_v2 = vmax.f32 %v3209_v25, 0.0  ;;  %v2791_v16 = vand.u32 2147483648, %v8528_v1  ;;  %v2011_v5 = vadd.f32 %v1947_v17, %v1513_v6 }
 0x142   : > { %v2445_v18 = vadd.f32 %v7768_v12, %v2326_v10  ;;  %v3274_v43 = vmax.f32 %v3210_v4, 0.0  ;;  %v2012_v31 = vadd.f32 %v1948_v24, %v1514_v21  ;;  %v2446_v59 = vadd.f32 %v7766_v51, %v2326_v10 }
 0x143   : > { %v989_v26 = vmul.f32 %v7670_v44, %v844_v50  ;;  %v2509_v57 = vmul.f32 2.0, %v2011_v5  ;;  %v990_v56 = vmul.f32 %v7714_v58, %v844_v50  ;;  %v1278_v47 = vrot.slane %v1131_v29, %v7362_v38 }
 0x144   : > { %v1776_v48 = vrot.slane %v1629_v40, %v7362_v38  ;;  %v7092_v9 = vpop.eup %7091  ;;  %v3315_v34 = vpack.c.bf16 %v3274_v43, %v3273_v2  ;;  %v2510_v3 = vmul.f32 2.0, %v2012_v31  ;;  %v2127_v33 = vcombine.high %v8439_v42, %v8439_v42 }
 0x145   : > { %v793_v30 = vcombine.high %v8501_v28, %v8501_v28  ;;  %v7094_v52 = vpop.eup %7093  ;;  %v2780_v19 = vmul.f32 %v7092_v9, %v8520_v55  ;;  %v2573_v32 = vsub.f32 %v2445_v18, %v2509_v57  ;;  %v1423_v41 = vmul.f32 %v7668_v8, %v1278_v47 }
 0x146   : > { %v1424_v53 = vmul.f32 %v7712_v36, %v1278_v47  ;;  %6885 = vmatmul.mubr.msk.bf16.vlgmr.msra.gmra.mrb[28].mxu0 %vm3395_vm13, %v3315_v34  ;;  %v2787_v7 = vmul.f32 %v7094_v52, %v8528_v1  ;;  %v2574_v14 = vsub.f32 %v2446_v59, %v2510_v3  ;;  %v1921_v62 = vmul.f32 %v7748_v13, %v1776_v48 }
 0x147   : > { %v1922_v42 = vmul.f32 %v7746_v39, %v1776_v48  ;;  %6895 = vmatpush3.bf16.msra.mxu0 %v6994_v37  ;;  %6896 = vmatprep.mubr.msk.bf16.mxu0 %vm7165_vm0, %v11186_v45  ;;  %v2782_v28 = vsel %vm2781_vm9, %v8520_v55, %v2780_v19  ;;  %v8603_v17 = vmax.f32 %v2573_v32, 0.0  ;;  %v1487_v24 = vadd.f32 %v1423_v41, %v989_v26 }
 0x148   : > { %v1488_v25 = vadd.f32 %v1424_v53, %v990_v56  ;;  %v2785_v6 = vsel %vm2783_vm10, %v2784_v11, %v2782_v28  ;;  %v2789_v10 = vsel %vm2788_vm11, %v8528_v1, %v2787_v7  ;;  %v8610_v50 = vmax.f32 %v2574_v14, 0.0  ;;  %6906 = vmatprep.subr.bf16.mxu0 %v11186_v45  ;;  %v6995_v56 = vld [vmem:[%s7290_s15 + $0x58] sm:$0xff]   ;;  %v11217_v53 = vld [vmem:[#allocation7_spill] sm:$0xff] }
 0x149   : > { %v2274_v4 = vrot.slane %v2127_v33, %v7362_v38  ;;  %v2792_v21 = vsel %vm2790_vm12, %v2791_v16, %v2789_v10  ;;  %v3119_v29 = vmul.f32 1.25, %v2785_v6  ;;  %7095 = vrsqrt.f32 %v8603_v17 }
 0x14a   : > { %v1227_v55 = vcombine.high %v8517_v15, %v8517_v15  ;;  %v3120_v11 = vmul.f32 1.25, %v2792_v21  ;;  %7097 = vrsqrt.f32 %v8610_v50  ;;  %v1985_v5 = vadd.f32 %v1921_v62, %v1487_v24 }
 0x14b   : > { %v3183_v40 = vsub.f32 1.0, %v3119_v29  ;;  %v1986_v18 = vadd.f32 %v1922_v42, %v1488_v25  ;;  %v2419_v43 = vadd.f32 %v7768_v12, %v2274_v4  ;;  %v2420_v1 = vadd.f32 %v7766_v51, %v2274_v4 }
 0x14c   : > { %v3184_v2 = vsub.f32 1.0, %v3120_v11  ;;  %v904_v16 = vrot.slane %v793_v30, %v7362_v38  ;;  %v1338_v59 = vrot.slane %v1227_v55, %v7362_v38  ;;  %v2483_v37 = vmul.f32 2.0, %v1985_v5  ;;  %v11218_v11 = vld [vmem:[#allocation8_spill] sm:$0xff] }
 0x14d   : > { %v3247_v31 = vmax.f32 %v3183_v40, 0.0  ;;  %v2484_v15 = vmul.f32 2.0, %v1986_v18  ;;  %v1725_v57 = vcombine.high %v8524_v60, %v8524_v60  ;;  %vm2991_vm14 = vcmp.eq.f32.partialorder %v8603_v17, inf }
 0x14e   : > { %v3248_v26 = vmax.f32 %v3184_v2, 0.0  ;;  %v1019_v47 = vmul.f32 %v7670_v44, %v904_v16  ;;  %v1453_v48 = vmul.f32 %v7668_v8, %v1338_v59  ;;  %v2547_v34 = vsub.f32 %v2419_v43, %v2483_v37 }
 0x14f   : > { %v2548_v3 = vsub.f32 %v2420_v1, %v2484_v15  ;;  %v1836_v33 = vrot.slane %v1725_v57, %v7362_v38  ;;  %vm2993_vm15 = vcmp.eq.f32.partialorder %v8603_v17, 0.0  ;;  %v1020_v30 = vmul.f32 %v7714_v58, %v904_v16 }
 0x150   : > { %v3302_v9 = vpack.c.bf16 %v3248_v26, %v3247_v31  ;;  %v1454_v52 = vmul.f32 %v7712_v36, %v1338_v59  ;;  %v2223_v60 = vcombine.high %v8556_v63, %v8556_v63  ;;  %v8637_v19 = vmax.f32 %v2547_v34, 0.0  ;;  %v11220_v34 = vld [vmem:[#allocation10_spill] sm:$0xff] }
 0x151   : > { %v8639_v32 = vmax.f32 %v2548_v3, 0.0  ;;  %v1951_v41 = vmul.f32 %v7748_v13, %v1836_v33  ;;  %v666_v7 = vcombine.high %v11217_v53, %v11217_v53  ;;  %v2994_v62 = vand.u32 2147483648, %v8603_v17 }
 0x152   : > { %6807 = vmatmul.mubr.msk.bf16.vlgmr.msra.gmra.mrb[32].mxu1 %vm3395_vm13, %v3302_v9  ;;  %vm2998_vm1 = vcmp.eq.f32.partialorder %v8610_v50, inf  ;;  %v1952_v63 = vmul.f32 %v7746_v39, %v1836_v33  ;;  %v2334_v42 = vrot.slane %v2223_v60, %v7362_v38  ;;  %vm3000_vm2 = vcmp.eq.f32.partialorder %v8610_v50, 0.0 }
 0x153   : > { %v7096_v14 = vpop.eup %7095  ;;  %6817 = vmatpush3.bf16.msra.mxu1 %v6995_v56  ;;  %6818 = vmatprep.mubr.msk.bf16.mxu1 %vm7165_vm0, %v11186_v45  ;;  %7099 = vrsqrt.f32 %v8637_v19  ;;  %v1517_v25 = vadd.f32 %v1453_v48, %v1019_v47  ;;  %v3001_v10 = vand.u32 2147483648, %v8610_v50  ;;  %v1518_v4 = vadd.f32 %v1454_v52, %v1020_v30  ;;  %v11219_v47 = vld [vmem:[#allocation9_spill] sm:$0xff] }
 0x154   : > { %v7098_v28 = vpop.eup %7097  ;;  %v2990_v24 = vmul.f32 %v7096_v14, %v8603_v17  ;;  %6828 = vmatprep.subr.bf16.mxu1 %v11186_v45  ;;  %7101 = vrsqrt.f32 %v8639_v32  ;;  %v8661_v55 = vrot.slane %v666_v7, %v7330_v22  ;;  %v1100_v40 = vcombine.high %v11218_v11, %v11218_v11  ;;  %v6996_v14 = vld [vmem:[%s7290_s15 + $0xd0] sm:$0xff]  }
 0x155   : > { %v2997_v6 = vmul.f32 %v7098_v28, %v8610_v50  ;;  %v2015_v29 = vadd.f32 %v1951_v41, %v1517_v25  ;;  %v2016_v18 = vadd.f32 %v1952_v63, %v1518_v4  ;;  %v2449_v43 = vadd.f32 %v7768_v12, %v2334_v42 }
 0x156   : > { %v2992_v21 = vsel %vm2991_vm14, %v8603_v17, %v2990_v24  ;;  %v2450_v16 = vadd.f32 %v7766_v51, %v2334_v42  ;;  %vm2809_vm3 = vcmp.eq.f32.partialorder %v8637_v19, inf  ;;  %v852_v17 = vrot.slane %v8661_v55, %v7362_v38 }
 0x157   : > { %v2995_v2 = vsel %vm2993_vm15, %v2994_v62, %v2992_v21  ;;  %v2999_v5 = vsel %vm2998_vm1, %v8610_v50, %v2997_v6  ;;  %v2513_v59 = vmul.f32 2.0, %v2015_v29  ;;  %v2514_v37 = vmul.f32 2.0, %v2016_v18 }
 0x158   : > { %v3002_v31 = vsel %vm3000_vm2, %v3001_v10, %v2999_v5  ;;  %v3149_v1 = vmul.f32 1.25, %v2995_v2  ;;  %v8678_v56 = vrot.slane %v1100_v40, %v7330_v22  ;;  %v1598_v50 = vcombine.high %v11219_v47, %v11219_v47 }
 0x159   : > { %v3150_v26 = vmul.f32 1.25, %v3002_v31  ;;  %v2577_v57 = vsub.f32 %v2449_v43, %v2513_v59  ;;  %vm2811_vm4 = vcmp.eq.f32.partialorder %v8637_v19, 0.0  ;;  %v2578_v9 = vsub.f32 %v2450_v16, %v2514_v37 }
 0x15a   : > { %v3213_v15 = vsub.f32 1.0, %v3149_v1  ;;  %v2096_v3 = vcombine.high %v11220_v34, %v11220_v34  ;;  %v2812_v30 = vand.u32 2147483648, %v8637_v19  ;;  %v1286_v60 = vrot.slane %v8678_v56, %v7362_v38 }
 0x15b   : > { %v3214_v48 = vsub.f32 1.0, %v3150_v26  ;;  %v8686_v52 = vmax.f32 %v2577_v57, 0.0  ;;  %vm2816_vm5 = vcmp.eq.f32.partialorder %v8639_v32, inf  ;;  %vm2818_vm6 = vcmp.eq.f32.partialorder %v8639_v32, 0.0 }
 0x15c   : > { %v3277_v33 = vmax.f32 %v3213_v15, 0.0  ;;  %v8692_v53 = vmax.f32 %v2578_v9, 0.0  ;;  %v2819_v62 = vand.u32 2147483648, %v8639_v32  ;;  %v993_v63 = vmul.f32 %v7670_v44, %v852_v17 }
 0x15d   : > { %v3278_v41 = vmax.f32 %v3214_v48, 0.0  ;;  %v7100_v7 = vpop.eup %7099  ;;  %7103 = vrsqrt.f32 %v8686_v52  ;;  %v8699_v42 = vrot.slane %v1598_v50, %v7330_v22  ;;  %v8704_v6 = vrot.slane %v2096_v3, %v7330_v22 }
 0x15e   : > { %v7102_v28 = vpop.eup %7101  ;;  %v2808_v25 = vmul.f32 %v7100_v7, %v8637_v19  ;;  %7105 = vrsqrt.f32 %v8692_v53  ;;  %v994_v4 = vmul.f32 %v7714_v58, %v852_v17  ;;  %v1427_v21 = vmul.f32 %v7668_v8, %v1286_v60 }
 0x15f   : > { %v3317_v24 = vpack.c.bf16 %v3278_v41, %v3277_v33  ;;  %v2815_v10 = vmul.f32 %v7102_v28, %v8639_v32  ;;  %v748_v29 = vcombine.high %v8442_v20, %v8442_v20  ;;  %v1428_v40 = vmul.f32 %v7712_v36, %v1286_v60 }
 0x160   : > { %v2810_v11 = vsel %vm2809_vm3, %v8637_v19, %v2808_v25  ;;  %v1784_v2 = vrot.slane %v8699_v42, %v7362_v38  ;;  %v2282_v5 = vrot.slane %v8704_v6, %v7362_v38  ;;  %vm3019_vm7 = vcmp.eq.f32.partialorder %v8686_v52, inf }
 0x161   : > { %6897 = vmatmul.mubr.msk.bf16.vlgmr.msra.gmra.mrb[32].mxu0 %vm3395_vm13, %v3317_v24  ;;  %v2813_v20 = vsel %vm2811_vm4, %v2812_v30, %v2810_v11  ;;  %v2817_v18 = vsel %vm2816_vm5, %v8639_v32, %v2815_v10  ;;  %v3022_v43 = vand.u32 2147483648, %v8686_v52  ;;  %vm3021_vm8 = vcmp.eq.f32.partialorder %v8686_v52, 0.0 }
 0x162   : > { %6907 = vmatpush3.bf16.msra.mxu0 %v6996_v14  ;;  %6908 = vmatprep.mubr.msk.bf16.mxu0 %vm7165_vm0, %v11186_v45  ;;  %v2820_v31 = vsel %vm2818_vm6, %v2819_v62, %v2817_v18  ;;  %v3123_v1 = vmul.f32 1.25, %v2813_v20  ;;  %v1491_v16 = vadd.f32 %v1427_v21, %v993_v63  ;;  %v1925_v19 = vmul.f32 %v7748_v13, %v1784_v2  ;;  %v6997_v62 = vld [vmem:[%s7290_s15 + $0x68] sm:$0xff]  }
 0x163   : > { %6918 = vmatprep.subr.bf16.mxu0 %v11186_v45  ;;  %v3124_v59 = vmul.f32 1.25, %v2820_v31  ;;  %v1492_v26 = vadd.f32 %v1428_v40, %v994_v4  ;;  %v1926_v37 = vmul.f32 %v7746_v39, %v1784_v2  ;;  %v2423_v17 = vadd.f32 %v7768_v12, %v2282_v5 }
 0x164   : > { %v3187_v15 = vsub.f32 1.0, %v3123_v1  ;;  %v1989_v57 = vadd.f32 %v1925_v19, %v1491_v16  ;;  %v8737_v47 = vrot.slane %v748_v29, %v7330_v22  ;;  %v1182_v32 = vcombine.high %v8445_v23, %v8445_v23 }
 0x165   : > { %v3188_v50 = vsub.f32 1.0, %v3124_v59  ;;  %vm3026_vm9 = vcmp.eq.f32.partialorder %v8692_v53, inf  ;;  %v1990_v48 = vadd.f32 %v1926_v37, %v1492_v26  ;;  %v2424_v9 = vadd.f32 %v7766_v51, %v2282_v5 }
 0x166   : > { %v3251_v34 = vmax.f32 %v3187_v15, 0.0  ;;  %v2487_v3 = vmul.f32 2.0, %v1989_v57  ;;  %v8745_v33 = vrot.slane %v8737_v47, %v7330_v22  ;;  %v1680_v30 = vcombine.high %v8468_v0, %v8468_v0 }
 0x167   : > { %v7104_v60 = vpop.eup %7103  ;;  %v3252_v41 = vmax.f32 %v3188_v50, 0.0  ;;  %vm3028_vm10 = vcmp.eq.f32.partialorder %v8692_v53, 0.0  ;;  %v2488_v23 = vmul.f32 2.0, %v1990_v48  ;;  %v8751_v7 = vrot.slane %v1182_v32, %v7330_v22 }
 0x168   : > { %v7106_v14 = vpop.eup %7105  ;;  %v3018_v63 = vmul.f32 %v7104_v60, %v8686_v52  ;;  %v3029_v28 = vand.u32 2147483648, %v8692_v53  ;;  %v2551_v24 = vsub.f32 %v2423_v17, %v2487_v3  ;;  %v912_v25 = vrot.slane %v8745_v33, %v7362_v38 }
 0x169   : > { %v3304_v10 = vpack.c.bf16 %v3252_v41, %v3251_v34  ;;  %v3025_v0 = vmul.f32 %v7106_v14, %v8692_v53  ;;  %v2552_v4 = vsub.f32 %v2424_v9, %v2488_v23  ;;  %v8761_v21 = vrot.slane %v8751_v7, %v7330_v22  ;;  %v6998_v41 = vld [vmem:[%s7290_s15 + $0xe0] sm:$0xff]  }
 0x16a   : > { %v3020_v29 = vsel %vm3019_vm7, %v8686_v52, %v3018_v63  ;;  %v8766_v11 = vmax.f32 %v2551_v24, 0.0  ;;  %v8769_v40 = vrot.slane %v1680_v30, %v7330_v22  ;;  %v2178_v2 = vcombine.high %v8511_v49, %v8511_v49 }
 0x16b   : > { %6819 = vmatmul.mubr.msk.bf16.vlgmr.msra.gmra.mrb[36].mxu1 %vm3395_vm13, %v3304_v10  ;;  %v3023_v5 = vsel %vm3021_vm8, %v3022_v43, %v3020_v29  ;;  %v3027_v20 = vsel %vm3026_vm9, %v8692_v53, %v3025_v0  ;;  %v8779_v18 = vmax.f32 %v2552_v4, 0.0  ;;  %v1346_v31 = vrot.slane %v8761_v21, %v7362_v38 }
 0x16c   : > { %6829 = vmatpush3.bf16.msra.mxu1 %v6997_v62  ;;  %v3030_v1 = vsel %vm3028_vm10, %v3029_v28, %v3027_v20  ;;  %v3153_v16 = vmul.f32 1.25, %v3023_v5  ;;  %6830 = vmatprep.mubr.msk.bf16.mxu1 %vm7165_vm0, %v11186_v45  ;;  %7107 = vrsqrt.f32 %v8766_v11  ;;  %v8790_v49 = vrot.slane %v8769_v40, %v7330_v22 }
 0x16d   : > { %v3154_v52 = vmul.f32 1.25, %v3030_v1  ;;  %6840 = vmatprep.subr.bf16.mxu1 %v11186_v45  ;;  %7109 = vrsqrt.f32 %v8779_v18  ;;  %v1023_v43 = vmul.f32 %v7670_v44, %v912_v25  ;;  %v1024_v53 = vmul.f32 %v7714_v58, %v912_v25 }
 0x16e   : > { %v3217_v19 = vsub.f32 1.0, %v3153_v16  ;;  %v2840_v59 = vand.u32 2147483648, %v8766_v11  ;;  %v8798_v26 = vrot.slane %v2178_v2, %v7330_v22  ;;  %v1457_v17 = vmul.f32 %v7668_v8, %v1346_v31 }
 0x16f   : > { %v3218_v37 = vsub.f32 1.0, %v3154_v52  ;;  %v1458_v15 = vmul.f32 %v7712_v36, %v1346_v31  ;;  %v1844_v57 = vrot.slane %v8790_v49, %v7362_v38  ;;  %vm2837_vm11 = vcmp.eq.f32.partialorder %v8766_v11, inf }
 0x170   : > { %v3281_v32 = vmax.f32 %v3217_v19, 0.0  ;;  %v8807_v50 = vrot.slane %v8798_v26, %v7330_v22  ;;  %v698_v48 = vcombine.high %v8661_v55, %v8661_v55  ;;  %v1132_v9 = vcombine.high %v8678_v56, %v8678_v56 }
 0x171   : > { %v3282_v34 = vmax.f32 %v3218_v37, 0.0  ;;  %vm2839_vm12 = vcmp.eq.f32.partialorder %v8766_v11, 0.0  ;;  %v1521_v3 = vadd.f32 %v1457_v17, %v1023_v43  ;;  %v1522_v30 = vadd.f32 %v1458_v15, %v1024_v53 }
 0x172   : > { %v1955_v60 = vmul.f32 %v7748_v13, %v1844_v57  ;;  %v1956_v23 = vmul.f32 %v7746_v39, %v1844_v57  ;;  %v2342_v14 = vrot.slane %v8807_v50, %v7362_v38  ;;  %v860_v62 = vrot.slane %v698_v48, %v7362_v38 }
 0x173   : > { %v1294_v55 = vrot.slane %v1132_v9, %v7362_v38  ;;  %v3319_v63 = vpack.c.bf16 %v3282_v34, %v3281_v32  ;;  %v1630_v56 = vcombine.high %v8699_v42, %v8699_v42  ;;  %v2128_v24 = vcombine.high %v8704_v6, %v8704_v6 }
 0x174   : > { %v2019_v28 = vadd.f32 %v1955_v60, %v1521_v3  ;;  %v2020_v25 = vadd.f32 %v1956_v23, %v1522_v30  ;;  %v2453_v10 = vadd.f32 %v7768_v12, %v2342_v14  ;;  %v2454_v0 = vadd.f32 %v7766_v51, %v2342_v14 }
 0x175   : > { %v997_v4 = vmul.f32 %v7670_v44, %v860_v62  ;;  %6909 = vmatmul.mubr.msk.bf16.vlgmr.msra.gmra.mrb[36].mxu0 %vm3395_vm13, %v3319_v63  ;;  %vm2844_vm14 = vcmp.eq.f32.partialorder %v8779_v18, inf  ;;  %vm2846_vm15 = vcmp.eq.f32.partialorder %v8779_v18, 0.0  ;;  %v1431_v2 = vmul.f32 %v7668_v8, %v1294_v55 }
 0x176   : > { %v2517_v29 = vmul.f32 2.0, %v2019_v28  ;;  %v7108_v42 = vpop.eup %7107  ;;  %6919 = vmatpush3.bf16.msra.mxu0 %v6998_v41  ;;  %6920 = vmatprep.mubr.msk.bf16.mxu0 %vm7165_vm0, %v11186_v45  ;;  %v2847_v6 = vand.u32 2147483648, %v8779_v18  ;;  %v2518_v5 = vmul.f32 2.0, %v2020_v25  ;;  %v998_v20 = vmul.f32 %v7714_v58, %v860_v62 }
 0x177   : > { %v1792_v31 = vrot.slane %v1630_v56, %v7362_v38  ;;  %v7110_v1 = vpop.eup %7109  ;;  %v2836_v16 = vmul.f32 %v7108_v42, %v8766_v11  ;;  %6930 = vmatprep.subr.bf16.mxu0 %v11186_v45  ;;  %v1432_v43 = vmul.f32 %v7712_v36, %v1294_v55  ;;  %v2290_v53 = vrot.slane %v2128_v24, %v7362_v38 }
 0x178   : > { %v2581_v52 = vsub.f32 %v2453_v10, %v2517_v29  ;;  %v2843_v19 = vmul.f32 %v7110_v1, %v8779_v18  ;;  %v2582_v37 = vsub.f32 %v2454_v0, %v2518_v5  ;;  %v1495_v17 = vadd.f32 %v1431_v2, %v997_v4  ;;  %v6999_v2 = vld [vmem:[%s7290_s15 + $0x78] sm:$0xff]  }
 0x179   : > { %v1929_v15 = vmul.f32 %v7748_v13, %v1792_v31  ;;  %v2838_v57 = vsel %vm2837_vm11, %v8766_v11, %v2836_v16  ;;  %v1930_v48 = vmul.f32 %v7746_v39, %v1792_v31  ;;  %v794_v9 = vcombine.high %v8745_v33, %v8745_v33 }
 0x17a   : > { %v8846_v32 = vmax.f32 %v2581_v52, 0.0  ;;  %v2841_v34 = vsel %vm2839_vm12, %v2840_v59, %v2838_v57  ;;  %v2845_v3 = vsel %vm2844_vm14, %v8779_v18, %v2843_v19  ;;  %v8856_v30 = vmax.f32 %v2582_v37, 0.0  ;;  %v11221_v19 = vld [vmem:[#allocation11_spill] sm:$0xff] }
 0x17b   : > { %v1993_v60 = vadd.f32 %v1929_v15, %v1495_v17  ;;  %v2848_v41 = vsel %vm2846_vm15, %v2847_v6, %v2845_v3  ;;  %v3127_v23 = vmul.f32 1.25, %v2841_v34  ;;  %v1496_v33 = vadd.f32 %v1432_v43, %v998_v20 }
 0x17c   : > { %7111 = vrsqrt.f32 %v8846_v32  ;;  %v3128_v14 = vmul.f32 1.25, %v2848_v41  ;;  %v2427_v11 = vadd.f32 %v7768_v12, %v2290_v53  ;;  %v2428_v62 = vadd.f32 %v7766_v51, %v2290_v53 }
 0x17d   : > { %7113 = vrsqrt.f32 %v8856_v30  ;;  %v3191_v59 = vsub.f32 1.0, %v3127_v23  ;;  %v1994_v63 = vadd.f32 %v1930_v48, %v1496_v33  ;;  %v2491_v28 = vmul.f32 2.0, %v1993_v60 }
 0x17e   : > { %v3192_v55 = vsub.f32 1.0, %v3128_v14  ;;  %v920_v56 = vrot.slane %v794_v9, %v7362_v38  ;;  %v1228_v24 = vcombine.high %v8761_v21, %v8761_v21  ;;  %v1726_v25 = vcombine.high %v8790_v49, %v8790_v49 }
 0x17f   : > { %v3255_v18 = vmax.f32 %v3191_v59, 0.0  ;;  %v2224_v10 = vcombine.high %v8807_v50, %v8807_v50  ;;  %vm3047_vm1 = vcmp.eq.f32.partialorder %v8846_v32, inf  ;;  %v2492_v4 = vmul.f32 2.0, %v1994_v63 }
 0x180   : > { %v3256_v0 = vmax.f32 %v3192_v55, 0.0  ;;  %v2555_v29 = vsub.f32 %v2427_v11, %v2491_v28  ;;  %v1027_v42 = vmul.f32 %v7670_v44, %v920_v56  ;;  %v1028_v6 = vmul.f32 %v7714_v58, %v920_v56 }
 0x181   : > { %v1354_v5 = vrot.slane %v1228_v24, %v7362_v38  ;;  %v1852_v21 = vrot.slane %v1726_v25, %v7362_v38  ;;  %v2556_v31 = vsub.f32 %v2428_v62, %v2492_v4  ;;  %v2350_v50 = vrot.slane %v2224_v10, %v7362_v38  ;;  %v11222_v62 = vld [vmem:[#allocation12_spill] sm:$0xff] }
 0x182   : > { %v3306_v20 = vpack.c.bf16 %v3256_v0, %v3255_v18  ;;  %v8877_v49 = vmax.f32 %v2555_v29, 0.0  ;;  %vm3049_vm2 = vcmp.eq.f32.partialorder %v8846_v32, 0.0  ;;  %v714_v37 = vcombine.high %v11221_v19, %v11221_v19 }
 0x183   : > { %v1461_v1 = vmul.f32 %v7668_v8, %v1354_v5  ;;  %v1462_v16 = vmul.f32 %v7712_v36, %v1354_v5  ;;  %v1959_v52 = vmul.f32 %v7748_v13, %v1852_v21  ;;  %v1960_v43 = vmul.f32 %v7746_v39, %v1852_v21 }
 0x184   : > { %6831 = vmatmul.mubr.msk.bf16.vlgmr.msra.gmra.mrb[40].mxu1 %vm3395_vm13, %v3306_v20  ;;  %v8886_v53 = vmax.f32 %v2556_v31, 0.0  ;;  %7115 = vrsqrt.f32 %v8877_v49  ;;  %v3050_v15 = vand.u32 2147483648, %v8846_v32  ;;  %vm3054_vm3 = vcmp.eq.f32.partialorder %v8856_v30, inf }
 0x185   : > { %6841 = vmatpush3.bf16.msra.mxu1 %v6999_v2  ;;  %6842 = vmatprep.mubr.msk.bf16.mxu1 %vm7165_vm0, %v11186_v45  ;;  %v1525_v57 = vadd.f32 %v1461_v1, %v1027_v42  ;;  %v1526_v48 = vadd.f32 %v1462_v16, %v1028_v6  ;;  %vm3056_vm4 = vcmp.eq.f32.partialorder %v8856_v30, 0.0  ;;  %v3057_v3 = vand.u32 2147483648, %v8856_v30 }
 0x186   : > { %v7112_v17 = vpop.eup %7111  ;;  %6852 = vmatprep.subr.bf16.mxu1 %v11186_v45  ;;  %7117 = vrsqrt.f32 %v8886_v53  ;;  %v2457_v14 = vadd.f32 %v7768_v12, %v2350_v50  ;;  %vm2865_vm5 = vcmp.eq.f32.partialorder %v8877_v49, inf  ;;  %v2458_v11 = vadd.f32 %v7766_v51, %v2350_v50 }
 0x187   : > { %v7114_v9 = vpop.eup %7113  ;;  %v3046_v34 = vmul.f32 %v7112_v17, %v8846_v32  ;;  %v2023_v41 = vadd.f32 %v1959_v52, %v1525_v57  ;;  %v2024_v23 = vadd.f32 %v1960_v43, %v1526_v48  ;;  %v8908_v59 = vrot.slane %v714_v37, %v7330_v22 }
 0x188   : > { %v3053_v60 = vmul.f32 %v7114_v9, %v8856_v30  ;;  %v1148_v55 = vcombine.high %v11222_v62, %v11222_v62  ;;  %vm2867_vm6 = vcmp.eq.f32.partialorder %v8877_v49, 0.0  ;;  %v2868_v42 = vand.u32 2147483648, %v8877_v49 }
 0x189   : > { %v3048_v33 = vsel %vm3047_vm1, %v8846_v32, %v3046_v34  ;;  %v2521_v56 = vmul.f32 2.0, %v2023_v41  ;;  %v2522_v18 = vmul.f32 2.0, %v2024_v23  ;;  %v868_v10 = vrot.slane %v8908_v59, %v7362_v38  ;;  %v7003_v34 = vld [vmem:[%s7290_s15 + $0xf0] sm:$0xff]  }
 0x18a   : > { %v3051_v63 = vsel %vm3049_vm2, %v3050_v15, %v3048_v33  ;;  %v3055_v28 = vsel %vm3054_vm3, %v8856_v30, %v3053_v60  ;;  %v8922_v0 = vrot.slane %v1148_v55, %v7330_v22  ;;  %v11223_v30 = vld [vmem:[#allocation14_spill] sm:$0xff]  ;;  %v11224_v15 = vld [vmem:[#allocation15_spill] sm:$0xff]  ;;  %vm2872_vm7 = vcmp.eq.f32.partialorder %v8886_v53, inf }
 0x18b   : > { %v3058_v24 = vsel %vm3056_vm4, %v3057_v3, %v3055_v28  ;;  %v3157_v25 = vmul.f32 1.25, %v3051_v63  ;;  %v2585_v32 = vsub.f32 %v2457_v14, %v2521_v56  ;;  %v2586_v29 = vsub.f32 %v2458_v11, %v2522_v18 }
 0x18c   : > { %v3158_v4 = vmul.f32 1.25, %v3058_v24  ;;  %v1302_v6 = vrot.slane %v8922_v0, %v7362_v38  ;;  %v1646_v5 = vcombine.high %v11223_v30, %v11223_v30  ;;  %v1001_v50 = vmul.f32 %v7670_v44, %v868_v10 }
 0x18d   : > { %v3221_v2 = vsub.f32 1.0, %v3157_v25  ;;  %v8930_v20 = vmax.f32 %v2585_v32, 0.0  ;;  %v8932_v31 = vmax.f32 %v2586_v29, 0.0  ;;  %v1002_v52 = vmul.f32 %v7714_v58, %v868_v10  ;;  %v8942_v48 = vpop.f32.mrb[0].mxu1 }
 0x18e   : > { %v3222_v21 = vsub.f32 1.0, %v3158_v4  ;;  %v7116_v1 = vpop.eup %7115  ;;  %v1435_v43 = vmul.f32 %v7668_v8, %v1302_v6  ;;  %v1436_v19 = vmul.f32 %v7712_v36, %v1302_v6  ;;  %v2144_v57 = vcombine.high %v11224_v15, %v11224_v15  ;;  %v6754_v60 = vpop.f32.mrb[1].mxu1 }
 0x18f   : > { %v3285_v16 = vmax.f32 %v3221_v2, 0.0  ;;  %v2864_v17 = vmul.f32 %v7116_v1, %v8877_v49  ;;  %7119 = vrsqrt.f32 %v8930_v20  ;;  %vm2874_vm8 = vcmp.eq.f32.partialorder %v8886_v53, 0.0  ;;  %v8954_v11 = vpop.f32.mrb[0].mxu0  ;;  %v8956_v62 = vpop.f32.mrb[2].mxu1 }
 0x190   : > { %v3286_v37 = vmax.f32 %v3222_v21, 0.0  ;;  %v7118_v9 = vpop.eup %7117  ;;  %v2875_v3 = vand.u32 2147483648, %v8886_v53  ;;  %7121 = vrsqrt.f32 %v8932_v31  ;;  %v1668_v33 = vrot.slane %v1646_v5, %v7330_v22  ;;  %11225 = vst [vmem:[#allocation16_spill] sm:$0xff] %v8954_v11  ;;  %v6802_v18 = vpop.f32.mrb[1].mxu0 }
 0x191   : > { %v2866_v23 = vsel %vm2865_vm5, %v8877_v49, %v2864_v17  ;;  %v2871_v14 = vmul.f32 %v7118_v9, %v8886_v53  ;;  %v3078_v63 = vand.u32 2147483648, %v8930_v20  ;;  %v1499_v28 = vadd.f32 %v1435_v43, %v1001_v50  ;;  %v6755_v24 = vpop.f32.mrb[3].mxu1  ;;  %v8970_v32 = vpop.f32.mrb[2].mxu0 }
 0x192   : > { %v3321_v41 = vpack.c.bf16 %v3286_v37, %v3285_v16  ;;  %v2869_v55 = vsel %vm2867_vm6, %v2868_v42, %v2866_v23  ;;  %v1500_v56 = vadd.f32 %v1436_v19, %v1002_v52  ;;  %vm3075_vm9 = vcmp.eq.f32.partialorder %v8930_v20, inf  ;;  %11226 = vst [vmem:[#allocation18_spill] sm:$0xff] %v8970_v32  ;;  %v6803_v6 = vpop.f32.mrb[3].mxu0 }
 0x193   : > { %v2873_v25 = vsel %vm2872_vm7, %v8886_v53, %v2871_v14  ;;  %v3131_v10 = vmul.f32 1.25, %v2869_v55  ;;  %v1800_v4 = vrot.slane %v1668_v33, %v7362_v38  ;;  %v8968_v49 = vrot.slane %v2144_v57, %v7330_v22 }
 0x194   : > { %6921 = vmatmul.mubr.msk.bf16.vlgmr.msra.gmra.mrb[40].mxu0 %vm3395_vm13, %v3321_v41  ;;  %v2876_v29 = vsel %vm2874_vm8, %v2875_v3, %v2873_v25  ;;  %vm3077_vm10 = vcmp.eq.f32.partialorder %v8930_v20, 0.0  ;;  %vm3082_vm11 = vcmp.eq.f32.partialorder %v8932_v31, inf  ;;  %v746_v2 = vcombine.high %v8908_v59, %v8908_v59 }
 0x195   : > { %6931 = vmatpush3.bf16.msra.mxu0 %v7003_v34  ;;  %6932 = vmatprep.mubr.msk.bf16.mxu0 %vm7165_vm0, %v11186_v45  ;;  %v1180_v42 = vcombine.high %v8922_v0, %v8922_v0  ;;  %v3132_v30 = vmul.f32 1.25, %v2876_v29  ;;  %v3195_v5 = vsub.f32 1.0, %v3131_v10  ;;  %vm3084_vm12 = vcmp.eq.f32.partialorder %v8932_v31, 0.0  ;;  %v8990_v17 = vpop.f32.mrb[4].mxu1 }
 0x196   : > { %v1933_v21 = vmul.f32 %v7748_v13, %v1800_v4  ;;  %v1934_v53 = vmul.f32 %v7746_v39, %v1800_v4  ;;  %v11227_v50 = vmov 0   ;;  %v2298_v1 = vrot.slane %v8968_v49, %v7362_v38  ;;  %v6760_v3 = vpop.f32.mrb[5].mxu1 }
 0x197   : > { %6271 = vmatprep.subr.bf16.mxu0 %v11227_v50  ;;  %v876_v16 = vrot.slane %v746_v2, %v7362_v38  ;;  %v1310_v59 = vrot.slane %v1180_v42, %v7362_v38  ;;  %v1678_v52 = vcombine.high %v1668_v33, %v1668_v33  ;;  %v3196_v0 = vsub.f32 1.0, %v3132_v30  ;;  %v8997_v55 = vpop.f32.mrb[6].mxu1 }
 0x198   : > { %v3259_v43 = vmax.f32 %v3195_v5, 0.0  ;;  %v1997_v19 = vadd.f32 %v1933_v21, %v1499_v28  ;;  %v1998_v37 = vadd.f32 %v1934_v53, %v1500_v56  ;;  %v3085_v15 = vand.u32 2147483648, %v8932_v31  ;;  %v7004_v56 = vld [vmem:[%s7290_s15 + $0x88] sm:$0xff]   ;;  %v6761_v4 = vpop.f32.mrb[7].mxu1 }
 0x199   : > { %v2431_v57 = vadd.f32 %v7768_v12, %v2298_v1  ;;  %v2432_v9 = vadd.f32 %v7766_v51, %v2298_v1  ;;  %v1005_v34 = vmul.f32 %v7670_v44, %v876_v16  ;;  %v7120_v60 = vpop.eup %7119  ;;  %v3260_v41 = vmax.f32 %v3196_v0, 0.0  ;;  %v11230_v4 = vld [vmem:[#allocation39_spill] sm:$0xff] }
 0x19a   : > { %v2495_v23 = vmul.f32 2.0, %v1997_v19  ;;  %v2496_v14 = vmul.f32 2.0, %v1998_v37  ;;  %v1439_v33 = vmul.f32 %v7668_v8, %v1310_v59  ;;  %v7122_v28 = vpop.eup %7121  ;;  %v3074_v18 = vmul.f32 %v7120_v60, %v8930_v20  ;;  %v9005_v30 = vpop.f32.mrb[4].mxu0 }
 0x19b   : > { %v1006_v24 = vmul.f32 %v7714_v58, %v876_v16  ;;  %v1440_v25 = vmul.f32 %v7712_v36, %v1310_v59  ;;  %v1808_v10 = vrot.slane %v1678_v52, %v7362_v38  ;;  %v3308_v29 = vpack.c.bf16 %v3260_v41, %v3259_v43  ;;  %v6814_v16 = vpop.f32.mrb[5].mxu0 }
 0x19c   : > { %v3081_v2 = vmul.f32 %v7122_v28, %v8932_v31  ;;  %v2559_v42 = vsub.f32 %v2431_v57, %v2495_v23  ;;  %v2560_v6 = vsub.f32 %v2432_v9, %v2496_v14  ;;  %v3076_v5 = vsel %vm3075_vm9, %v8930_v20, %v3074_v18  ;;  %v9025_v19 = vpop.f32.mrb[6].mxu0  ;;  %v11228_v14 = vld [vmem:[#allocation25_spill] sm:$0xff]  ;;  %v11229_v18 = vld [vmem:[#allocation26_spill] sm:$0xff] }
 0x19d   : > { %v1503_v21 = vadd.f32 %v1439_v33, %v1005_v34  ;;  %v1937_v53 = vmul.f32 %v7748_v13, %v1808_v10  ;;  %v2176_v1 = vcombine.high %v8968_v49, %v8968_v49  ;;  %6843 = vmatmul.mubr.msk.bf16.vlgmr.msra.gmra.mrb[44].mxu1 %vm3395_vm13, %v3308_v29  ;;  %v3079_v59 = vsel %vm3077_vm10, %v3078_v63, %v3076_v5  ;;  %v6815_v57 = vpop.f32.mrb[7].mxu0 }
 0x19e   : > { %v3083_v52 = vsel %vm3082_vm11, %v8932_v31, %v3081_v2  ;;  %v9021_v0 = vmax.f32 %v2559_v42, 0.0  ;;  %v9023_v43 = vmax.f32 %v2560_v6, 0.0  ;;  %6853 = vmatpush3.bf16.msra.mxu1 %v7004_v56  ;;  %v3161_v37 = vmul.f32 1.25, %v3079_v59  ;;  %6854 = vmatprep.mubr.msk.bf16.mxu1 %vm7165_vm0, %v11186_v45 }
 0x19f   : > { %v3086_v49 = vsel %vm3084_vm12, %v3085_v15, %v3083_v52  ;;  %v1938_v20 = vmul.f32 %v7746_v39, %v1808_v10  ;;  %v2001_v63 = vadd.f32 %v1937_v53, %v1503_v21  ;;  %6864 = vmatprep.subr.bf16.mxu1 %v11186_v45  ;;  %v1504_v34 = vadd.f32 %v1440_v25, %v1006_v24 }
 0x1a0   : > { %v3162_v9 = vmul.f32 1.25, %v3086_v49  ;;  %7123 = vrsqrt.f32 %v9021_v0  ;;  %v3225_v3 = vsub.f32 1.0, %v3161_v37  ;;  %v2306_v41 = vrot.slane %v2176_v1, %v7362_v38 }
 0x1a1   : > { %7125 = vrsqrt.f32 %v9023_v43  ;;  %v2002_v31 = vadd.f32 %v1938_v20, %v1504_v34  ;;  %v2499_v23 = vmul.f32 2.0, %v2001_v63  ;;  %v715_v33 = vcombine.high %v11228_v14, %v11228_v14 }
 0x1a2   : > { %v3226_v60 = vsub.f32 1.0, %v3162_v9  ;;  %v3289_v15 = vmax.f32 %v3225_v3, 0.0  ;;  %v1149_v10 = vcombine.high %v11229_v18, %v11229_v18  ;;  %v1647_v24 = vcombine.high %v11230_v4, %v11230_v4 }
 0x1a3   : > { %v2500_v56 = vmul.f32 2.0, %v2002_v31  ;;  %v2435_v25 = vadd.f32 %v7768_v12, %v2306_v41  ;;  %v2436_v29 = vadd.f32 %v7766_v51, %v2306_v41  ;;  %v743_v2 = vrot.slane %v715_v33, %v7330_v22 }
 0x1a4   : > { %v3290_v28 = vmax.f32 %v3226_v60, 0.0  ;;  %vm2893_vm14 = vcmp.eq.f32.partialorder %v9021_v0, inf  ;;  %v1177_v6 = vrot.slane %v1149_v10, %v7330_v22  ;;  %v9048_v5 = vrot.slane %v1647_v24, %v7330_v22 }
 0x1a5   : > { %vm2895_vm15 = vcmp.eq.f32.partialorder %v9021_v0, 0.0  ;;  %v2563_v21 = vsub.f32 %v2435_v25, %v2499_v23  ;;  %v2564_v53 = vsub.f32 %v2436_v29, %v2500_v56  ;;  %v884_v1 = vrot.slane %v743_v2, %v7362_v38 }
 0x1a6   : > { %v3323_v42 = vpack.c.bf16 %v3290_v28, %v3289_v15  ;;  %v2896_v16 = vand.u32 2147483648, %v9021_v0  ;;  %v1318_v59 = vrot.slane %v1177_v6, %v7362_v38  ;;  %v1816_v52 = vrot.slane %v9048_v5, %v7362_v38  ;;  %v9059_v37 = vpop.f32.mrb[8].mxu1 }
 0x1a7   : > { %v2145_v49 = vcombine.high %v7740_v54, %v7740_v54  ;;  %vm2900_vm1 = vcmp.eq.f32.partialorder %v9023_v43, inf  ;;  %v9062_v20 = vmax.f32 %v2563_v21, 0.0  ;;  %v9064_v63 = vmax.f32 %v2564_v53, 0.0  ;;  %v6766_v9 = vpop.f32.mrb[9].mxu1 }
 0x1a8   : > { %6933 = vmatmul.mubr.msk.bf16.vlgmr.msra.gmra.mrb[44].mxu0 %vm3395_vm13, %v3323_v42  ;;  %v1009_v57 = vmul.f32 %v7670_v44, %v884_v1  ;;  %vm2902_vm2 = vcmp.eq.f32.partialorder %v9023_v43, 0.0  ;;  %v1010_v3 = vmul.f32 %v7714_v58, %v884_v1  ;;  %v1443_v60 = vmul.f32 %v7668_v8, %v1318_v59  ;;  %v9071_v31 = vpop.f32.mrb[10].mxu1 }
 0x1a9   : > { %v1444_v54 = vmul.f32 %v7712_v36, %v1318_v59  ;;  %v2903_v23 = vand.u32 2147483648, %v9023_v43  ;;  %7127 = vrsqrt.f32 %v9062_v20  ;;  %v1941_v14 = vmul.f32 %v7748_v13, %v1816_v52  ;;  %v6767_v33 = vpop.f32.mrb[11].mxu1 }
 0x1aa   : > { %v7124_v34 = vpop.eup %7123  ;;  %7129 = vrsqrt.f32 %v9064_v63  ;;  %v1942_v56 = vmul.f32 %v7746_v39, %v1816_v52  ;;  %v2173_v18 = vrot.slane %v2145_v49, %v7330_v22  ;;  %v1507_v4 = vadd.f32 %v1443_v60, %v1009_v57 }
 0x1ab   : > { %v7126_v15 = vpop.eup %7125  ;;  %v2892_v41 = vmul.f32 %v7124_v34, %v9021_v0  ;;  %v747_v24 = vcombine.high %v743_v2, %v743_v2  ;;  %v1181_v25 = vcombine.high %v1177_v6, %v1177_v6  ;;  %v1508_v21 = vadd.f32 %v1444_v54, %v1010_v3 }
 0x1ac   : > { %v2899_v28 = vmul.f32 %v7126_v15, %v9023_v43  ;;  %v2314_v53 = vrot.slane %v2173_v18, %v7362_v38  ;;  %v2005_v52 = vadd.f32 %v1941_v14, %v1507_v4  ;;  %v763_v49 = vcombine.high %v8495_v46, %v8495_v46  ;;  %v7005_v4 = vld [vmem:[%s7290_s15 + $0x98] sm:$0xff]  }
 0x1ad   : > { %v2894_v10 = vsel %vm2893_vm14, %v9021_v0, %v2892_v41  ;;  %v2006_v6 = vadd.f32 %v1942_v56, %v1508_v21  ;;  %vm2921_vm3 = vcmp.eq.f32.partialorder %v9062_v20, inf  ;;  %v892_v34 = vrot.slane %v747_v24, %v7362_v38 }
 0x1ae   : > { %v2897_v29 = vsel %vm2895_vm15, %v2896_v16, %v2894_v10  ;;  %v2901_v42 = vsel %vm2900_vm1, %v9023_v43, %v2899_v28  ;;  %v2439_v0 = vadd.f32 %v7768_v12, %v2314_v53  ;;  %v2440_v16 = vadd.f32 %v7766_v51, %v2314_v53 }
 0x1af   : > { %v2904_v1 = vsel %vm2902_vm2, %v2903_v23, %v2901_v42  ;;  %v3135_v59 = vmul.f32 1.25, %v2897_v29  ;;  %v2503_v9 = vmul.f32 2.0, %v2005_v52  ;;  %v2504_v3 = vmul.f32 2.0, %v2006_v6 }
 0x1b0   : > { %v3136_v2 = vmul.f32 1.25, %v2904_v1  ;;  %v1326_v60 = vrot.slane %v1181_v25, %v7362_v38  ;;  %v1679_v46 = vcombine.high %v9048_v5, %v9048_v5  ;;  %vm2923_vm4 = vcmp.eq.f32.partialorder %v9062_v20, 0.0 }
 0x1b1   : > { %v3199_v57 = vsub.f32 1.0, %v3135_v59  ;;  %v2924_v15 = vand.u32 2147483648, %v9062_v20  ;;  %v2567_v41 = vsub.f32 %v2439_v0, %v2503_v9  ;;  %v9103_v23 = vpop.f32.mrb[8].mxu0  ;;  %vm2928_vm5 = vcmp.eq.f32.partialorder %v9064_v63, inf }
 0x1b2   : > { %v3200_v43 = vsub.f32 1.0, %v3136_v2  ;;  %11231 = vst [vmem:[#allocation13_spill] sm:$0xff] %v9103_v23  ;;  %v2568_v33 = vsub.f32 %v2440_v16, %v2504_v3  ;;  %v2177_v28 = vcombine.high %v2173_v18, %v2173_v18  ;;  %v6826_v56 = vpop.f32.mrb[9].mxu0  ;;  %v1013_v5 = vmul.f32 %v7670_v44, %v892_v34 }
 0x1b3   : > { %v3263_v54 = vmax.f32 %v3199_v57, 0.0  ;;  %v7128_v10 = vpop.eup %7127  ;;  %v9107_v24 = vmax.f32 %v2567_v41, 0.0  ;;  %v1014_v25 = vmul.f32 %v7714_v58, %v892_v34  ;;  %v1447_v29 = vmul.f32 %v7668_v8, %v1326_v60  ;;  %v9112_v42 = vpop.f32.mrb[10].mxu0 }
 0x1b4   : > { %v3264_v14 = vmax.f32 %v3200_v43, 0.0  ;;  %v7130_v21 = vpop.eup %7129  ;;  %v2920_v1 = vmul.f32 %v7128_v10, %v9062_v20  ;;  %v9115_v59 = vmax.f32 %v2568_v33, 0.0  ;;  %v1824_v18 = vrot.slane %v1679_v46, %v7362_v38  ;;  %v6827_v52 = vpop.f32.mrb[11].mxu0 }
 0x1b5   : > { %v2927_v2 = vmul.f32 %v7130_v21, %v9064_v63  ;;  %7131 = vrsqrt.f32 %v9107_v24  ;;  %v1448_v6 = vmul.f32 %v7712_v36, %v1326_v60  ;;  %v9122_v0 = vrot.slane %v763_v49, %v7330_v22 }
 0x1b6   : > { %v3310_v53 = vpack.c.bf16 %v3264_v14, %v3263_v54  ;;  %v2922_v16 = vsel %vm2921_vm3, %v9062_v20, %v2920_v1  ;;  %v2931_v57 = vand.u32 2147483648, %v9064_v63  ;;  %7133 = vrsqrt.f32 %v9115_v59 }
 0x1b7   : > { %v2322_v9 = vrot.slane %v2177_v28, %v7362_v38  ;;  %v2925_v49 = vsel %vm2923_vm4, %v2924_v15, %v2922_v16  ;;  %v2929_v34 = vsel %vm2928_vm5, %v9064_v63, %v2927_v2  ;;  %vm2930_vm6 = vcmp.eq.f32.partialorder %v9064_v63, 0.0 }
 0x1b8   : > { %6855 = vmatmul.mubr.msk.bf16.vlgmr.msra.gmra.mrb[48].mxu1 %vm3395_vm13, %v3310_v53  ;;  %v900_v43 = vrot.slane %v9122_v0, %v7362_v38  ;;  %v2932_v3 = vsel %vm2930_vm6, %v2931_v57, %v2929_v34  ;;  %v3139_v60 = vmul.f32 1.25, %v2925_v49  ;;  %v1511_v46 = vadd.f32 %v1447_v29, %v1013_v5 }
 0x1b9   : > { %6865 = vmatpush3.bf16.msra.mxu1 %v7005_v4  ;;  %6866 = vmatprep.mubr.msk.bf16.mxu1 %vm7165_vm0, %v11186_v45  ;;  %v1945_v54 = vmul.f32 %v7748_v13, %v1824_v18  ;;  %v3140_v41 = vmul.f32 1.25, %v2932_v3  ;;  %vm2949_vm7 = vcmp.eq.f32.partialorder %v9107_v24, inf  ;;  %v2952_v20 = vand.u32 2147483648, %v9107_v24 }
 0x1ba   : > { %6876 = vmatprep.subr.bf16.mxu1 %v11186_v45  ;;  %v1512_v15 = vadd.f32 %v1448_v6, %v1014_v25  ;;  %v1946_v14 = vmul.f32 %v7746_v39, %v1824_v18  ;;  %v3203_v33 = vsub.f32 1.0, %v3139_v60  ;;  %vm2951_vm8 = vcmp.eq.f32.partialorder %v9107_v24, 0.0  ;;  %v9149_v56 = vpop.f32.mrb[12].mxu1 }
 0x1bb   : > { %vm2956_vm9 = vcmp.eq.f32.partialorder %v9115_v59, inf  ;;  %v2009_v63 = vadd.f32 %v1945_v54, %v1511_v46  ;;  %v2443_v28 = vadd.f32 %v7768_v12, %v2322_v9  ;;  %v3204_v10 = vsub.f32 1.0, %v3140_v41  ;;  %v6772_v29 = vpop.f32.mrb[13].mxu1 }
 0x1bc   : > { %v2010_v4 = vadd.f32 %v1946_v14, %v1512_v15  ;;  %v2444_v5 = vadd.f32 %v7766_v51, %v2322_v9  ;;  %v1197_v25 = vcombine.high %v8505_v35, %v8505_v35  ;;  %v3267_v21 = vmax.f32 %v3203_v33, 0.0  ;;  %v9158_v52 = vpop.f32.mrb[14].mxu1  ;;  %v7006_v35 = vld [vmem:[%s7290_s15 + $0xa8] sm:$0xff]  }
 0x1bd   : > { %v2507_v53 = vmul.f32 2.0, %v2009_v63  ;;  %v1695_v1 = vcombine.high %v8509_v27, %v8509_v27  ;;  %v2193_v18 = vcombine.high %v8534_v61, %v8534_v61  ;;  %v3268_v2 = vmax.f32 %v3204_v10, 0.0  ;;  %v6773_v9 = vpop.f32.mrb[15].mxu1 }
 0x1be   : > { %v2508_v6 = vmul.f32 2.0, %v2010_v4  ;;  %v1219_v16 = vrot.slane %v1197_v25, %v7330_v22  ;;  %v795_v57 = vcombine.high %v9122_v0, %v9122_v0  ;;  %vm2958_vm10 = vcmp.eq.f32.partialorder %v9115_v59, 0.0 }
 0x1bf   : > { %v2959_v49 = vand.u32 2147483648, %v9115_v59  ;;  %v2571_v34 = vsub.f32 %v2443_v28, %v2507_v53  ;;  %v1017_v27 = vmul.f32 %v7670_v44, %v900_v43  ;;  %v7132_v3 = vpop.eup %7131  ;;  %v3312_v61 = vpack.c.bf16 %v3268_v2, %v3267_v21 }
 0x1c0   : > { %v2572_v60 = vsub.f32 %v2444_v5, %v2508_v6  ;;  %v1018_v46 = vmul.f32 %v7714_v58, %v900_v43  ;;  %v1334_v54 = vrot.slane %v1219_v16, %v7362_v38  ;;  %v7134_v41 = vpop.eup %7133  ;;  %v2948_v15 = vmul.f32 %v7132_v3, %v9107_v24 }
 0x1c1   : > { %v9170_v0 = vmax.f32 %v2571_v34, 0.0  ;;  %v1717_v14 = vrot.slane %v1695_v1, %v7330_v22  ;;  %v9174_v33 = vrot.slane %v2193_v18, %v7330_v22  ;;  %6867 = vmatmul.mubr.msk.bf16.vlgmr.msra.gmra.mrb[52].mxu1 %vm3395_vm13, %v3312_v61  ;;  %v2955_v63 = vmul.f32 %v7134_v41, %v9115_v59 }
 0x1c2   : > { %v9178_v28 = vmax.f32 %v2572_v60, 0.0  ;;  %v1451_v43 = vmul.f32 %v7668_v8, %v1334_v54  ;;  %v908_v10 = vrot.slane %v795_v57, %v7362_v38  ;;  %6877 = vmatpush3.bf16.msra.mxu1 %v7006_v35  ;;  %6878 = vmatprep.mubr.msk.bf16.mxu1 %vm7165_vm0, %v11186_v45  ;;  %v2950_v4 = vsel %vm2949_vm7, %v9107_v24, %v2948_v15 }
 0x1c3   : > { %7135 = vrsqrt.f32 %v9170_v0  ;;  %v1452_v5 = vmul.f32 %v7712_v36, %v1334_v54  ;;  %v1832_v25 = vrot.slane %v1717_v14, %v7362_v38  ;;  %6888 = vmatprep.subr.bf16.mxu1 %v11186_v45  ;;  %v2953_v29 = vsel %vm2951_vm8, %v2952_v20, %v2950_v4  ;;  %v9199_v1 = vpop.f32.mrb[12].mxu0 }
 0x1c4   : > { %v2957_v21 = vsel %vm2956_vm9, %v9115_v59, %v2955_v63  ;;  %7137 = vrsqrt.f32 %v9178_v28  ;;  %v2330_v53 = vrot.slane %v9174_v33, %v7362_v38  ;;  %v3143_v2 = vmul.f32 1.25, %v2953_v29  ;;  %v6838_v24 = vpop.f32.mrb[13].mxu0 }
 0x1c5   : > { %v2960_v18 = vsel %vm2958_vm10, %v2959_v49, %v2957_v21  ;;  %v764_v6 = vcombine.high %v8737_v47, %v8737_v47  ;;  %v2980_v57 = vand.u32 2147483648, %v9170_v0  ;;  %v1515_v9 = vadd.f32 %v1451_v43, %v1017_v27  ;;  %v9207_v34 = vpop.f32.mrb[14].mxu0  ;;  %v7007_v21 = vld [vmem:[%s7290_s15 + $0xb8] sm:$0xff]  }
 0x1c6   : > { %v3144_v20 = vmul.f32 1.25, %v2960_v18  ;;  %v1021_v35 = vmul.f32 %v7670_v44, %v908_v10  ;;  %v3207_v3 = vsub.f32 1.0, %v3143_v2  ;;  %vm2977_vm11 = vcmp.eq.f32.partialorder %v9170_v0, inf  ;;  %v6839_v60 = vpop.f32.mrb[15].mxu0 }
 0x1c7   : > { %v1516_v61 = vadd.f32 %v1452_v5, %v1018_v46  ;;  %v1949_v59 = vmul.f32 %v7748_v13, %v1832_v25  ;;  %v1950_v49 = vmul.f32 %v7746_v39, %v1832_v25  ;;  %vm2979_vm12 = vcmp.eq.f32.partialorder %v9170_v0, 0.0 }
 0x1c8   : > { %v3208_v47 = vsub.f32 1.0, %v3144_v20  ;;  %v2447_v54 = vadd.f32 %v7768_v12, %v2330_v53  ;;  %v2448_v27 = vadd.f32 %v7766_v51, %v2330_v53  ;;  %v1229_v41 = vcombine.high %v1219_v16, %v1219_v16 }
 0x1c9   : > { %v3271_v15 = vmax.f32 %v3207_v3, 0.0  ;;  %v2013_v63 = vadd.f32 %v1949_v59, %v1515_v9  ;;  %v2014_v43 = vadd.f32 %v1950_v49, %v1516_v61  ;;  %v1727_v4 = vcombine.high %v1717_v14, %v1717_v14 }
 0x1ca   : > { %v3272_v29 = vmax.f32 %v3208_v47, 0.0  ;;  %v1022_v46 = vmul.f32 %v7714_v58, %v908_v10  ;;  %v1342_v5 = vrot.slane %v1229_v41, %v7362_v38  ;;  %v2225_v25 = vcombine.high %v9174_v33, %v9174_v33 }
 0x1cb   : > { %vm2984_vm14 = vcmp.eq.f32.partialorder %v9178_v28, inf  ;;  %v2511_v18 = vmul.f32 2.0, %v2013_v63  ;;  %v2512_v2 = vmul.f32 2.0, %v2014_v43  ;;  %v1840_v53 = vrot.slane %v1727_v4, %v7362_v38 }
 0x1cc   : > { %v3314_v16 = vpack.c.bf16 %v3272_v29, %v3271_v15  ;;  %vm2986_vm15 = vcmp.eq.f32.partialorder %v9178_v28, 0.0  ;;  %v1455_v14 = vmul.f32 %v7668_v8, %v1342_v5  ;;  %v1456_v24 = vmul.f32 %v7712_v36, %v1342_v5 }
 0x1cd   : > { %v7136_v10 = vpop.eup %7135  ;;  %v2575_v20 = vsub.f32 %v2447_v54, %v2511_v18  ;;  %v2576_v9 = vsub.f32 %v2448_v27, %v2512_v2  ;;  %v1953_v3 = vmul.f32 %v7748_v13, %v1840_v53  ;;  %v1954_v33 = vmul.f32 %v7746_v39, %v1840_v53 }
 0x1ce   : > { %v7138_v61 = vpop.eup %7137  ;;  %6879 = vmatmul.mubr.msk.bf16.vlgmr.msra.gmra.mrb[56].mxu1 %vm3395_vm13, %v3314_v16  ;;  %v2976_v59 = vmul.f32 %v7136_v10, %v9170_v0  ;;  %v1519_v49 = vadd.f32 %v1455_v14, %v1021_v35  ;;  %v1520_v60 = vadd.f32 %v1456_v24, %v1022_v46  ;;  %v2338_v47 = vrot.slane %v2225_v25, %v7362_v38  ;;  %v9238_v63 = vpop.f32.mrb[16].mxu1 }
 0x1cf   : > { %6889 = vmatpush3.bf16.msra.mxu1 %v7007_v21  ;;  %6890 = vmatprep.mubr.msk.bf16.mxu1 %vm7165_vm0, %v11186_v45  ;;  %v2983_v54 = vmul.f32 %v7138_v61, %v9178_v28  ;;  %v2987_v27 = vand.u32 2147483648, %v9178_v28  ;;  %v9234_v41 = vmax.f32 %v2575_v20, 0.0  ;;  %v9236_v15 = vmax.f32 %v2576_v9, 0.0  ;;  %v6778_v46 = vpop.f32.mrb[17].mxu1 }
 0x1d0   : > { %6900 = vmatprep.subr.bf16.mxu1 %v11186_v45  ;;  %v2978_v35 = vsel %vm2977_vm11, %v9170_v0, %v2976_v59  ;;  %v2017_v43 = vadd.f32 %v1953_v3, %v1519_v49  ;;  %v2018_v4 = vadd.f32 %v1954_v33, %v1520_v60  ;;  %v9245_v29 = vrot.slane %v764_v6, %v7330_v22  ;;  %v9255_v18 = vpop.f32.mrb[18].mxu1 }
 0x1d1   : > { %v2981_v5 = vsel %vm2979_vm12, %v2980_v57, %v2978_v35  ;;  %v2985_v25 = vsel %vm2984_vm14, %v9178_v28, %v2983_v54  ;;  %7139 = vrsqrt.f32 %v9234_v41  ;;  %v1198_v21 = vcombine.high %v8751_v7, %v8751_v7  ;;  %v6779_v57 = vpop.f32.mrb[19].mxu1  ;;  %v7008_v54 = vld [vmem:[%s7290_s15 + $0xc8] sm:$0xff]  }
 0x1d2   : > { %v2988_v2 = vsel %vm2986_vm15, %v2987_v27, %v2985_v25  ;;  %v3147_v6 = vmul.f32 1.25, %v2981_v5  ;;  %v2451_v53 = vadd.f32 %v7768_v12, %v2338_v47  ;;  %v2452_v0 = vadd.f32 %v7766_v51, %v2338_v47 }
 0x1d3   : > { %v3148_v16 = vmul.f32 1.25, %v2988_v2  ;;  %7141 = vrsqrt.f32 %v9236_v15  ;;  %v916_v14 = vrot.slane %v9245_v29, %v7362_v38  ;;  %v2515_v7 = vmul.f32 2.0, %v2017_v43 }
 0x1d4   : > { %v3211_v24 = vsub.f32 1.0, %v3147_v6  ;;  %v2516_v10 = vmul.f32 2.0, %v2018_v4  ;;  %vm3005_vm1 = vcmp.eq.f32.partialorder %v9234_v41, inf  ;;  %v1226_v28 = vrot.slane %v1198_v21, %v7330_v22 }
 0x1d5   : > { %v3212_v20 = vsub.f32 1.0, %v3148_v16  ;;  %vm3007_vm2 = vcmp.eq.f32.partialorder %v9234_v41, 0.0  ;;  %v2579_v3 = vsub.f32 %v2451_v53, %v2515_v7  ;;  %v1696_v61 = vcombine.high %v8769_v40, %v8769_v40 }
 0x1d6   : > { %v3275_v9 = vmax.f32 %v3211_v24, 0.0  ;;  %v2580_v33 = vsub.f32 %v2452_v0, %v2516_v10  ;;  %v1025_v49 = vmul.f32 %v7670_v44, %v916_v14  ;;  %v1350_v60 = vrot.slane %v1226_v28, %v7362_v38 }
 0x1d7   : > { %v3276_v59 = vmax.f32 %v3212_v20, 0.0  ;;  %v2194_v47 = vcombine.high %v8798_v26, %v8798_v26  ;;  %v9274_v27 = vmax.f32 %v2579_v3, 0.0  ;;  %v1026_v43 = vmul.f32 %v7714_v58, %v916_v14  ;;  %v9281_v46 = vpop.f32.mrb[16].mxu0 }
 0x1d8   : > { %v9276_v35 = vmax.f32 %v2580_v33, 0.0  ;;  %v796_v4 = vcombine.high %v9245_v29, %v9245_v29  ;;  %11232 = vst [vmem:[#allocation17_spill] sm:$0xff] %v9281_v46  ;;  %v1459_v5 = vmul.f32 %v7668_v8, %v1350_v60  ;;  %v1460_v25 = vmul.f32 %v7712_v36, %v1350_v60  ;;  %v6850_v2 = vpop.f32.mrb[17].mxu0 }
 0x1d9   : > { %v3316_v40 = vpack.c.bf16 %v3276_v59, %v3275_v9  ;;  %v1230_v21 = vcombine.high %v1226_v28, %v1226_v28  ;;  %v3008_v26 = vand.u32 2147483648, %v9234_v41  ;;  %7143 = vrsqrt.f32 %v9274_v27  ;;  %v9289_v0 = vpop.f32.mrb[18].mxu0 }
 0x1da   : > { %v1724_v6 = vrot.slane %v1696_v61, %v7330_v22  ;;  %v2222_v53 = vrot.slane %v2194_v47, %v7330_v22  ;;  %vm3012_vm3 = vcmp.eq.f32.partialorder %v9236_v15, inf  ;;  %vm3014_vm4 = vcmp.eq.f32.partialorder %v9236_v15, 0.0  ;;  %v6851_v16 = vpop.f32.mrb[19].mxu0 }
 0x1db   : > { %v7140_v29 = vpop.eup %7139  ;;  %6891 = vmatmul.mubr.msk.bf16.vlgmr.msra.gmra.mrb[60].mxu1 %vm3395_vm13, %v3316_v40  ;;  %v3015_v57 = vand.u32 2147483648, %v9236_v15  ;;  %7145 = vrsqrt.f32 %v9276_v35  ;;  %v3036_v14 = vand.u32 2147483648, %v9274_v27  ;;  %v1523_v24 = vadd.f32 %v1459_v5, %v1025_v49 }
 0x1dc   : > { %6901 = vmatpush3.bf16.msra.mxu1 %v7008_v54  ;;  %6902 = vmatprep.mubr.msk.bf16.mxu1 %vm7165_vm0, %v11186_v45  ;;  %v3004_v22 = vmul.f32 %v7140_v29, %v9234_v41  ;;  %v1524_v7 = vadd.f32 %v1460_v25, %v1026_v43  ;;  %v1848_v20 = vrot.slane %v1724_v6, %v7362_v38  ;;  %vm3033_vm5 = vcmp.eq.f32.partialorder %v9274_v27, inf }
 0x1dd   : > { %v7142_v10 = vpop.eup %7141  ;;  %6912 = vmatprep.subr.bf16.mxu1 %v11186_v45  ;;  %v2346_v28 = vrot.slane %v2222_v53, %v7362_v38  ;;  %v924_v9 = vrot.slane %v796_v4, %v7362_v38  ;;  %v1358_v3 = vrot.slane %v1230_v21, %v7362_v38  ;;  %v1728_v59 = vcombine.high %v1724_v6, %v1724_v6 }
 0x1de   : > { %v3006_v33 = vsel %vm3005_vm1, %v9234_v41, %v3004_v22  ;;  %v3011_v61 = vmul.f32 %v7142_v10, %v9236_v15  ;;  %v2226_v49 = vcombine.high %v2222_v53, %v2222_v53  ;;  %vm3035_vm6 = vcmp.eq.f32.partialorder %v9274_v27, 0.0 }
 0x1df   : > { %v3009_v60 = vsel %vm3007_vm2, %v3008_v26, %v3006_v33  ;;  %vm3040_vm7 = vcmp.eq.f32.partialorder %v9276_v35, inf  ;;  %v1957_v47 = vmul.f32 %v7748_v13, %v1848_v20  ;;  %v1958_v54 = vmul.f32 %v7746_v39, %v1848_v20 }
 0x1e0   : > { %v2455_v43 = vadd.f32 %v7768_v12, %v2346_v28  ;;  %v3013_v4 = vsel %vm3012_vm3, %v9236_v15, %v3011_v61  ;;  %v3151_v40 = vmul.f32 1.25, %v3009_v60  ;;  %vm3042_vm8 = vcmp.eq.f32.partialorder %v9276_v35, 0.0 }
 0x1e1   : > { %v2456_v41 = vadd.f32 %v7766_v51, %v2346_v28  ;;  %v1029_v5 = vmul.f32 %v7670_v44, %v924_v9  ;;  %v3016_v25 = vsel %vm3014_vm4, %v3015_v57, %v3013_v4  ;;  %v2021_v21 = vadd.f32 %v1957_v47, %v1523_v24  ;;  %v9328_v22 = vpop.f32.mrb[20].mxu1 }
 0x1e2   : > { %v2022_v2 = vadd.f32 %v1958_v54, %v1524_v7  ;;  %v1030_v26 = vmul.f32 %v7714_v58, %v924_v9  ;;  %v3152_v6 = vmul.f32 1.25, %v3016_v25  ;;  %v3215_v53 = vsub.f32 1.0, %v3151_v40  ;;  %v6784_v15 = vpop.f32.mrb[21].mxu1  ;;  %v7009_v25 = vld [vmem:[%s7290_s15 + $0xd8] sm:$0xff]  }
 0x1e3   : > { %v1463_v29 = vmul.f32 %v7668_v8, %v1358_v3  ;;  %v1464_v16 = vmul.f32 %v7712_v36, %v1358_v3  ;;  %v3043_v10 = vand.u32 2147483648, %v9276_v35  ;;  %v2519_v20 = vmul.f32 2.0, %v2021_v21  ;;  %v7144_v57 = vpop.eup %7143  ;;  %v9333_v33 = vpop.f32.mrb[22].mxu1 }
 0x1e4   : > { %v2520_v28 = vmul.f32 2.0, %v2022_v2  ;;  %v1856_v44 = vrot.slane %v1728_v59, %v7362_v38  ;;  %v3216_v24 = vsub.f32 1.0, %v3152_v6  ;;  %v3279_v7 = vmax.f32 %v3215_v53, 0.0  ;;  %11233 = vst [vmem:[#allocation19_spill] sm:$0xff] %v9333_v33  ;;  %v6785_v47 = vpop.f32.mrb[23].mxu1 }
 0x1e5   : > { %v1527_v58 = vadd.f32 %v1463_v29, %v1029_v5  ;;  %v2354_v9 = vrot.slane %v2226_v49, %v7362_v38  ;;  %v7146_v8 = vpop.eup %7145  ;;  %v3032_v36 = vmul.f32 %v7144_v57, %v9274_v27  ;;  %v2583_v3 = vsub.f32 %v2455_v43, %v2519_v20 }
 0x1e6   : > { %v2584_v61 = vsub.f32 %v2456_v41, %v2520_v28  ;;  %v1961_v60 = vmul.f32 %v7748_v13, %v1856_v44  ;;  %v3280_v54 = vmax.f32 %v3216_v24, 0.0  ;;  %v3039_v59 = vmul.f32 %v7146_v8, %v9276_v35  ;;  %v7010_v24 = vld [vmem:[%s7290_s15 + $0xe8] sm:$0xff]  }
 0x1e7   : > { %v1528_v4 = vadd.f32 %v1464_v16, %v1030_v26  ;;  %v1962_v40 = vmul.f32 %v7746_v39, %v1856_v44  ;;  %v3034_v38 = vsel %vm3033_vm5, %v9274_v27, %v3032_v36  ;;  %v2647_v49 = vmax.f32 %v2583_v3, 0.0 }
 0x1e8   : > { %v2648_v5 = vmax.f32 %v2584_v61, 0.0  ;;  %v2025_v21 = vadd.f32 %v1961_v60, %v1527_v58  ;;  %v3318_v2 = vpack.c.bf16 %v3280_v54, %v3279_v7  ;;  %v3037_v43 = vsel %vm3035_vm6, %v3036_v14, %v3034_v38 }
 0x1e9   : > { %v3041_v13 = vsel %vm3040_vm7, %v9276_v35, %v3039_v59  ;;  %v2026_v41 = vadd.f32 %v1962_v40, %v1528_v4  ;;  %v3155_v26 = vmul.f32 1.25, %v3037_v43  ;;  %7147 = vrsqrt.f32 %v2647_v49 }
 0x1ea   : > { %v3044_v39 = vsel %vm3042_vm8, %v3043_v10, %v3041_v13  ;;  %6903 = vmatmul.mubr.msk.bf16.vlgmr.msra.gmra.mrb[64].mxu1 %vm3395_vm13, %v3318_v2  ;;  %7149 = vrsqrt.f32 %v2648_v5  ;;  %v2459_v53 = vadd.f32 %v7768_v12, %v2354_v9  ;;  %v2460_v35 = vadd.f32 %v7766_v51, %v2354_v9 }
 0x1eb   : > { %v3156_v6 = vmul.f32 1.25, %v3044_v39  ;;  %6913 = vmatpush3.bf16.msra.mxu1 %v7009_v25  ;;  %6914 = vmatprep.mubr.msk.bf16.mxu1 %vm7165_vm0, %v11186_v45  ;;  %v3219_v27 = vsub.f32 1.0, %v3155_v26  ;;  %v2523_v29 = vmul.f32 2.0, %v2025_v21  ;;  %v2524_v16 = vmul.f32 2.0, %v2026_v41  ;;  %v9356_v10 = vpop.f32.mrb[20].mxu0 }
 0x1ec   : > { %6924 = vmatprep.subr.bf16.mxu1 %v11186_v45  ;;  %v6862_v28 = vpop.f32.mrb[21].mxu0  ;;  %vm3061_vm9 = vcmp.eq.f32.partialorder %v2647_v49, inf  ;;  %v3064_v61 = vand.u32 2147483648, %v2647_v49  ;;  %vm3063_vm10 = vcmp.eq.f32.partialorder %v2647_v49, 0.0  ;;  %vm3068_vm11 = vcmp.eq.f32.partialorder %v2648_v5, inf }
 0x1ed   : > { %v3220_v14 = vsub.f32 1.0, %v3156_v6  ;;  %v3283_v20 = vmax.f32 %v3219_v27, 0.0  ;;  %v2587_v15 = vsub.f32 %v2459_v53, %v2523_v29  ;;  %v2588_v12 = vsub.f32 %v2460_v35, %v2524_v16  ;;  %v9358_v57 = vpop.f32.mrb[22].mxu0 }
 0x1ee   : > { %11234 = vst [vmem:[#allocation27_spill] sm:$0xff] %v9358_v57  ;;  %v6863_v7 = vpop.f32.mrb[23].mxu0  ;;  %v3071_v59 = vand.u32 2147483648, %v2648_v5  ;;  %vm3070_vm12 = vcmp.eq.f32.partialorder %v2648_v5, 0.0  ;;  %v5700_v53 = vrot.slane %v8956_v62, 1  ;;  %v5772_v35 = vrot.slane %v8956_v62, 2 }
 0x1ef   : > { %v3284_v44 = vmax.f32 %v3220_v14, 0.0  ;;  %v2651_v8 = vmax.f32 %v2587_v15, 0.0  ;;  %v2652_v36 = vmax.f32 %v2588_v12, 0.0  ;;  %v5773_v7 = vrot.slane %v8997_v55, 1 }
 0x1f0   : > { %vm5023_vm3 = vcmask 1041409   ;;  %vm5026_vm4 = vcmask 1042434   ;;  %vm5029_vm5 = vcmask 1043459   ;;  %vm5032_vm6 = vcmask 1044484  }
 0x1f1   : > { %v3320_v58 = vpack.c.bf16 %v3284_v44, %v3283_v20  ;;  %7151 = vrsqrt.f32 %v2651_v8  ;;  %vm3089_vm14 = vcmp.eq.f32.partialorder %v2651_v8, inf  ;;  %vm3091_vm15 = vcmp.eq.f32.partialorder %v2651_v8, 0.0 }
 0x1f2   : > { %7153 = vrsqrt.f32 %v2652_v36  ;;  %v3092_v29 = vand.u32 2147483648, %v2651_v8  ;;  %vm3096_vm1 = vcmp.eq.f32.partialorder %v2652_v36, inf  ;;  %vm3098_vm2 = vcmp.eq.f32.partialorder %v2652_v36, 0.0 }
 0x1f3   : > { %6915 = vmatmul.mubr.msk.bf16.vlgmr.msra.gmra.mrb[68].mxu1 %vm3395_vm13, %v3320_v58  ;;  %v7148_v51 = vpop.eup %7147  ;;  %v3099_v44 = vand.u32 2147483648, %v2652_v36  ;;  %v5845_v58 = vrot.slane %v8997_v55, 2  ;;  %vm5035_vm7 = vcmask 1045509   ;;  %vm5038_vm8 = vcmask 1046534  }
 0x1f4   : > { %6925 = vmatpush3.bf16.msra.mxu1 %v7010_v24  ;;  %6926 = vmatprep.mubr.msk.bf16.mxu1 %vm7165_vm0, %v11186_v45  ;;  %v7150_v9 = vpop.eup %7149  ;;  %v3060_v3 = vmul.f32 %v7148_v51, %v2647_v49  ;;  %v9365_v47 = vpop.f32.mrb[24].mxu1 }
 0x1f5   : > { %6936 = vmatprep.subr.bf16.mxu1 %v11186_v45  ;;  %v3067_v60 = vmul.f32 %v7150_v9, %v2648_v5  ;;  %v6790_v4 = vpop.f32.mrb[25].mxu1 }
 0x1f6   : > { %v3062_v54 = vsel %vm3061_vm9, %v2647_v49, %v3060_v3  ;;  %v9367_v38 = vpop.f32.mrb[26].mxu1  ;;  %vm5041_vm9 = vcmask 1047559  }
 0x1f7   : > { %v3065_v40 = vsel %vm3063_vm10, %v3064_v61, %v3062_v54  ;;  %v3069_v25 = vsel %vm3068_vm11, %v2648_v5, %v3067_v60  ;;  %11235 = vst [vmem:[#allocation20_spill] sm:$0xff] %v9367_v38  ;;  %v6791_v43 = vpop.f32.mrb[27].mxu1  ;;  %v7011_v5 = vld [vmem:[%s7290_s15 + $0xf8] sm:$0xff]   ;;  %v5702_v61 = vrot.slane %v9071_v31, 7  ;;  %v5847_v60 = vrot.slane %v9071_v31, 1  ;;  %s7170_s15 = smov 48  }
 0x1f8   : > { %v3072_v21 = vsel %vm3070_vm12, %v3071_v59, %v3069_v25  ;;  %v3159_v2 = vmul.f32 1.25, %v3065_v40  ;;  %v5531_v40 = vrot.slane %v8942_v48, 7  ;;  %v5532_v25 = vrot.slane %v8990_v17, 6 }
 0x1f9   : > { %v3160_v13 = vmul.f32 1.25, %v3072_v21  ;;  %v5534_v21 = vrot.slane %v9059_v37, 5  ;;  %v5536_v43 = vrot.slane %v9149_v56, 4  ;;  %vm5234_vm10 = vcmask 392448  }
 0x1fa   : > { %v3223_v41 = vsub.f32 1.0, %v3159_v2  ;;  %vm5307_vm11 = vcmask 523648   ;;  %vm5380_vm12 = vcmask 654848  }
 0x1fb   : > { %v3224_v39 = vsub.f32 1.0, %v3160_v13  ;;  %v7152_v26 = vpop.eup %7151  ;;  %v5538_v13 = vrot.slane %v9238_v63, 3 }
 0x1fc   : > { %v3287_v6 = vmax.f32 %v3223_v41, 0.0  ;;  %v7154_v49 = vpop.eup %7153  ;;  %v3088_v14 = vmul.f32 %v7152_v26, %v2651_v8  ;;  %v5540_v41 = vrot.slane %v9328_v22, 2  ;;  %v5533_v26 = vsel %vm5023_vm3, %v5532_v25, %v5531_v40 }
 0x1fd   : > { %v3288_v27 = vmax.f32 %v3224_v39, 0.0  ;;  %v3095_v16 = vmul.f32 %v7154_v49, %v2652_v36  ;;  %v5093_v49 = vrot.slane %v8942_v48, 1  ;;  %v5172_v25 = vrot.slane %v9238_v63, 6 }
 0x1fe   : > { %v3090_v28 = vsel %vm3089_vm14, %v2651_v8, %v3088_v14  ;;  %v5095_v14 = vrot.slane %v9059_v37, 7  ;;  %vm5453_vm14 = vcmask 786048  }
 0x1ff   : > { %v3322_v20 = vpack.c.bf16 %v3288_v27, %v3287_v6  ;;  %v9372_v15 = vpop.f32.mrb[24].mxu0  ;;  %v3093_v12 = vsel %vm3091_vm15, %v3092_v29, %v3090_v28  ;;  %v3097_v24 = vsel %vm3096_vm1, %v2652_v36, %v3095_v16  ;;  %v5542_v6 = vrot.slane %v9365_v47, 1 }
 0x200   : > { %11236 = vst [vmem:[#allocation21_spill] sm:$0xff] %v9372_v15  ;;  %v6874_v51 = vpop.f32.mrb[25].mxu0  ;;  %v3100_v9 = vsel %vm3098_vm2, %v3099_v44, %v3097_v24  ;;  %v3163_v3 = vmul.f32 1.25, %v3093_v12  ;;  %v5535_v27 = vsel %vm5026_vm4, %v5534_v21, %v5533_v26  ;;  %v5099_v29 = vrot.slane %v9238_v63, 5 }
 0x201   : > { %6927 = vmatmul.mubr.msk.bf16.vlgmr.msra.gmra.mrb[72].mxu1 %vm3395_vm13, %v3322_v20  ;;  %v9379_v8 = vpop.f32.mrb[26].mxu0  ;;  %v3164_v36 = vmul.f32 1.25, %v3100_v9  ;;  %v5537_v20 = vsel %vm5029_vm5, %v5536_v43, %v5535_v27  ;;  %v5094_v28 = vsel %vm5023_vm3, %v8990_v17, %v5093_v49  ;;  %v5101_v44 = vrot.slane %v9328_v22, 4 }
 0x202   : > { %6937 = vmatpush3.bf16.msra.mxu1 %v7011_v5  ;;  %6938 = vmatprep.mubr.msk.bf16.mxu1 %vm7165_vm0, %v11186_v45  ;;  %v6875_v54 = vpop.f32.mrb[27].mxu0  ;;  %v3227_v59 = vsub.f32 1.0, %v3163_v3  ;;  %v5097_v5 = vrot.slane %v9149_v56, 6  ;;  %v5539_v12 = vsel %vm5032_vm6, %v5538_v13, %v5537_v20  ;;  %v5096_v24 = vsel %vm5026_vm4, %v5095_v14, %v5094_v28 }
 0x203   : > { %v3228_v4 = vsub.f32 1.0, %v3164_v36  ;;  %v5103_v51 = vrot.slane %v9365_v47, 3  ;;  %v5166_v9 = vrot.slane %v8942_v48, 2  ;;  %v5541_v3 = vsel %vm5035_vm7, %v5540_v41, %v5539_v12 }
 0x204   : > { %v3291_v2 = vmax.f32 %v3227_v59, 0.0  ;;  %v5098_v36 = vsel %vm5029_vm5, %v5097_v5, %v5096_v24  ;;  %v5167_v54 = vrot.slane %v8990_v17, 1  ;;  %v5170_v59 = vrot.slane %v9149_v56, 7 }
 0x205   : > { %v3292_v39 = vmax.f32 %v3228_v4, 0.0  ;;  %v5543_v4 = vsel %vm5038_vm8, %v5542_v6, %v5541_v3  ;;  %v5100_v40 = vsel %vm5032_vm6, %v5099_v29, %v5098_v36  ;;  %v5174_v21 = vrot.slane %v9328_v22, 5 }
 0x206   : > { %v5168_v43 = vsel %vm5023_vm3, %v5167_v54, %v5166_v9  ;;  %v5176_v13 = vrot.slane %v9365_v47, 4  ;;  %v5239_v41 = vrot.slane %v8942_v48, 3  ;;  %v5240_v6 = vrot.slane %v8990_v17, 2 }
 0x207   : > { %v3324_v16 = vpack.c.bf16 %v3292_v39, %v3291_v2  ;;  %v5102_v2 = vsel %vm5035_vm7, %v5101_v44, %v5100_v40  ;;  %v5169_v26 = vsel %vm5026_vm4, %v9059_v37, %v5168_v43  ;;  %v5242_v49 = vrot.slane %v9059_v37, 1 }
 0x208   : > { %v5104_v39 = vsel %vm5038_vm8, %v5103_v51, %v5102_v2  ;;  %v5171_v14 = vsel %vm5029_vm5, %v5170_v59, %v5169_v26  ;;  %v5245_v5 = vrot.slane %v9238_v63, 7  ;;  %v5247_v29 = vrot.slane %v9328_v22, 6 }
 0x209   : > { %6939 = vmatmul.mubr.msk.bf16.vlgmr.msra.gmra.mrb[76].mxu1 %vm3395_vm13, %v3324_v16  ;;  %v5249_v16 = vrot.slane %v9365_v47, 5  ;;  %v5173_v12 = vsel %vm5032_vm6, %v5172_v25, %v5171_v14  ;;  %v5241_v3 = vsel %vm5023_vm3, %v5240_v6, %v5239_v41  ;;  %v5312_v54 = vrot.slane %v8942_v48, 4 }
 0x20a   : > { %v5175_v9 = vsel %vm5035_vm7, %v5174_v21, %v5173_v12  ;;  %v5243_v25 = vsel %vm5026_vm4, %v5242_v49, %v5241_v3  ;;  %v5313_v2 = vrot.slane %v8990_v17, 3  ;;  %v5315_v41 = vrot.slane %v9059_v37, 2 }
 0x20b   : > { %v5177_v40 = vsel %vm5038_vm8, %v5176_v13, %v5175_v9  ;;  %v5244_v21 = vsel %vm5029_vm5, %v9149_v56, %v5243_v25  ;;  %v5317_v26 = vrot.slane %v9149_v56, 1  ;;  %v5322_v13 = vrot.slane %v9365_v47, 6 }
 0x20c   : > { %v5246_v6 = vsel %vm5032_vm6, %v5245_v5, %v5244_v21  ;;  %v5314_v14 = vsel %vm5023_vm3, %v5313_v2, %v5312_v54  ;;  %v5388_v9 = vrot.slane %v9059_v37, 3  ;;  %vm5161_vm0 = vcmask 261248  }
 0x20d   : > { %v5248_v49 = vsel %vm5035_vm7, %v5247_v29, %v5246_v6  ;;  %v5390_v29 = vrot.slane %v9149_v56, 2  ;;  %vm5526_vm15 = vcmask 917248   ;;  %vm11146_vm1 = vcmask 1048448  }
 0x20e   : > { %v9422_v27 = vpop.f32.mrb[28].mxu1  ;;  %v5250_v12 = vsel %vm5038_vm8, %v5249_v16, %v5248_v49  ;;  %v5395_v16 = vrot.slane %v9365_v47, 7  ;;  %v5461_v49 = vrot.slane %v9059_v37, 4 }
 0x20f   : > { %v6796_v20 = vpop.f32.mrb[29].mxu1  ;;  %v5544_v28 = vsel %vm5041_vm9, %v9422_v27, %v5543_v4  ;;  %v5105_v44 = vrot.slane %v9422_v27, 2  ;;  %v5178_v24 = vrot.slane %v9422_v27, 3  ;;  %v5251_v36 = vrot.slane %v9422_v27, 4 }
 0x210   : > { %5587 = vrot.lane.b32.xlu0 %v5544_v28, %s7167_s29  ;;  %v9434_v51 = vpop.f32.mrb[30].mxu1  ;;  %v5316_v20 = vsel %vm5026_vm4, %v5315_v41, %v5314_v14  ;;  %v5324_v28 = vrot.slane %v9422_v27, 5  ;;  %v5397_v25 = vrot.slane %v9422_v27, 6  ;;  %v5458_v41 = vrot.slane %v8942_v48, 6 }
 0x211   : > { %11237 = vst [vmem:[#allocation28_spill] sm:$0xff] %v9434_v51  ;;  %v6797_v59 = vpop.f32.mrb[31].mxu1  ;;  %v5106_v4 = vsel %vm5041_vm9, %v5105_v44, %v5104_v39  ;;  %v5179_v43 = vsel %vm5041_vm9, %v5178_v24, %v5177_v40  ;;  %v5320_v39 = vrot.slane %v9328_v22, 7  ;;  %v5385_v44 = vrot.slane %v8942_v48, 5 }
 0x212   : > { %v5318_v5 = vsel %vm5029_vm5, %v5317_v26, %v5316_v20  ;;  %v5386_v24 = vrot.slane %v8990_v17, 4  ;;  %v5252_v3 = vsel %vm5041_vm9, %v5251_v36, %v5250_v12  ;;  %v5392_v59 = vrot.slane %v9238_v63, 1 }
 0x213   : > { %v5319_v54 = vsel %vm5032_vm6, %v9238_v63, %v5318_v5  ;;  %v5459_v26 = vrot.slane %v8990_v17, 5  ;;  %v5463_v20 = vrot.slane %v9149_v56, 3  ;;  %v5465_v12 = vrot.slane %v9238_v63, 2 }
 0x214   : > { %5149 = vrot.lane.b32.xlu0 %v5106_v4, %s7168_s30  ;;  %v5321_v4 = vsel %vm5035_vm7, %v5320_v39, %v5319_v54  ;;  %v5387_v40 = vsel %vm5023_vm3, %v5386_v24, %v5385_v44  ;;  %v5467_v5 = vrot.slane %v9328_v22, 1  ;;  %v5470_v54 = vrot.slane %v9422_v27, 7 }
 0x215   : > { %v5323_v36 = vsel %vm5038_vm8, %v5322_v13, %v5321_v4  ;;  %v5389_v21 = vsel %vm5026_vm4, %v5388_v9, %v5387_v40  ;;  %v5460_v13 = vsel %vm5023_vm3, %v5459_v26, %v5458_v41  ;;  %v5706_v26 = vrot.slane %v9255_v18, 5 }
 0x216   : > { %v5325_v14 = vsel %vm5041_vm9, %v5324_v28, %v5323_v36  ;;  %v5391_v39 = vsel %vm5029_vm5, %v5390_v29, %v5389_v21  ;;  %v5462_v9 = vsel %vm5026_vm4, %v5461_v49, %v5460_v13  ;;  %v5701_v29 = vsel %vm5023_vm3, %v8997_v55, %v5700_v53 }
 0x217   : > { %v5464_v4 = vsel %vm5029_vm5, %v5463_v20, %v5462_v9  ;;  %v5703_v40 = vsel %vm5026_vm4, %v5702_v61, %v5701_v29  ;;  %v5704_v36 = vrot.slane %v9158_v52, 6  ;;  %v5708_v53 = vrot.slane %v9333_v33, 4 }
 0x218   : > { %5222 = vrot.lane.b32.xlu0 %v5179_v43, %s7169_s14  ;;  %v5393_v43 = vsel %vm5032_vm6, %v5392_v59, %v5391_v39  ;;  %v5466_v41 = vsel %vm5032_vm6, %v5465_v12, %v5464_v4  ;;  %v5712_v39 = vrot.slane %v9434_v51, 2  ;;  %v5776_v20 = vrot.slane %v9158_v52, 7 }
 0x219   : > { %v9471_v2 = vpop.f32.mrb[28].mxu0  ;;  %v5394_v28 = vsel %vm5035_vm7, %v9328_v22, %v5393_v43  ;;  %v5844_v9 = vrot.slane %v8956_v62, 3  ;;  %v5784_v29 = vrot.slane %v9434_v51, 3  ;;  %v5916_v4 = vrot.slane %v8956_v62, 4 }
 0x21a   : > { %11238 = vst [vmem:[#allocation30_spill] sm:$0xff] %v9471_v2  ;;  %v6886_v6 = vpop.f32.mrb[29].mxu0  ;;  %v5396_v59 = vsel %vm5038_vm8, %v5395_v16, %v5394_v28  ;;  %v5705_v16 = vsel %vm5029_vm5, %v5704_v36, %v5703_v40 }
 0x21b   : > { %v9482_v44 = vpop.f32.mrb[30].mxu0  ;;  %v5398_v21 = vsel %vm5041_vm9, %v5397_v25, %v5396_v59  ;;  %v5710_v6 = vrot.slane %v9367_v38, 3  ;;  %v5707_v49 = vsel %vm5032_vm6, %v5706_v26, %v5705_v16  ;;  %v5774_v25 = vsel %vm5023_vm3, %v5773_v7, %v5772_v35 }
 0x21c   : > { %11239 = vst [vmem:[#allocation23_spill] sm:$0xff] %v9482_v44  ;;  %v6887_v24 = vpop.f32.mrb[31].mxu0  ;;  %5295 = vrot.lane.b32.xlu0 %v5252_v3, %s7170_s15  ;;  %v5468_v3 = vsel %vm5035_vm7, %v5467_v5, %v5466_v41  ;;  %v5709_v13 = vsel %vm5035_vm7, %v5708_v53, %v5707_v49  ;;  %v5775_v12 = vsel %vm5026_vm4, %v9071_v31, %v5774_v25  ;;  %v5778_v5 = vrot.slane %v9255_v18, 6 }
 0x21d   : > { %v5469_v61 = vsel %vm5038_vm8, %v9365_v47, %v5468_v3  ;;  %v5711_v24 = vsel %vm5038_vm8, %v5710_v6, %v5709_v13  ;;  %v5777_v28 = vsel %vm5029_vm5, %v5776_v20, %v5775_v12  ;;  %v5780_v35 = vrot.slane %v9333_v33, 5 }
 0x21e   : > { %v5471_v43 = vsel %vm5041_vm9, %v5470_v54, %v5469_v61  ;;  %v5782_v7 = vrot.slane %v9367_v38, 4  ;;  %v5779_v54 = vsel %vm5032_vm6, %v5778_v5, %v5777_v28  ;;  %v5846_v41 = vsel %vm5023_vm3, %v5845_v58, %v5844_v9 }
 0x21f   : > { %v5781_v59 = vsel %vm5035_vm7, %v5780_v35, %v5779_v54  ;;  %v5850_v26 = vrot.slane %v9255_v18, 7  ;;  %v5848_v6 = vsel %vm5026_vm4, %v5847_v60, %v5846_v41  ;;  %v5545_v49 = vrot.slane %v8954_v11, 7 }
 0x220   : > { %5368 = vrot.lane.b32.xlu0 %v5325_v14, %s7171_s16  ;;  %v5713_v14 = vsel %vm5041_vm9, %v5712_v39, %v5711_v24  ;;  %v5783_v36 = vsel %vm5038_vm8, %v5782_v7, %v5781_v59  ;;  %v5852_v39 = vrot.slane %v9333_v33, 6  ;;  %v5849_v58 = vsel %vm5029_vm5, %v9158_v52, %v5848_v6 }
 0x221   : > { %v5785_v3 = vsel %vm5041_vm9, %v5784_v29, %v5783_v36  ;;  %v5854_v25 = vrot.slane %v9367_v38, 5  ;;  %v5919_v20 = vrot.slane %v9071_v31, 2  ;;  %v5548_v12 = vrot.slane %v9005_v30, 5 }
 0x222   : > { %v5856_v60 = vrot.slane %v9434_v51, 4  ;;  %v5107_v5 = vrot.slane %v8954_v11, 1  ;;  %v5988_v24 = vrot.slane %v8956_v62, 5  ;;  %v6060_v28 = vrot.slane %v8956_v62, 6 }
 0x223   : > { %v5851_v7 = vsel %vm5032_vm6, %v5850_v26, %v5849_v58  ;;  %v5109_v59 = vrot.slane %v9005_v30, 7  ;;  %v5989_v36 = vrot.slane %v8997_v55, 4  ;;  %v5991_v41 = vrot.slane %v9071_v31, 3 }
 0x224   : > { %5441 = vrot.lane.b32.xlu0 %v5398_v21, %s7172_s18  ;;  %v5917_v21 = vrot.slane %v8997_v55, 3  ;;  %v5853_v54 = vsel %vm5035_vm7, %v5852_v39, %v5851_v7  ;;  %v5921_v39 = vrot.slane %v9158_v52, 1  ;;  %v6063_v58 = vrot.slane %v9071_v31, 4 }
 0x225   : > { %v9536_v40 = vpop.f32.mrb[32].mxu1 }
 0x226   : > { %v6808_v53 = vpop.f32.mrb[33].mxu1  ;;  %v5546_v16 = vrot.slane %v9536_v40, 6  ;;  %v5108_v29 = vsel %vm5023_vm3, %v9536_v40, %v5107_v5  ;;  %v5990_v5 = vsel %vm5023_vm3, %v5989_v36, %v5988_v24  ;;  %v6000_v36 = vrot.slane %v9434_v51, 6 }
 0x227   : > { %v9551_v61 = vpop.f32.mrb[34].mxu1  ;;  %v5918_v53 = vsel %vm5023_vm3, %v5917_v21, %v5916_v4  ;;  %v5928_v21 = vrot.slane %v9434_v51, 5 }
 0x228   : > { %v6809_v13 = vpop.f32.mrb[35].mxu1  ;;  %5514 = vrot.lane.b32.xlu0 %v5471_v43, %s7173_s19  ;;  %v5547_v35 = vsel %vm5023_vm3, %v5546_v16, %v5545_v49  ;;  %v5855_v43 = vsel %vm5038_vm8, %v5854_v25, %v5853_v54  ;;  %v9579_v16 = vsel %vm5026_vm4, %v5109_v59, %v5108_v29  ;;  %v5920_v6 = vsel %vm5026_vm4, %v5919_v20, %v5918_v53 }
 0x229   : > { %v9567_v9 = vsel %vm5026_vm4, %v5548_v12, %v5547_v35  ;;  %v5857_v26 = vsel %vm5041_vm9, %v5856_v60, %v5855_v43  ;;  %v6061_v49 = vrot.slane %v8997_v55, 5  ;;  %v5924_v13 = vrot.slane %v9333_v33, 7 }
 0x22a   : > { %v5926_v25 = vrot.slane %v9367_v38, 6  ;;  %v5922_v4 = vsel %vm5029_vm5, %v5921_v39, %v5920_v6  ;;  %v5180_v12 = vrot.slane %v8954_v11, 2  ;;  %v5181_v20 = vrot.slane %v9536_v40, 1 }
 0x22b   : > { %v5923_v60 = vsel %vm5032_vm6, %v9255_v18, %v5922_v4  ;;  %v5993_v35 = vrot.slane %v9158_v52, 2  ;;  %v5992_v29 = vsel %vm5026_vm4, %v5991_v41, %v5990_v5  ;;  %v5998_v59 = vrot.slane %v9367_v38, 7 }
 0x22c   : > { %5756 = vrot.lane.b32.xlu0 %v5713_v14, %s7168_s30  ;;  %v5995_v14 = vrot.slane %v9255_v18, 1  ;;  %v5925_v7 = vsel %vm5035_vm7, %v5924_v13, %v5923_v60  ;;  %v5182_v54 = vsel %vm5023_vm3, %v5181_v20, %v5180_v12  ;;  %v5253_v41 = vrot.slane %v8954_v11, 3 }
 0x22d   : > { %v5927_v43 = vsel %vm5038_vm8, %v5926_v25, %v5925_v7  ;;  %v9605_v53 = vsel %vm5026_vm4, %v9005_v30, %v5182_v54  ;;  %v5994_v24 = vsel %vm5029_vm5, %v5993_v35, %v5992_v29  ;;  %v5254_v13 = vrot.slane %v9536_v40, 2 }
 0x22e   : > { %v5929_v6 = vsel %vm5041_vm9, %v5928_v21, %v5927_v43  ;;  %v5996_v39 = vsel %vm5032_vm6, %v5995_v14, %v5994_v24  ;;  %v5256_v25 = vrot.slane %v9005_v30, 1  ;;  %v6062_v60 = vsel %vm5023_vm3, %v6061_v49, %v6060_v28 }
 0x22f   : > { %v5255_v20 = vsel %vm5023_vm3, %v5254_v13, %v5253_v41  ;;  %v6065_v21 = vrot.slane %v9158_v52, 3  ;;  %v6064_v7 = vsel %vm5026_vm4, %v6063_v58, %v6062_v60  ;;  %v6067_v54 = vrot.slane %v9255_v18, 2 }
 0x230   : > { %5828 = vrot.lane.b32.xlu0 %v5785_v3, %s7169_s14  ;;  %v5997_v3 = vsel %vm5035_vm7, %v9333_v33, %v5996_v39  ;;  %v5257_v14 = vsel %vm5026_vm4, %v5256_v25, %v5255_v20  ;;  %v6069_v43 = vrot.slane %v9333_v33, 1  ;;  %v5714_v28 = vrot.slane %v8970_v32, 1 }
 0x231   : > { %v5999_v12 = vsel %vm5038_vm8, %v5998_v59, %v5997_v3  ;;  %v6066_v59 = vsel %vm5029_vm5, %v6065_v21, %v6064_v7  ;;  %v5786_v49 = vrot.slane %v8970_v32, 2  ;;  %v5716_v39 = vrot.slane %v9025_v19, 7 }
 0x232   : > { %v6001_v35 = vsel %vm5041_vm9, %v6000_v36, %v5999_v12  ;;  %v6072_v36 = vrot.slane %v9434_v51, 7  ;;  %v6068_v58 = vsel %vm5032_vm6, %v6067_v54, %v6066_v59  ;;  %v5326_v41 = vrot.slane %v8954_v11, 4 }
 0x233   : > { %v5327_v13 = vrot.slane %v9536_v40, 3  ;;  %v5787_v3 = vrot.slane %v9551_v61, 1  ;;  %v5552_v25 = vrot.slane %v9103_v23, 3  ;;  %v6070_v12 = vsel %vm5035_vm7, %v6069_v43, %v6068_v58 }
 0x234   : > { %v9616_v4 = vpop.f32.mrb[32].mxu0  ;;  %5900 = vrot.lane.b32.xlu0 %v5857_v26, %s7170_s15  ;;  %v5329_v20 = vrot.slane %v9005_v30, 2  ;;  %v6071_v60 = vsel %vm5038_vm8, %v9367_v38, %v6070_v12  ;;  %v5400_v7 = vrot.slane %v9536_v40, 4  ;;  %v5859_v54 = vrot.slane %v9551_v61, 2 }
 0x235   : > { %11240 = vst [vmem:[#allocation29_spill] sm:$0xff] %v9616_v4  ;;  %v6898_v5 = vpop.f32.mrb[33].mxu0  ;;  %v5328_v21 = vsel %vm5023_vm3, %v5327_v13, %v5326_v41  ;;  %v6073_v59 = vsel %vm5041_vm9, %v6072_v36, %v6071_v60  ;;  %v5931_v43 = vrot.slane %v9551_v61, 3  ;;  %v5472_v12 = vrot.slane %v8954_v11, 6 }
 0x236   : > { %v9627_v29 = vpop.f32.mrb[34].mxu0  ;;  %v5399_v5 = vrot.slane %v8954_v11, 5  ;;  %v5473_v41 = vrot.slane %v9536_v40, 5  ;;  %v5113_v13 = vrot.slane %v9103_v23, 5  ;;  %v5475_v36 = vrot.slane %v9005_v30, 4 }
 0x237   : > { %11241 = vst [vmem:[#allocation33_spill] sm:$0xff] %v9627_v29  ;;  %v6899_v24 = vpop.f32.mrb[35].mxu0  ;;  %v5186_v60 = vrot.slane %v9103_v23, 6  ;;  %v5259_v11 = vrot.slane %v9103_v23, 7 }
 0x238   : > { %5972 = vrot.lane.b32.xlu0 %v5929_v6, %s7171_s16  ;;  %v5330_v24 = vsel %vm5026_vm4, %v5329_v20, %v5328_v21  ;;  %v5402_v6 = vrot.slane %v9005_v30, 3  ;;  %v5401_v58 = vsel %vm5023_vm3, %v5400_v7, %v5399_v5  ;;  %v5715_v20 = vsel %vm5023_vm3, %v9551_v61, %v5714_v28 }
 0x239   : > { %v5474_v21 = vsel %vm5023_vm3, %v5473_v41, %v5472_v12  ;;  %v5717_v5 = vsel %vm5026_vm4, %v5716_v39, %v5715_v20  ;;  %v5788_v7 = vsel %vm5023_vm3, %v5787_v3, %v5786_v49 }
 0x23a   : > { %v5403_v26 = vsel %vm5026_vm4, %v5402_v6, %v5401_v58  ;;  %v5476_v6 = vsel %vm5026_vm4, %v5475_v36, %v5474_v21  ;;  %v5789_v58 = vsel %vm5026_vm4, %v9025_v19, %v5788_v7 }
 0x23c   : > { %6044 = vrot.lane.b32.xlu0 %v6001_v35, %s7172_s18  ;;  %v5406_v35 = vrot.slane %v9103_v23, 1 }
 0x23e   : > { %v9667_v45 = vpop.f32.mrb[36].mxu1 }
 0x23f   : > { %11242 = vst [vmem:[#allocation34_spill] sm:$0xff] %v9667_v45  ;;  %v6820_v28 = vpop.f32.mrb[37].mxu1  ;;  %v5550_v51 = vrot.slane %v9667_v45, 4  ;;  %v5111_v12 = vrot.slane %v9667_v45, 6  ;;  %v5184_v39 = vrot.slane %v9667_v45, 7  ;;  %v5258_v49 = vsel %vm5029_vm5, %v9667_v45, %v5257_v14 }
 0x240   : > { %v9679_v3 = vpop.f32.mrb[38].mxu1  ;;  %v9682_v41 = vsel %vm5032_vm6, %v5259_v11, %v5258_v49  ;;  %6116 = vrot.lane.b32.xlu0 %v6073_v59, %s7173_s19  ;;  %v5331_v36 = vrot.slane %v9667_v45, 1  ;;  %v5404_v20 = vrot.slane %v9667_v45, 2  ;;  %v5477_v21 = vrot.slane %v9667_v45, 3 }
 0x241   : > { %11243 = vst [vmem:[#allocation31_spill] sm:$0xff] %v9679_v3  ;;  %v6821_v7 = vpop.f32.mrb[39].mxu1  ;;  %v5551_v28 = vsel %vm5029_vm5, %v5550_v51, %v9567_v9  ;;  %v5112_v14 = vsel %vm5029_vm5, %v5111_v12, %v9579_v16  ;;  %v5185_v50 = vsel %vm5029_vm5, %v5184_v39, %v9605_v53  ;;  %v5479_v11 = vrot.slane %v9103_v23, 2 }
 0x242   : > { %v9696_v59 = vsel %vm5032_vm6, %v5552_v25, %v5551_v28  ;;  %v9699_v49 = vsel %vm5032_vm6, %v5113_v13, %v5112_v14  ;;  %v9702_v45 = vsel %vm5032_vm6, %v5186_v60, %v5185_v50  ;;  %v5332_v7 = vsel %vm5029_vm5, %v5331_v36, %v5330_v24 }
 0x243   : > { %v9707_v51 = vsel %vm5032_vm6, %v9103_v23, %v5332_v7  ;;  %v5405_v9 = vsel %vm5029_vm5, %v5404_v20, %v5403_v26  ;;  %v5478_v16 = vsel %vm5029_vm5, %v5477_v21, %v5476_v6  ;;  %v5718_v53 = vrot.slane %v9679_v3, 6 }
 0x244   : > { %v9713_v25 = vsel %vm5032_vm6, %v5406_v35, %v5405_v9  ;;  %v9716_v13 = vsel %vm5032_vm6, %v5479_v11, %v5478_v16  ;;  %v5720_v50 = vrot.slane %v9112_v42, 5  ;;  %v5790_v24 = vrot.slane %v9679_v3, 7 }
 0x245   : > { %v5861_v60 = vrot.slane %v9025_v19, 1  ;;  %v5719_v12 = vsel %vm5029_vm5, %v5718_v53, %v5717_v5  ;;  %v5792_v26 = vrot.slane %v9112_v42, 6  ;;  %v5930_v6 = vrot.slane %v8970_v32, 4 }
 0x246   : > { %v9725_v39 = vsel %vm5032_vm6, %v5720_v50, %v5719_v12  ;;  %v5791_v35 = vsel %vm5029_vm5, %v5790_v24, %v5789_v58  ;;  %v11244_v36 = vrot.slane %v8970_v32, 3  ;;  %v5933_v21 = vrot.slane %v9025_v19, 2 }
 0x247   : > { %v9733_v28 = vsel %vm5032_vm6, %v5792_v26, %v5791_v35  ;;  %v5864_v14 = vrot.slane %v9112_v42, 7  ;;  %v5932_v58 = vsel %vm5023_vm3, %v5931_v43, %v5930_v6  ;;  %v6003_v9 = vrot.slane %v9551_v61, 4 }
 0x248   : > { %v5860_v20 = vsel %vm5023_vm3, %v5859_v54, %v11244_v36  ;;  %v9737_v11 = vpop.f32.mrb[36].mxu0  ;;  %v5934_v53 = vsel %vm5026_vm4, %v5933_v21, %v5932_v58  ;;  %v5935_v50 = vrot.slane %v9679_v3, 1  ;;  %v6075_v12 = vrot.slane %v9551_v61, 5 }
 0x249   : > { %v5862_v5 = vsel %vm5026_vm4, %v5861_v60, %v5860_v20  ;;  %11245 = vst [vmem:[#allocation35_spill] sm:$0xff] %v9737_v11  ;;  %v6910_v16 = vpop.f32.mrb[37].mxu0  ;;  %v6002_v60 = vrot.slane %v8970_v32, 5  ;;  %v6005_v35 = vrot.slane %v9025_v19, 3  ;;  %v6074_v6 = vrot.slane %v8970_v32, 6 }
 0x24a   : > { %v5863_v7 = vsel %vm5029_vm5, %v9679_v3, %v5862_v5  ;;  %v9748_v24 = vpop.f32.mrb[38].mxu0  ;;  %v5936_v43 = vsel %vm5029_vm5, %v5935_v50, %v5934_v53  ;;  %v6007_v21 = vrot.slane %v9679_v3, 2  ;;  %v6077_v5 = vrot.slane %v9025_v19, 4 }
 0x24b   : > { %v9744_v54 = vsel %vm5032_vm6, %v5864_v14, %v5863_v7  ;;  %11246 = vst [vmem:[#allocation36_spill] sm:$0xff] %v9748_v24  ;;  %v6911_v26 = vpop.f32.mrb[39].mxu0  ;;  %v9757_v36 = vsel %vm5032_vm6, %v9112_v42, %v5936_v43  ;;  %v6004_v20 = vsel %vm5023_vm3, %v6003_v9, %v6002_v60  ;;  %v6009_v7 = vrot.slane %v9112_v42, 1 }
 0x24c   : > { %v6006_v14 = vsel %vm5026_vm4, %v6005_v35, %v6004_v20  ;;  %v6076_v16 = vsel %vm5023_vm3, %v6075_v12, %v6074_v6  ;;  %v6079_v53 = vrot.slane %v9679_v3, 3  ;;  %v6081_v9 = vrot.slane %v9112_v42, 2 }
 0x24d   : > { %v6008_v58 = vsel %vm5029_vm5, %v6007_v21, %v6006_v14  ;;  %v6078_v26 = vsel %vm5026_vm4, %v6077_v5, %v6076_v16  ;;  %v5556_v35 = vrot.slane %v9199_v1, 1  ;;  %v5117_v20 = vrot.slane %v9199_v1, 3 }
 0x24e   : > { %v6010_v50 = vsel %vm5032_vm6, %v6009_v7, %v6008_v58  ;;  %v6080_v60 = vsel %vm5029_vm5, %v6079_v53, %v6078_v26  ;;  %v5190_v21 = vrot.slane %v9199_v1, 4  ;;  %v5263_v12 = vrot.slane %v9199_v1, 5 }
 0x24f   : > { %v6082_v43 = vsel %vm5032_vm6, %v6081_v9, %v6080_v60  ;;  %v5336_v6 = vrot.slane %v9199_v1, 6  ;;  %v5409_v14 = vrot.slane %v9199_v1, 7  ;;  %v5724_v5 = vrot.slane %v9207_v34, 3 }
 0x250   : > { %v5796_v58 = vrot.slane %v9207_v34, 4  ;;  %v5868_v16 = vrot.slane %v9207_v34, 5  ;;  %v5940_v53 = vrot.slane %v9207_v34, 6 }
 0x257   : > { %v9778_v7 = vpop.f32.mrb[40].mxu1 }
 0x258   : > { %v6832_v26 = vpop.f32.mrb[41].mxu1  ;;  %v5554_v9 = vrot.slane %v9778_v7, 2  ;;  %v5115_v60 = vrot.slane %v9778_v7, 4  ;;  %v5188_v32 = vrot.slane %v9778_v7, 5  ;;  %v5261_v38 = vrot.slane %v9778_v7, 6 }
 0x259   : > { %v9788_v33 = vpop.f32.mrb[42].mxu1  ;;  %v5334_v23 = vrot.slane %v9778_v7, 7  ;;  %v5408_v4 = vsel %vm5035_vm7, %v9778_v7, %v9713_v25  ;;  %v5481_v44 = vrot.slane %v9778_v7, 1  ;;  %v6012_v26 = vrot.slane %v9207_v34, 7 }
 0x25a   : > { %v6833_v24 = vpop.f32.mrb[43].mxu1  ;;  %v5555_v11 = vsel %vm5035_vm7, %v5554_v9, %v9696_v59  ;;  %v5116_v2 = vsel %vm5035_vm7, %v5115_v60, %v9699_v49  ;;  %v5189_v15 = vsel %vm5035_vm7, %v5188_v32, %v9702_v45  ;;  %v5262_v46 = vsel %vm5035_vm7, %v5261_v38, %v9682_v41 }
 0x25b   : > { %v9805_v3 = vsel %vm5038_vm8, %v5556_v35, %v5555_v11  ;;  %v9808_v25 = vsel %vm5038_vm8, %v5117_v20, %v5116_v2  ;;  %v9811_v24 = vsel %vm5038_vm8, %v5190_v21, %v5189_v15  ;;  %v9814_v59 = vsel %vm5038_vm8, %v5263_v12, %v5262_v46 }
 0x25c   : > { %v5335_v49 = vsel %vm5035_vm7, %v5334_v23, %v9707_v51  ;;  %v9819_v45 = vsel %vm5038_vm8, %v5409_v14, %v5408_v4  ;;  %v5482_v32 = vsel %vm5035_vm7, %v5481_v44, %v9716_v13  ;;  %v5722_v38 = vrot.slane %v9788_v33, 4 }
 0x25d   : > { %v9825_v2 = vsel %vm5038_vm8, %v5336_v6, %v5335_v49  ;;  %v9829_v15 = vsel %vm5038_vm8, %v9199_v1, %v5482_v32  ;;  %v5794_v46 = vrot.slane %v9788_v33, 5  ;;  %v5866_v41 = vrot.slane %v9788_v33, 6 }
 0x25e   : > { %v5723_v23 = vsel %vm5035_vm7, %v5722_v38, %v9725_v39  ;;  %v5938_v4 = vrot.slane %v9788_v33, 7  ;;  %v6011_v44 = vsel %vm5035_vm7, %v9788_v33, %v6010_v50  ;;  %v6083_v51 = vrot.slane %v9788_v33, 1 }
 0x25f   : > { %v9840_v13 = vsel %vm5038_vm8, %v5724_v5, %v5723_v23  ;;  %v5795_v11 = vsel %vm5035_vm7, %v5794_v46, %v9733_v28  ;;  %v5867_v35 = vsel %vm5035_vm7, %v5866_v41, %v9744_v54  ;;  %v9847_v20 = vsel %vm5038_vm8, %v6012_v26, %v6011_v44  ;;  %v11259_v46 = vld [vmem:[#allocation20_spill] sm:$0xff] }
 0x260   : > { %v9850_v39 = vsel %vm5038_vm8, %v5796_v58, %v5795_v11  ;;  %v9853_v21 = vsel %vm5038_vm8, %v5868_v16, %v5867_v35  ;;  %v5939_v50 = vsel %vm5035_vm7, %v5938_v4, %v9757_v36  ;;  %v6084_v12 = vsel %vm5035_vm7, %v6083_v51, %v6082_v43 }
 0x261   : > { %v9859_v6 = vsel %vm5038_vm8, %v5940_v53, %v5939_v50  ;;  %v9863_v28 = vsel %vm5038_vm8, %v9207_v34, %v6084_v12  ;;  %v5022_v54 = vrot.slane %v8990_v17, 7  ;;  %v5636_v5 = vrot.slane %v8997_v55, 7 }
 0x262   : > { %v5025_v53 = vrot.slane %v9059_v37, 6  ;;  %v5638_v26 = vrot.slane %v9071_v31, 6  ;;  %v5640_v49 = vrot.slane %v9158_v52, 5  ;;  %v5642_v32 = vrot.slane %v9255_v18, 4  ;;  %v11257_v52 = vld [vmem:[#allocation13_spill] sm:$0xff] }
 0x263   : > { %v5024_v60 = vsel %vm5023_vm3, %v5022_v54, %v8942_v48  ;;  %v9881_v55 = vsel %vm5023_vm3, %v5636_v5, %v8956_v62  ;;  %v5416_v51 = vrot.slane %v9356_v10, 3  ;;  %v5646_v62 = vrot.slane %v11259_v46, 2 }
 0x264   : > { %v5027_v44 = vsel %vm5026_vm4, %v5025_v53, %v5024_v60  ;;  %v5028_v60 = vrot.slane %v9149_v56, 5 }
 0x267   : > { %v9866_v14 = vpop.f32.mrb[40].mxu0 }
 0x268   : > { %v6922_v58 = vpop.f32.mrb[41].mxu0 }
 0x269   : > { %v9869_v16 = vpop.f32.mrb[42].mxu0 }
 0x26a   : > { %11247 = vst [vmem:[#allocation41_spill] sm:$0xff] %v9869_v16  ;;  %v6923_v9 = vpop.f32.mrb[43].mxu0 }
 0x270   : > { %v9903_v4 = vpop.f32.mrb[44].mxu1 }
 0x271   : > { %v6844_v17 = vpop.f32.mrb[45].mxu1  ;;  %v5558_v43 = vsel %vm5041_vm9, %v9903_v4, %v9805_v3  ;;  %v5119_v36 = vrot.slane %v9903_v4, 2  ;;  %v5192_v12 = vrot.slane %v9903_v4, 3  ;;  %v5265_v54 = vrot.slane %v9903_v4, 4 }
 0x272   : > { %5589 = vrot.lane.b32.xlu1 %v5558_v43, %s7167_s29  ;;  %v9912_v58 = vpop.f32.mrb[46].mxu1  ;;  %v5338_v9 = vrot.slane %v9903_v4, 5  ;;  %v5411_v5 = vrot.slane %v9903_v4, 6  ;;  %v5484_v17 = vrot.slane %v9903_v4, 7 }
 0x273   : > { %v6845_v50 = vpop.f32.mrb[47].mxu1  ;;  %v5120_v3 = vsel %vm5041_vm9, %v5119_v36, %v9808_v25  ;;  %v5193_v23 = vsel %vm5041_vm9, %v5192_v12, %v9811_v24  ;;  %v5266_v43 = vsel %vm5041_vm9, %v5265_v54, %v9814_v59  ;;  %v5726_v35 = vrot.slane %v9912_v58, 2 }
 0x274   : > { %v9927_v11 = vsel %vm5041_vm9, %v5338_v9, %v9825_v2  ;;  %v9931_v41 = vsel %vm5041_vm9, %v5411_v5, %v9819_v45  ;;  %v9935_v53 = vsel %vm5041_vm9, %v5484_v17, %v9829_v15  ;;  %v5798_v25 = vrot.slane %v9912_v58, 3  ;;  %v11248_v17 = vld [vmem:[#allocation31_spill] sm:$0xff] }
 0x275   : > { %v9940_v24 = vsel %vm5041_vm9, %v5726_v35, %v9840_v13  ;;  %v5870_v59 = vrot.slane %v9912_v58, 4  ;;  %v5942_v36 = vrot.slane %v9912_v58, 5  ;;  %v6014_v2 = vrot.slane %v9912_v58, 6 }
 0x276   : > { %5151 = vrot.lane.b32.xlu1 %v5120_v3, %s7168_s30  ;;  %v9948_v45 = vsel %vm5041_vm9, %v5798_v25, %v9850_v39  ;;  %v6086_v15 = vrot.slane %v9912_v58, 7  ;;  %v5031_v50 = vrot.slane %v9238_v63, 4  ;;  %v5034_v39 = vrot.slane %v9328_v22, 3 }
 0x277   : > { %v9955_v13 = vsel %vm5041_vm9, %v5870_v59, %v9853_v21  ;;  %v9959_v35 = vsel %vm5041_vm9, %v5942_v36, %v9859_v6  ;;  %v9963_v12 = vsel %vm5041_vm9, %v6014_v2, %v9847_v20  ;;  %v5030_v63 = vsel %vm5029_vm5, %v5028_v60, %v5027_v44  ;;  %v11250_v36 = vld [vmem:[#allocation21_spill] sm:$0xff] }
 0x278   : > { %v9969_v56 = vsel %vm5041_vm9, %v6086_v15, %v9863_v28  ;;  %v5037_v21 = vrot.slane %v9365_v47, 2  ;;  %v5033_v9 = vsel %vm5032_vm6, %v5031_v50, %v5030_v63  ;;  %v5040_v20 = vrot.slane %v9422_v27, 1  ;;  %v11249_v28 = vld [vmem:[#allocation17_spill] sm:$0xff]  ;;  %v11251_v15 = vld [vmem:[#allocation30_spill] sm:$0xff]  ;;  %v11252_v63 = vld [vmem:[#allocation35_spill] sm:$0xff] }
 0x279   : > { %v5121_v25 = vrot.slane %v11249_v28, 1  ;;  %v5123_v44 = vrot.slane %v9356_v10, 7  ;;  %v5036_v47 = vsel %vm5035_vm7, %v5034_v39, %v5033_v9  ;;  %v5194_v50 = vrot.slane %v11249_v28, 2 }
 0x27a   : > { %5224 = vrot.lane.b32.xlu1 %v5193_v23, %s7169_s14  ;;  %v5267_v54 = vrot.slane %v11249_v28, 3  ;;  %v5039_v22 = vsel %vm5038_vm8, %v5037_v21, %v5036_v47  ;;  %v5270_v2 = vrot.slane %v9356_v10, 1  ;;  %v5413_v9 = vrot.slane %v11249_v28, 5 }
 0x27b   : > { %v9978_v3 = vpop.f32.mrb[44].mxu0  ;;  %v5042_v48 = vsel %vm5041_vm9, %v5040_v20, %v5039_v22  ;;  %v5343_v20 = vrot.slane %v9356_v10, 2 }
 0x27c   : > { %v6934_v59 = vpop.f32.mrb[45].mxu0  ;;  %5089 = vst.msk [vmem:[#allocation2] sm:$0xff] %vm3395_vm13, %v5042_v48 }
 0x27d   : > { %v9989_v5 = vpop.f32.mrb[46].mxu0 }
 0x27e   : > { %11253 = vst [vmem:[#allocation37_spill] sm:$0xff] %v9989_v5  ;;  %v6935_v59 = vpop.f32.mrb[47].mxu0  ;;  %5297 = vrot.lane.b32.xlu1 %v5266_v43, %s7170_s15  ;;  %v5639_v43 = vsel %vm5026_vm4, %v5638_v26, %v9881_v55  ;;  %v11255_v26 = vld [vmem:[#allocation23_spill] sm:$0xff] }
 0x27f   : > { %v5340_v59 = vrot.slane %v11249_v28, 4  ;;  %v5641_v6 = vsel %vm5029_vm5, %v5640_v49, %v5639_v43  ;;  %v11256_v43 = vld [vmem:[#allocation29_spill] sm:$0xff] }
 0x280   : > { %v10035_v49 = vsel %vm5032_vm6, %v5642_v32, %v5641_v6 }
 0x282   : > { %5370 = vrot.lane.b32.xlu1 %v9927_v11, %s7171_s16  ;;  %v10027_v47 = vpop.permute.xlu0 %5587 }
 0x286   : > { %5443 = vrot.lane.b32.xlu1 %v9931_v41, %s7172_s18  ;;  %v5150_v22 = vpop.permute.xlu0 %5149 }
 0x287   : > { %5162 = vst.msk [vmem:[#allocation2] sm:$0xff] %vm5161_vm0, %v5150_v22 }
 0x28a   : > { %5516 = vrot.lane.b32.xlu1 %v9935_v53, %s7173_s19  ;;  %v5223_v22 = vpop.permute.xlu0 %5222  ;;  %v11258_v53 = vld [vmem:[#allocation19_spill] sm:$0xff] }
 0x28b   : > { %v10062_v11 = vpop.f32.mrb[48].mxu1  ;;  %5235 = vst.msk [vmem:[#allocation2] sm:$0xff] %vm5234_vm10, %v5223_v22  ;;  %v5644_v31 = vrot.slane %v11258_v53, 3 }
 0x28c   : > { %v6856_v18 = vpop.f32.mrb[49].mxu1  ;;  %v5122_v55 = vsel %vm5023_vm3, %v10062_v11, %v5121_v25  ;;  %v5195_v21 = vrot.slane %v10062_v11, 1  ;;  %v5268_v6 = vrot.slane %v10062_v11, 2  ;;  %v5414_v48 = vrot.slane %v10062_v11, 4 }
 0x28d   : > { %v10076_v60 = vpop.f32.mrb[50].mxu1  ;;  %v10081_v32 = vsel %vm5026_vm4, %v5123_v44, %v5122_v55  ;;  %v5341_v18 = vrot.slane %v10062_v11, 3  ;;  %v5487_v25 = vrot.slane %v10062_v11, 5 }
 0x28e   : > { %v5801_v41 = vrot.slane %v10076_v60, 1  ;;  %v5873_v37 = vrot.slane %v10076_v60, 2  ;;  %v5945_v22 = vrot.slane %v10076_v60, 3  ;;  %v6857_v53 = vpop.f32.mrb[51].mxu1  ;;  %v6017_v27 = vrot.slane %v10076_v60, 4  ;;  %5758 = vrot.lane.b32.xlu1 %v9940_v24, %s7168_s30  ;;  %v5296_v23 = vpop.permute.xlu0 %5295 }
 0x28f   : > { %v6089_v44 = vrot.slane %v10076_v60, 5  ;;  %v5196_v55 = vsel %vm5023_vm3, %v5195_v21, %v5194_v50  ;;  %v5269_v38 = vsel %vm5023_vm3, %v5268_v6, %v5267_v54  ;;  %v5342_v24 = vsel %vm5023_vm3, %v5341_v18, %v5340_v59  ;;  %5308 = vst.msk [vmem:[#allocation2] sm:$0xff] %vm5307_vm11, %v5296_v23 }
 0x290   : > { %v5197_v53 = vsel %vm5026_vm4, %v9356_v10, %v5196_v55  ;;  %v5271_v46 = vsel %vm5026_vm4, %v5270_v2, %v5269_v38  ;;  %v5415_v50 = vsel %vm5023_vm3, %v5414_v48, %v5413_v9  ;;  %v5344_v54 = vsel %vm5026_vm4, %v5343_v20, %v5342_v24  ;;  %v7012_v24 = vld [vmem:[%s11073_s9] sm:$0xff]  }
 0x291   : > { %v5417_v21 = vsel %vm5026_vm4, %v5416_v51, %v5415_v50  ;;  %v11260_v38 = vrot.slane %v11249_v28, 6  ;;  %v11261_v59 = vrot.slane %v9289_v0, 1  ;;  %v11262_v9 = vrot.slane %v9356_v10, 4  ;;  %6272 = vmatpush1.bf16.msra.mxu0 %v7012_v24 }
 0x292   : > { %v11263_v48 = vrot.slane %v9358_v57, 7  ;;  %v11264_v51 = vrot.slane %v9289_v0, 2  ;;  %5830 = vrot.lane.b32.xlu1 %v9948_v45, %s7169_s14 }
 0x293   : > { %v5488_v2 = vsel %vm5023_vm3, %v5487_v25, %v11260_v38  ;;  %v5729_v6 = vsel %vm5023_vm3, %v10076_v60, %v11261_v59  ;;  %v11265_v25 = vrot.slane %v9289_v0, 3  ;;  %v11266_v38 = vrot.slane %v9358_v57, 1 }
 0x294   : > { %v5490_v23 = vsel %vm5026_vm4, %v11262_v9, %v5488_v2  ;;  %v10131_v20 = vsel %vm5026_vm4, %v11263_v48, %v5729_v6  ;;  %v5802_v18 = vsel %vm5023_vm3, %v5801_v41, %v11264_v51  ;;  %v11267_v41 = vrot.slane %v9289_v0, 4  ;;  %v5369_v9 = vpop.permute.xlu0 %5368 }
 0x295   : > { %v5874_v55 = vsel %vm5023_vm3, %v5873_v37, %v11265_v25  ;;  %v5803_v50 = vsel %vm5026_vm4, %v9358_v57, %v5802_v18  ;;  %v11268_v37 = vrot.slane %v9289_v0, 5  ;;  %v11269_v48 = vrot.slane %v9358_v57, 2  ;;  %5381 = vst.msk [vmem:[#allocation2] sm:$0xff] %vm5380_vm12, %v5369_v9 }
 0x296   : > { %v5876_v2 = vsel %vm5026_vm4, %v11266_v38, %v5874_v55  ;;  %v5946_v59 = vsel %vm5023_vm3, %v5945_v22, %v11267_v41  ;;  %v11270_v51 = vrot.slane %v9358_v57, 3  ;;  %v11271_v25 = vrot.slane %v9289_v0, 6  ;;  %5902 = vrot.lane.b32.xlu1 %v9955_v13, %s7170_s15 }
 0x297   : > { %v6018_v6 = vsel %vm5023_vm3, %v6017_v27, %v11268_v37  ;;  %v10158_v45 = vsel %vm5026_vm4, %v11269_v48, %v5946_v59  ;;  %v5560_v22 = vrot.slane %v10062_v11, 6  ;;  %v11272_v27 = vrot.slane %v9358_v57, 4  ;;  %v7013_v48 = vld [vmem:[%s11073_s9 + $0x8] sm:$0xff]  }
 0x298   : > { %v10163_v18 = vsel %vm5026_vm4, %v11270_v51, %v6018_v6  ;;  %v6090_v55 = vsel %vm5023_vm3, %v6089_v44, %v11271_v25  ;;  %v5645_v41 = vsel %vm5035_vm7, %v5644_v31, %v10035_v49  ;;  %v11273_v59 = vmov 0   ;;  %v10179_v6 = vpop.f32.mrb[52].mxu1 }
 0x299   : > { %v10173_v38 = vsel %vm5026_vm4, %v11272_v27, %v6090_v55  ;;  %6273 = vmatprep.subr.bf16.mxu0 %v11273_v59  ;;  %v11274_v44 = vrot.slane %v11249_v28, 7  ;;  %v5647_v24 = vsel %vm5038_vm8, %v5646_v62, %v5645_v41  ;;  %v6868_v51 = vpop.f32.mrb[53].mxu1  ;;  %v5125_v31 = vrot.slane %v10179_v6, 6 }
 0x29a   : > { %v5198_v49 = vrot.slane %v10179_v6, 7  ;;  %v5272_v25 = vsel %vm5029_vm5, %v10179_v6, %v5271_v46  ;;  %v5345_v55 = vrot.slane %v10179_v6, 1  ;;  %v10195_v27 = vpop.f32.mrb[54].mxu1  ;;  %v11275_v62 = vrot.slane %v11250_v36, 7  ;;  %6274 = vmatpush1.bf16.msra.mxu0 %v7013_v48  ;;  %5974 = vrot.lane.b32.xlu1 %v9959_v35, %s7171_s16 }
 0x29b   : > { %v5561_v9 = vsel %vm5023_vm3, %v5560_v22, %v11274_v44  ;;  %v5442_v22 = vpop.permute.xlu0 %5441  ;;  %v5418_v44 = vrot.slane %v10179_v6, 2  ;;  %v5491_v51 = vrot.slane %v10179_v6, 3  ;;  %v11276_v13 = vrot.slane %v9356_v10, 5  ;;  %v6869_v46 = vpop.f32.mrb[55].mxu1  ;;  %6275 = vmatprep.subr.bf16.mxu0 %v11273_v59 }
 0x29c   : > { %v10200_v41 = vsel %vm5032_vm6, %v11275_v62, %v5272_v25  ;;  %5454 = vst.msk [vmem:[#allocation2] sm:$0xff] %vm5453_vm14, %v5442_v22  ;;  %v5126_v39 = vsel %vm5029_vm5, %v5125_v31, %v10081_v32  ;;  %v5199_v29 = vsel %vm5029_vm5, %v5198_v49, %v5197_v53  ;;  %v5346_v25 = vsel %vm5029_vm5, %v5345_v55, %v5344_v54  ;;  %v11277_v62 = vld [vmem:[#allocation28_spill] sm:$0xff]  ;;  %v7014_v54 = vld [vmem:[%s11073_s9 + $0x10] sm:$0xff]  }
 0x29d   : > { %v5563_v37 = vsel %vm5026_vm4, %v11276_v13, %v5561_v9  ;;  %v5648_v5 = vrot.slane %v11277_v62, 1  ;;  %v11278_v57 = vrot.slane %v11250_v36, 5  ;;  %v11279_v9 = vrot.slane %v11250_v36, 6 }
 0x29e   : > { %v10226_v32 = vsel %vm5032_vm6, %v11250_v36, %v5346_v25  ;;  %v5419_v53 = vsel %vm5029_vm5, %v5418_v44, %v5417_v21  ;;  %v5732_v31 = vrot.slane %v10195_v27, 6  ;;  %v5804_v49 = vrot.slane %v10195_v27, 7  ;;  %6276 = vmatpush1.bf16.msra.mxu0 %v7014_v54  ;;  %6046 = vrot.lane.b32.xlu1 %v9963_v12, %s7172_s18 }
 0x29f   : > { %v10217_v16 = vsel %vm5032_vm6, %v11278_v57, %v5126_v39  ;;  %v10222_v48 = vsel %vm5032_vm6, %v11279_v9, %v5199_v29  ;;  %v11280_v57 = vrot.slane %v11250_v36, 1  ;;  %v5492_v29 = vsel %vm5029_vm5, %v5491_v51, %v5490_v23  ;;  %v5515_v55 = vpop.permute.xlu0 %5514  ;;  %6277 = vmatprep.subr.bf16.mxu0 %v11273_v59 }
 0x2a0   : > { %v11281_v21 = vrot.slane %v11250_v36, 2  ;;  %v5877_v44 = vsel %vm5029_vm5, %v10195_v27, %v5876_v2  ;;  %v5949_v35 = vrot.slane %v10195_v27, 1  ;;  %v6021_v13 = vrot.slane %v10195_v27, 2  ;;  %5527 = vst.msk [vmem:[#allocation2] sm:$0xff] %vm5526_vm15, %v5515_v55 }
 0x2a1   : > { %v5421_v39 = vsel %vm5032_vm6, %v11280_v57, %v5419_v53  ;;  %v5733_v23 = vsel %vm5029_vm5, %v5732_v31, %v10131_v20  ;;  %v5805_v51 = vsel %vm5029_vm5, %v5804_v49, %v5803_v50  ;;  %v11282_v46 = vrot.slane %v9379_v8, 7  ;;  %5600 = vst.msk [vmem:[#allocation2] sm:$0xff] %vm11146_vm1, %v10027_v47  ;;  %v7015_v47 = vld [vmem:[%s11073_s9 + $0x18] sm:$0xff]  }
 0x2a2   : > { %v10243_v22 = vsel %vm5032_vm6, %v11281_v21, %v5492_v29  ;;  %v6093_v62 = vrot.slane %v10195_v27, 3  ;;  %v11283_v2 = vrot.slane %v9379_v8, 5  ;;  %v11284_v20 = vrot.slane %v9379_v8, 6  ;;  %6278 = vmatpush1.bf16.msra.mxu0 %v7015_v47  ;;  %v11292_v47 = vld [vmem:[#allocation18_spill] sm:$0xff]  ;;  %6118 = vrot.lane.b32.xlu1 %v9969_v56, %s7173_s19  ;;  %v7017_v56 = vld [vmem:[%s11073_s9 + $0x28] sm:$0xff]  }
 0x2a3   : > { %v10256_v25 = vsel %vm5032_vm6, %v11282_v46, %v5877_v44  ;;  %v5950_v53 = vsel %vm5029_vm5, %v5949_v35, %v10158_v45  ;;  %v6022_v54 = vsel %vm5029_vm5, %v6021_v13, %v10163_v18  ;;  %v11285_v29 = vrot.slane %v9379_v8, 1  ;;  %v5757_v49 = vpop.permute.xlu0 %5756  ;;  %v11287_v44 = vld [vmem:[#allocation16_spill] sm:$0xff]  ;;  %6279 = vmatprep.subr.bf16.mxu0 %v11273_v59 }
 0x2a4   : > { %v10265_v9 = vsel %vm5032_vm6, %v11283_v2, %v5733_v23  ;;  %v10270_v50 = vsel %vm5032_vm6, %v11284_v20, %v5805_v51  ;;  %v10283_v57 = vsel %vm5032_vm6, %v9379_v8, %v5950_v53  ;;  %v6094_v45 = vsel %vm5029_vm5, %v6093_v62, %v10173_v38  ;;  %v11289_v23 = vld [vmem:[#allocation34_spill] sm:$0xff]  ;;  %v7016_v38 = vld [vmem:[%s11073_s9 + $0x20] sm:$0xff]   ;;  %v10313_v2 = vpop.f32.mrb[56].mxu1 }
 0x2a5   : > { %v6024_v31 = vsel %vm5032_vm6, %v11285_v29, %v6022_v54  ;;  %v5564_v18 = vrot.slane %v10179_v6, 4  ;;  %v11286_v55 = vrot.slane %v9379_v8, 2  ;;  %v5649_v12 = vsel %vm5041_vm9, %v5648_v5, %v5647_v24 }
 0x2a6   : > { %v11288_v35 = vrot.slane %v9536_v40, 7  ;;  %v5047_v51 = vrot.slane %v11289_v23, 5  ;;  %v5057_v46 = vrot.slane %v10062_v11, 7  ;;  %5696 = vst.msk [vmem:[#allocation2 + $0x8] sm:$0xff] %vm3395_vm13, %v5649_v12  ;;  %v11290_v5 = vrot.slane %v9005_v30, 6  ;;  %6280 = vmatpush1.bf16.msra.mxu0 %v7016_v38 }
 0x2a7   : > { %v10294_v21 = vsel %vm5032_vm6, %v11286_v55, %v6094_v45  ;;  %v5565_v62 = vsel %vm5029_vm5, %v5564_v18, %v5563_v37  ;;  %v5051_v40 = vrot.slane %v9778_v7, 3  ;;  %v11291_v20 = vrot.slane %v11250_v36, 3  ;;  %5768 = vst.msk [vmem:[#allocation2 + $0x8] sm:$0xff] %vm5161_vm0, %v5757_v49  ;;  %v6880_v45 = vpop.f32.mrb[57].mxu1  ;;  %v5829_v49 = vpop.permute.xlu0 %5828  ;;  %6281 = vmatprep.subr.bf16.mxu0 %v11273_v59 }
 0x2a8   : > { %v5044_v13 = vsel %vm5023_vm3, %v11288_v35, %v11287_v44  ;;  %v5055_v54 = vrot.slane %v9903_v4, 1  ;;  %v11293_v30 = vrot.slane %v9551_v61, 7  ;;  %v5129_v18 = vrot.slane %v10313_v2, 4  ;;  %v10331_v35 = vpop.f32.mrb[58].mxu1  ;;  %5840 = vst.msk [vmem:[#allocation2 + $0x8] sm:$0xff] %vm5234_vm10, %v5829_v49 }
 0x2a9   : > { %v5046_v24 = vsel %vm5026_vm4, %v11290_v5, %v5044_v13  ;;  %v5567_v53 = vsel %vm5032_vm6, %v11291_v20, %v5565_v62  ;;  %v5202_v55 = vrot.slane %v10313_v2, 5  ;;  %v5275_v12 = vrot.slane %v10313_v2, 6  ;;  %v6881_v5 = vpop.f32.mrb[59].mxu1 }
 0x2aa   : > { %v5048_v37 = vsel %vm5029_vm5, %v5047_v51, %v5046_v24  ;;  %v5651_v29 = vsel %vm5023_vm3, %v11293_v30, %v11292_v47  ;;  %v5348_v44 = vrot.slane %v10313_v2, 7  ;;  %v5422_v61 = vsel %vm5035_vm7, %v10313_v2, %v5421_v39  ;;  %6282 = vmatpush1.bf16.msra.mxu0 %v7017_v56 }
 0x2ab   : > { %v5495_v13 = vrot.slane %v10313_v2, 1  ;;  %v5568_v23 = vrot.slane %v10313_v2, 2  ;;  %v11294_v51 = vrot.slane %v11257_v52, 4  ;;  %v5130_v24 = vsel %vm5035_vm7, %v5129_v18, %v10217_v16  ;;  %v5901_v49 = vpop.permute.xlu0 %5900  ;;  %6283 = vmatprep.subr.bf16.mxu0 %v11273_v59 }
 0x2ac   : > { %v5203_v39 = vsel %vm5035_vm7, %v5202_v55, %v10222_v48  ;;  %v5276_v20 = vsel %vm5035_vm7, %v5275_v12, %v10200_v41  ;;  %v5349_v52 = vsel %vm5035_vm7, %v5348_v44, %v10226_v32  ;;  %v11295_v38 = vrot.slane %v11251_v15, 3  ;;  %5912 = vst.msk [vmem:[#allocation2 + $0x8] sm:$0xff] %vm5307_vm11, %v5901_v49 }
 0x2ad   : > { %v5050_v62 = vsel %vm5032_vm6, %v11294_v51, %v5048_v37  ;;  %v11296_v47 = vrot.slane %v11251_v15, 4  ;;  %v11297_v48 = vrot.slane %v11251_v15, 5  ;;  %v11298_v41 = vrot.slane %v11251_v15, 6 }
 0x2ae   : > { %v10356_v37 = vsel %vm5038_vm8, %v11295_v38, %v5130_v24  ;;  %v11299_v45 = vrot.slane %v11251_v15, 7  ;;  %v5496_v55 = vsel %vm5035_vm7, %v5495_v13, %v10243_v22  ;;  %v5736_v12 = vrot.slane %v10331_v35, 4  ;;  %v7018_v22 = vld [vmem:[%s11073_s9 + $0x30] sm:$0xff]  }
 0x2af   : > { %v10361_v16 = vsel %vm5038_vm8, %v11296_v47, %v5203_v39  ;;  %v10366_v30 = vsel %vm5038_vm8, %v11297_v48, %v5276_v20  ;;  %v10371_v32 = vsel %vm5038_vm8, %v11298_v41, %v5349_v52  ;;  %v5808_v44 = vrot.slane %v10331_v35, 5  ;;  %6284 = vmatpush1.bf16.msra.mxu0 %v7018_v22 }
 0x2b0   : > { %v10376_v18 = vsel %vm5038_vm8, %v11299_v45, %v5422_v61  ;;  %v10384_v51 = vsel %vm5038_vm8, %v11251_v15, %v5496_v55  ;;  %v5880_v5 = vrot.slane %v10331_v35, 6  ;;  %v5952_v24 = vrot.slane %v10331_v35, 7  ;;  %6285 = vmatprep.subr.bf16.mxu0 %v11273_v59 }
 0x2b1   : > { %v6025_v61 = vsel %vm5035_vm7, %v10331_v35, %v6024_v31  ;;  %v5737_v13 = vsel %vm5035_vm7, %v5736_v12, %v10265_v9  ;;  %v5809_v39 = vsel %vm5035_vm7, %v5808_v44, %v10270_v50  ;;  %v11300_v20 = vrot.slane %v11255_v26, 7 }
 0x2b2   : > { %v6097_v31 = vrot.slane %v10331_v35, 1  ;;  %v11301_v56 = vrot.slane %v11255_v26, 3  ;;  %v11302_v47 = vrot.slane %v11255_v26, 4  ;;  %v5881_v50 = vsel %vm5035_vm7, %v5880_v5, %v10256_v25 }
 0x2b3   : > { %v10401_v52 = vsel %vm5038_vm8, %v11300_v20, %v6025_v61  ;;  %v5953_v48 = vsel %vm5035_vm7, %v5952_v24, %v10283_v57  ;;  %v11303_v41 = vrot.slane %v11255_v26, 5  ;;  %v11304_v55 = vrot.slane %v11255_v26, 6  ;;  %v5973_v61 = vpop.permute.xlu0 %5972 }
 0x2b4   : > { %v10408_v38 = vsel %vm5038_vm8, %v11301_v56, %v5737_v13  ;;  %v10413_v9 = vsel %vm5038_vm8, %v11302_v47, %v5809_v39  ;;  %v6098_v44 = vsel %vm5035_vm7, %v6097_v31, %v10294_v21  ;;  %v5569_v49 = vsel %vm5035_vm7, %v5568_v23, %v5567_v53  ;;  %5984 = vst.msk [vmem:[#allocation2 + $0x8] sm:$0xff] %vm5380_vm12, %v5973_v61  ;;  %v7019_v21 = vld [vmem:[%s11073_s9 + $0x38] sm:$0xff]  }
 0x2b5   : > { %v10422_v45 = vsel %vm5038_vm8, %v11303_v41, %v5881_v50  ;;  %v10427_v12 = vsel %vm5038_vm8, %v11304_v55, %v5953_v48  ;;  %v5664_v25 = vrot.slane %v10076_v60, 7  ;;  %v10435_v57 = vsel %vm5038_vm8, %v11255_v26, %v6098_v44  ;;  %6286 = vmatpush1.bf16.msra.mxu0 %v7019_v21 }
 0x2b6   : > { %v11305_v5 = vrot.slane %v11251_v15, 1  ;;  %v5052_v13 = vsel %vm5035_vm7, %v5051_v40, %v5050_v62  ;;  %v11306_v53 = vrot.slane %v9199_v1, 2  ;;  %v11307_v39 = vrot.slane %v9025_v19, 6  ;;  %6287 = vmatprep.subr.bf16.mxu0 %v11273_v59 }
 0x2b7   : > { %v5658_v7 = vrot.slane %v9788_v33, 3  ;;  %v5662_v40 = vrot.slane %v9912_v58, 1  ;;  %v11308_v22 = vrot.slane %v11248_v17, 5  ;;  %v5058_v31 = vsel %vm5023_vm3, %v5057_v46, %v11249_v28  ;;  %v6045_v33 = vpop.permute.xlu0 %6044 }
 0x2b8   : > { %v5571_v24 = vsel %vm5038_vm8, %v11305_v5, %v5569_v49  ;;  %v5054_v23 = vsel %vm5038_vm8, %v11306_v53, %v5052_v13  ;;  %v5653_v20 = vsel %vm5026_vm4, %v11307_v39, %v5651_v29  ;;  %v5061_v19 = vrot.slane %v10179_v6, 5  ;;  %v10467_v29 = vpop.f32.mrb[60].mxu1  ;;  %6056 = vst.msk [vmem:[#allocation2 + $0x8] sm:$0xff] %vm5453_vm14, %v6045_v33 }
 0x2b9   : > { %v5056_v62 = vsel %vm5041_vm9, %v5055_v54, %v5054_v23  ;;  %v5655_v1 = vsel %vm5029_vm5, %v11308_v22, %v5653_v20  ;;  %v11309_v4 = vrot.slane %v9112_v42, 4  ;;  %v11310_v17 = vrot.slane %v9356_v10, 6  ;;  %v6892_v28 = vpop.f32.mrb[61].mxu1  ;;  %v7020_v42 = vld [vmem:[%s11073_s9 + $0x40] sm:$0xff]  }
 0x2ba   : > { %5090 = vst.msk [vmem:[#allocation2 + $0x10] sm:$0xff] %vm3395_vm13, %v5056_v62  ;;  %v5063_v56 = vrot.slane %v11250_v36, 4  ;;  %v5065_v11 = vrot.slane %v10313_v2, 3  ;;  %v5133_v6 = vrot.slane %v10467_v29, 2  ;;  %v5206_v46 = vrot.slane %v10467_v29, 3  ;;  %v10486_v10 = vpop.f32.mrb[62].mxu1  ;;  %6288 = vmatpush1.bf16.msra.mxu0 %v7020_v42 }
 0x2bb   : > { %v5657_v58 = vsel %vm5032_vm6, %v11309_v4, %v5655_v1  ;;  %v5060_v54 = vsel %vm5026_vm4, %v11310_v17, %v5058_v31  ;;  %v5279_v47 = vrot.slane %v10467_v29, 4  ;;  %v5352_v50 = vrot.slane %v10467_v29, 5  ;;  %v6893_v55 = vpop.f32.mrb[63].mxu1  ;;  %v6117_v21 = vpop.permute.xlu0 %6116  ;;  %6289 = vmatprep.subr.bf16.mxu0 %v11273_v59 }
 0x2bc   : > { %v5425_v36 = vrot.slane %v10467_v29, 6  ;;  %v5498_v2 = vrot.slane %v10467_v29, 7  ;;  %v10492_v48 = vsel %vm5041_vm9, %v10467_v29, %v5571_v24  ;;  %v5659_v41 = vsel %vm5035_vm7, %v5658_v7, %v5657_v58  ;;  %6128 = vst.msk [vmem:[#allocation2 + $0x8] sm:$0xff] %vm5526_vm15, %v6117_v21 }
 0x2bd   : > { %v5134_v44 = vsel %vm5041_vm9, %v5133_v6, %v10356_v37  ;;  %v5207_v49 = vsel %vm5041_vm9, %v5206_v46, %v10361_v16  ;;  %v5280_v61 = vsel %vm5041_vm9, %v5279_v47, %v10366_v30  ;;  %v10504_v5 = vsel %vm5041_vm9, %v5352_v50, %v10371_v32  ;;  %v11312_v6 = vld [vmem:[#allocation41_spill] sm:$0xff]  ;;  %v11313_v47 = vld [vmem:[#allocation27_spill] sm:$0xff] }
 0x2be   : > { %5153 = vrot.lane.b32.xlu0 %v5134_v44, %s7168_s30  ;;  %v10509_v24 = vsel %vm5041_vm9, %v5425_v36, %v10376_v18  ;;  %v10513_v13 = vsel %vm5041_vm9, %v5498_v2, %v10384_v51  ;;  %v5740_v37 = vrot.slane %v10486_v10, 2  ;;  %v5812_v16 = vrot.slane %v10486_v10, 3  ;;  %v7021_v18 = vld [vmem:[%s11073_s9 + $0x48] sm:$0xff]   ;;  %v11315_v36 = vld [vmem:[#allocation37_spill] sm:$0xff] }
 0x2bf   : > { %v5884_v30 = vrot.slane %v10486_v10, 4  ;;  %v5956_v32 = vrot.slane %v10486_v10, 5  ;;  %v6028_v53 = vrot.slane %v10486_v10, 6  ;;  %v6100_v23 = vrot.slane %v10486_v10, 7  ;;  %6290 = vmatpush1.bf16.msra.mxu0 %v7021_v18 }
 0x2c0   : > { %v10527_v51 = vsel %vm5041_vm9, %v5740_v37, %v10408_v38  ;;  %v10531_v39 = vsel %vm5041_vm9, %v5812_v16, %v10413_v9  ;;  %v11311_v20 = vrot.slane %v9207_v34, 2  ;;  %v5062_v62 = vsel %vm5029_vm5, %v5061_v19, %v5060_v54  ;;  %6291 = vmatprep.subr.bf16.mxu0 %v11273_v59  ;;  %v10601_v37 = vpop.f32.mrb[64].mxu1 }
 0x2c1   : > { %v10540_v22 = vsel %vm5041_vm9, %v5884_v30, %v10422_v45  ;;  %v10544_v38 = vsel %vm5041_vm9, %v5956_v32, %v10427_v12  ;;  %v10548_v9 = vsel %vm5041_vm9, %v6028_v53, %v10401_v52  ;;  %v10552_v34 = vsel %vm5041_vm9, %v6100_v23, %v10435_v57  ;;  %v6904_v53 = vpop.f32.mrb[65].mxu1 }
 0x2c2   : > { %v5661_v7 = vsel %vm5038_vm8, %v11311_v20, %v5659_v41  ;;  %5226 = vrot.lane.b32.xlu0 %v5207_v49, %s7169_s14  ;;  %v5064_v31 = vsel %vm5032_vm6, %v5063_v56, %v5062_v62  ;;  %v5067_v45 = vrot.slane %v11251_v15, 2  ;;  %v5069_v19 = vrot.slane %v10467_v29, 1  ;;  %v10618_v62 = vpop.f32.mrb[66].mxu1 }
 0x2c3   : > { %v5663_v1 = vsel %vm5041_vm9, %v5662_v40, %v5661_v7  ;;  %v5668_v12 = vrot.slane %v10195_v27, 5  ;;  %v5500_v33 = vrot.slane %v11256_v43, 6  ;;  %v5503_v52 = vrot.slane %v11252_v63, 4  ;;  %v7022_v40 = vld [vmem:[%s11073_s9 + $0x50] sm:$0xff]  }
 0x2c4   : > { %5697 = vst.msk [vmem:[#allocation2 + $0x18] sm:$0xff] %vm3395_vm13, %v5663_v1  ;;  %v5066_v57 = vsel %vm5035_vm7, %v5065_v11, %v5064_v31  ;;  %v5145_v4 = vrot.slane %v9978_v3, 3  ;;  %v5218_v15 = vrot.slane %v9978_v3, 4  ;;  %v5507_v29 = vrot.slane %v9866_v14, 2  ;;  %6292 = vmatpush1.bf16.msra.mxu0 %v7022_v40 }
 0x2c5   : > { %v5068_v27 = vsel %vm5038_vm8, %v5067_v45, %v5066_v57  ;;  %v5291_v58 = vrot.slane %v9978_v3, 5  ;;  %v5665_v54 = vsel %vm5023_vm3, %v5664_v25, %v9289_v0  ;;  %v5672_v56 = vrot.slane %v10331_v35, 3  ;;  %v7023_v25 = vld [vmem:[%s11073_s9 + $0x58] sm:$0xff]   ;;  %6293 = vmatprep.subr.bf16.mxu0 %v11273_v59 }
 0x2c6   : > { %v5070_v17 = vsel %vm5041_vm9, %v5069_v19, %v5068_v27  ;;  %5299 = vrot.lane.b32.xlu0 %v5280_v61, %s7170_s15  ;;  %v5364_v11 = vrot.slane %v9978_v3, 6  ;;  %v5748_v46 = vrot.slane %v11312_v6, 5  ;;  %v11314_v50 = vrot.slane %v11313_v47, 6 }
 0x2c7   : > { %5091 = vst.msk [vmem:[#allocation2 + $0x20] sm:$0xff] %vm3395_vm13, %v5070_v17  ;;  %v5820_v0 = vrot.slane %v11312_v6, 6  ;;  %v5892_v41 = vrot.slane %v11312_v6, 7  ;;  %v6037_v44 = vrot.slane %v11312_v6, 1  ;;  %v11316_v49 = vrot.slane %v9379_v8, 4  ;;  %v6905_v17 = vpop.f32.mrb[67].mxu1 }
 0x2c8   : > { %v5667_v42 = vsel %vm5026_vm4, %v11314_v50, %v5665_v54  ;;  %v6109_v16 = vrot.slane %v11312_v6, 2  ;;  %v5573_v21 = vrot.slane %v11256_v43, 7  ;;  %v5576_v30 = vrot.slane %v11252_v63, 5  ;;  %6294 = vmatpush1.bf16.msra.mxu0 %v7023_v25 }
 0x2c9   : > { %v5669_v2 = vsel %vm5029_vm5, %v5668_v12, %v5667_v42  ;;  %v11317_v23 = vrot.slane %v11256_v43, 1  ;;  %v5209_v18 = vrot.slane %v10601_v37, 1  ;;  %v5282_v20 = vrot.slane %v10601_v37, 2  ;;  %v7024_v12 = vld [vmem:[%s11073_s9 + $0x60] sm:$0xff]   ;;  %6295 = vmatprep.subr.bf16.mxu0 %v11273_v59 }
 0x2ca   : > { %v5671_v61 = vsel %vm5032_vm6, %v11316_v49, %v5669_v2  ;;  %5372 = vrot.lane.b32.xlu0 %v10504_v5, %s7171_s16  ;;  %v5674_v7 = vrot.slane %v11255_v26, 2  ;;  %v11318_v1 = vrot.slane %v11252_v63, 7  ;;  %v5355_v45 = vrot.slane %v10601_v37, 3 }
 0x2cb   : > { %v10607_v32 = vsel %vm5035_vm7, %v5672_v56, %v5671_v61  ;;  %v5136_v8 = vsel %vm5023_vm3, %v10601_v37, %v11317_v23  ;;  %v5428_v5 = vrot.slane %v10601_v37, 4  ;;  %v5501_v19 = vrot.slane %v10601_v37, 5 }
 0x2cc   : > { %v5138_v31 = vsel %vm5026_vm4, %v11318_v1, %v5136_v8  ;;  %v5071_v57 = vrot.slane %v10601_v37, 7  ;;  %v5815_v40 = vrot.slane %v10618_v62, 1  ;;  %v5887_v27 = vrot.slane %v10618_v62, 2  ;;  %6296 = vmatpush1.bf16.msra.mxu0 %v7024_v12 }
 0x2cd   : > { %v5676_v54 = vrot.slane %v10486_v10, 1  ;;  %v5959_v56 = vrot.slane %v10618_v62, 3  ;;  %v6031_v47 = vrot.slane %v10618_v62, 4  ;;  %v11319_v50 = vrot.slane %v11256_v43, 2  ;;  %6297 = vmatprep.subr.bf16.mxu0 %v11273_v59 }
 0x2ce   : > { %v11320_v25 = vrot.slane %v11256_v43, 3  ;;  %5445 = vrot.lane.b32.xlu0 %v10509_v24, %s7172_s18  ;;  %v11321_v61 = vrot.slane %v11252_v63, 1  ;;  %v11322_v23 = vrot.slane %v11256_v43, 4  ;;  %v11325_v24 = vrot.slane %v11252_v63, 3 }
 0x2cf   : > { %v5210_v42 = vsel %vm5023_vm3, %v5209_v18, %v11319_v50  ;;  %v11323_v18 = vrot.slane %v11256_v43, 5  ;;  %v6103_v55 = vrot.slane %v10618_v62, 5  ;;  %v11337_v28 = vrot.slane %v9866_v14, 5 }
 0x2d0   : > { %v5283_v2 = vsel %vm5023_vm3, %v5282_v20, %v11320_v25  ;;  %v5211_v49 = vsel %vm5026_vm4, %v11252_v63, %v5210_v42  ;;  %v5356_v8 = vsel %vm5023_vm3, %v5355_v45, %v11322_v23  ;;  %v11324_v20 = vrot.slane %v11252_v63, 2  ;;  %v11326_v25 = vld [vmem:[#allocation33_spill] sm:$0xff]  ;;  %v11328_v23 = vld [vmem:[#allocation36_spill] sm:$0xff] }
 0x2d1   : > { %v5285_v53 = vsel %vm5026_vm4, %v11321_v61, %v5283_v2  ;;  %v5429_v1 = vsel %vm5023_vm3, %v5428_v5, %v11323_v18  ;;  %v5502_v42 = vsel %vm5023_vm3, %v5501_v19, %v5500_v33  ;;  %v11327_v2 = vrot.slane %v11326_v25, 1  ;;  %v7025_v5 = vld [vmem:[%s11073_s9 + $0x68] sm:$0xff]  }
 0x2d2   : > { %v5358_v17 = vsel %vm5026_vm4, %v11324_v20, %v5356_v8  ;;  %v5431_v50 = vsel %vm5026_vm4, %v11325_v24, %v5429_v1  ;;  %v5504_v61 = vsel %vm5026_vm4, %v5503_v52, %v5502_v42  ;;  %v11329_v8 = vrot.slane %v11328_v23, 7  ;;  %v10684_v20 = vpop.f32.mrb[68].mxu1  ;;  %5518 = vrot.lane.b32.xlu0 %v10513_v13, %s7173_s19  ;;  %6298 = vmatpush1.bf16.msra.mxu0 %v7025_v5 }
 0x2d3   : > { %v5743_v45 = vsel %vm5023_vm3, %v10618_v62, %v11327_v2  ;;  %v11330_v33 = vrot.slane %v11326_v25, 2  ;;  %v11331_v1 = vrot.slane %v11326_v25, 3  ;;  %v11332_v52 = vrot.slane %v11328_v23, 1  ;;  %6299 = vmatprep.subr.bf16.mxu0 %v11273_v59 }
 0x2d4   : > { %v5745_v18 = vsel %vm5026_vm4, %v11329_v8, %v5743_v45  ;;  %v11333_v2 = vrot.slane %v11326_v25, 4  ;;  %v5505_v13 = vrot.slane %v10684_v20, 3  ;;  %v11338_v5 = vrot.slane %v9866_v14, 6 }
 0x2d5   : > { %v5816_v19 = vsel %vm5023_vm3, %v5815_v40, %v11330_v33  ;;  %v5888_v12 = vsel %vm5023_vm3, %v5887_v27, %v11331_v1  ;;  %v11334_v40 = vrot.slane %v11326_v25, 5  ;;  %v6916_v27 = vpop.f32.mrb[69].mxu1  ;;  %v5139_v33 = vrot.slane %v10684_v20, 6 }
 0x2d6   : > { %v5817_v24 = vsel %vm5026_vm4, %v11328_v23, %v5816_v19  ;;  %v5890_v42 = vsel %vm5026_vm4, %v11332_v52, %v5888_v12  ;;  %v5960_v45 = vsel %vm5023_vm3, %v5959_v56, %v11333_v2  ;;  %v5212_v19 = vrot.slane %v10684_v20, 7  ;;  %v10704_v52 = vpop.f32.mrb[70].mxu1  ;;  %5760 = vrot.lane.b32.xlu0 %v10527_v51, %s7168_s30 }
 0x2d7   : > { %v6032_v8 = vsel %vm5023_vm3, %v6031_v47, %v11334_v40  ;;  %v5286_v1 = vsel %vm5029_vm5, %v10684_v20, %v5285_v53  ;;  %v5359_v12 = vrot.slane %v10684_v20, 1  ;;  %v11335_v56 = vrot.slane %v9866_v14, 7  ;;  %v7026_v53 = vld [vmem:[%s11073_s9 + $0x70] sm:$0xff]   ;;  %v6917_v35 = vpop.f32.mrb[71].mxu1 }
 0x2d8   : > { %v5432_v47 = vrot.slane %v10684_v20, 2  ;;  %v11336_v40 = vrot.slane %v11328_v23, 2  ;;  %v5140_v60 = vsel %vm5029_vm5, %v5139_v33, %v5138_v31  ;;  %v11339_v59 = vrot.slane %v9866_v14, 1  ;;  %6300 = vmatpush1.bf16.msra.mxu0 %v7026_v53 }
 0x2d9   : > { %v10709_v2 = vsel %vm5032_vm6, %v11335_v56, %v5286_v1  ;;  %v5213_v1 = vsel %vm5029_vm5, %v5212_v19, %v5211_v49  ;;  %v5360_v56 = vsel %vm5029_vm5, %v5359_v12, %v5358_v17  ;;  %v5818_v17 = vrot.slane %v10704_v52, 7 }
 0x2da   : > { %v5962_v27 = vsel %vm5026_vm4, %v11336_v40, %v5960_v45  ;;  %v10727_v45 = vsel %vm5032_vm6, %v11337_v28, %v5140_v60  ;;  %v10732_v40 = vsel %vm5032_vm6, %v11338_v5, %v5213_v1  ;;  %v10736_v35 = vsel %vm5032_vm6, %v9866_v14, %v5360_v56  ;;  %5832 = vrot.lane.b32.xlu0 %v10531_v39, %s7169_s14 }
 0x2db   : > { %v5433_v31 = vsel %vm5029_vm5, %v5432_v47, %v5431_v50  ;;  %v5506_v28 = vsel %vm5029_vm5, %v5505_v13, %v5504_v61  ;;  %v5746_v60 = vrot.slane %v10704_v52, 6  ;;  %v5891_v50 = vsel %vm5029_vm5, %v10704_v52, %v5890_v42 }
 0x2dc   : > { %v5435_v49 = vsel %vm5032_vm6, %v11339_v59, %v5433_v31  ;;  %v10750_v33 = vsel %vm5032_vm6, %v5507_v29, %v5506_v28  ;;  %v5963_v51 = vrot.slane %v10704_v52, 1  ;;  %v11340_v19 = vrot.slane %v11328_v23, 3 }
 0x2dd   : > { %v5747_v61 = vsel %vm5029_vm5, %v5746_v60, %v5745_v18  ;;  %v5819_v47 = vsel %vm5029_vm5, %v5818_v17, %v5817_v24  ;;  %v10763_v13 = vsel %vm5032_vm6, %v5892_v41, %v5891_v50  ;;  %v6035_v29 = vrot.slane %v10704_v52, 2 }
 0x2de   : > { %v6034_v12 = vsel %vm5026_vm4, %v11340_v19, %v6032_v8  ;;  %v10769_v42 = vsel %vm5032_vm6, %v5748_v46, %v5747_v61  ;;  %v10774_v8 = vsel %vm5032_vm6, %v5820_v0, %v5819_v47  ;;  %v5964_v18 = vsel %vm5029_vm5, %v5963_v51, %v5962_v27  ;;  %5904 = vrot.lane.b32.xlu0 %v10540_v22, %s7170_s15 }
 0x2df   : > { %v11341_v24 = vrot.slane %v11326_v25, 6  ;;  %v10784_v41 = vsel %vm5032_vm6, %v11312_v6, %v5964_v18  ;;  %v6036_v46 = vsel %vm5029_vm5, %v6035_v29, %v6034_v12  ;;  %v11342_v1 = vrot.slane %v11328_v23, 4 }
 0x2e0   : > { %v6107_v56 = vrot.slane %v10704_v52, 3  ;;  %v6038_v27 = vsel %vm5032_vm6, %v6037_v44, %v6036_v46  ;;  %v5578_v39 = vrot.slane %v10684_v20, 4  ;;  %v5675_v5 = vsel %vm5038_vm8, %v5674_v7, %v10607_v32 }
 0x2e1   : > { %v6104_v53 = vsel %vm5023_vm3, %v6103_v55, %v11341_v24  ;;  %v5574_v55 = vrot.slane %v10601_v37, 6  ;;  %v5677_v59 = vsel %vm5041_vm9, %v5676_v54, %v5675_v5  ;;  %v5072_v44 = vsel %vm5023_vm3, %v5071_v57, %v11256_v43 }
 0x2e2   : > { %v6106_v0 = vsel %vm5026_vm4, %v11342_v1, %v6104_v53  ;;  %v5075_v28 = vrot.slane %v10684_v20, 5  ;;  %5698 = vst.msk [vmem:[#allocation2 + $0x28] sm:$0xff] %vm3395_vm13, %v5677_v59  ;;  %v11343_v10 = vrot.slane %v11252_v63, 6  ;;  %v5077_v37 = vrot.slane %v9866_v14, 4  ;;  %v10838_v63 = vpop.f32.mrb[72].mxu1  ;;  %5976 = vrot.lane.b32.xlu0 %v10544_v38, %s7171_s16 }
 0x2e3   : > { %v6108_v31 = vsel %vm5029_vm5, %v6107_v56, %v6106_v0  ;;  %v5575_v26 = vsel %vm5023_vm3, %v5574_v55, %v5573_v21  ;;  %v5968_v7 = vrot.slane %v11315_v36, 6  ;;  %v5580_v43 = vrot.slane %v9866_v14, 3  ;;  %v6928_v51 = vpop.f32.mrb[73].mxu1 }
 0x2e4   : > { %v10812_v60 = vsel %vm5032_vm6, %v6109_v16, %v6108_v31  ;;  %v5074_v32 = vsel %vm5026_vm4, %v11343_v10, %v5072_v44  ;;  %v5577_v16 = vsel %vm5026_vm4, %v5576_v30, %v5575_v26  ;;  %v6040_v57 = vrot.slane %v11315_v36, 7  ;;  %v10846_v29 = vpop.f32.mrb[74].mxu1 }
 0x2e5   : > { %v5076_v21 = vsel %vm5029_vm5, %v5075_v28, %v5074_v32  ;;  %v5579_v54 = vsel %vm5029_vm5, %v5578_v39, %v5577_v16  ;;  %v5584_v20 = vrot.slane %v9978_v3, 1  ;;  %v5678_v22 = vrot.slane %v10618_v62, 7  ;;  %v6929_v1 = vpop.f32.mrb[75].mxu1 }
 0x2e6   : > { %v10834_v17 = vsel %vm5032_vm6, %v5077_v37, %v5076_v21  ;;  %v5682_v50 = vrot.slane %v10704_v52, 5  ;;  %v5581_v30 = vsel %vm5032_vm6, %v5580_v43, %v5579_v54  ;;  %v5081_v14 = vrot.slane %v9978_v3, 2  ;;  %6048 = vrot.lane.b32.xlu0 %v10548_v9, %s7172_s18  ;;  %v4983_v43 = vpop.f32.mrb[76].mxu1 }
 0x2e7   : > { %v5143_v19 = vrot.slane %v10838_v63, 4  ;;  %v5216_v12 = vrot.slane %v10838_v63, 5  ;;  %v5289_v61 = vrot.slane %v10838_v63, 6  ;;  %v5362_v47 = vrot.slane %v10838_v63, 7 }
 0x2e8   : > { %v5436_v18 = vsel %vm5035_vm7, %v10838_v63, %v5435_v49  ;;  %v5509_v24 = vrot.slane %v10838_v63, 1  ;;  %v5582_v53 = vrot.slane %v10838_v63, 2  ;;  %v5079_v46 = vrot.slane %v10838_v63, 3 }
 0x2e9   : > { %v5144_v0 = vsel %vm5035_vm7, %v5143_v19, %v10727_v45  ;;  %v5217_v56 = vsel %vm5035_vm7, %v5216_v12, %v10732_v40  ;;  %v5290_v55 = vsel %vm5035_vm7, %v5289_v61, %v10709_v2  ;;  %v5363_v38 = vsel %vm5035_vm7, %v5362_v47, %v10736_v35  ;;  %v10888_v35 = vld [vmem:[%s10879_s24 + $0x8] sm:$0xff]  ;;  %v6940_v12 = vpop.f32.mrb[77].mxu1 }
 0x2ea   : > { %v5146_v49 = vsel %vm5038_vm8, %v5145_v4, %v5144_v0  ;;  %v5219_v39 = vsel %vm5038_vm8, %v5218_v15, %v5217_v56  ;;  %v5292_v45 = vsel %vm5038_vm8, %v5291_v58, %v5290_v55  ;;  %v5365_v40 = vsel %vm5038_vm8, %v5364_v11, %v5363_v38  ;;  %6120 = vrot.lane.b32.xlu0 %v10552_v34, %s7173_s19 }
 0x2eb   : > { %v11344_v2 = vrot.slane %v9978_v3, 7  ;;  %v5510_v15 = vsel %vm5035_vm7, %v5509_v24, %v10750_v33  ;;  %v5750_v58 = vrot.slane %v10846_v29, 4  ;;  %v5822_v11 = vrot.slane %v10846_v29, 5  ;;  %v6320_v33 = vld [vmem:[%s10879_s24] sm:$0xff] }
 0x2ec   : > { %v5511_v5 = vsel %vm5038_vm8, %v9978_v3, %v5510_v15  ;;  %v5894_v31 = vrot.slane %v10846_v29, 6  ;;  %v5966_v59 = vrot.slane %v10846_v29, 7  ;;  %v6039_v44 = vsel %vm5035_vm7, %v10846_v29, %v6038_v27  ;;  %v6322_v3 = vld [vmem:[%s10879_s24 + $0x10] sm:$0xff] }
 0x2ed   : > { %v5438_v4 = vsel %vm5038_vm8, %v11344_v2, %v5436_v18  ;;  %v5751_v28 = vsel %vm5035_vm7, %v5750_v58, %v10769_v42  ;;  %v5823_v26 = vsel %vm5035_vm7, %v5822_v11, %v10774_v8  ;;  %v6041_v10 = vsel %vm5038_vm8, %v6040_v57, %v6039_v44  ;;  %v5590_v44 = vpop.permute.xlu1 %5589 }
 0x2ee   : > { %v6111_v9 = vrot.slane %v10846_v29, 1  ;;  %vm6363_vm2 = vcmp.gt.f32.partialorder %v6320_v33, 0.0  ;;  %v11345_v32 = vrot.slane %v11315_v36, 3  ;;  %vm6364_vm1 = vcmp.gt.f32.partialorder %v10888_v35, 0.0  ;;  %5591 = vrot.lane.b32.xlu0 %v10492_v48, %s7167_s29 }
 0x2ef   : > { %v11346_v27 = vrot.slane %v11315_v36, 4  ;;  %v5895_v42 = vsel %vm5035_vm7, %v5894_v31, %v10763_v13  ;;  %v5967_v8 = vsel %vm5035_vm7, %v5966_v59, %v10784_v41  ;;  %v11347_v21 = vrot.slane %v11315_v36, 5  ;;  %v4986_v41 = vpop.f32.mrb[78].mxu1 }
 0x2f0   : > { %v5753_v37 = vsel %vm5038_vm8, %v11345_v32, %v5751_v28  ;;  %v5969_v54 = vsel %vm5038_vm8, %v5968_v7, %v5967_v8  ;;  %v6112_v51 = vsel %vm5035_vm7, %v6111_v9, %v10812_v60  ;;  %v5583_v19 = vsel %vm5035_vm7, %v5582_v53, %v5581_v30  ;;  %v6941_v7 = vpop.f32.mrb[79].mxu1 }
 0x2f1   : > { %v5825_v16 = vsel %vm5038_vm8, %v11346_v27, %v5823_v26  ;;  %v5897_v57 = vsel %vm5038_vm8, %v11347_v21, %v5895_v42  ;;  %v5147_v61 = vrot.slane %v4983_v43, 2  ;;  %v5220_v47 = vrot.slane %v4983_v43, 3  ;;  %v5152_v62 = vpop.permute.xlu1 %5151 }
 0x2f2   : > { %v5293_v18 = vrot.slane %v4983_v43, 4  ;;  %v5366_v13 = vrot.slane %v4983_v43, 5  ;;  %v5439_v24 = vrot.slane %v4983_v43, 6  ;;  %v5512_v1 = vrot.slane %v4983_v43, 7  ;;  %6326 = vperm.xlu0 %6961, %v6320_v33   ;;  %5163 = vst.msk [vmem:[#allocation2 + $0x10] sm:$0xff] %vm5161_vm0, %v5152_v62 }
 0x2f3   : > { %v6113_v0 = vsel %vm5038_vm8, %v11315_v36, %v6112_v51  ;;  %v5585_v60 = vsel %vm5038_vm8, %v5584_v20, %v5583_v19  ;;  %v5148_v30 = vsel %vm5041_vm9, %v5147_v61, %v5146_v49  ;;  %v5221_v53 = vsel %vm5041_vm9, %v5220_v47, %v5219_v39 }
 0x2f4   : > { %v5294_v56 = vsel %vm5041_vm9, %v5293_v18, %v5292_v45  ;;  %v5367_v34 = vsel %vm5041_vm9, %v5366_v13, %v5365_v40  ;;  %5155 = vrot.lane.b32.xlu1 %v5148_v30, %s7168_s30  ;;  %v5440_v55 = vsel %vm5041_vm9, %v5439_v24, %v5438_v4  ;;  %v5513_v38 = vsel %vm5041_vm9, %v5512_v1, %v5511_v5 }
 0x2f5   : > { %v5754_v2 = vrot.slane %v4986_v41, 2  ;;  %v5826_v15 = vrot.slane %v4986_v41, 3  ;;  %v5898_v20 = vrot.slane %v4986_v41, 4  ;;  %v5970_v58 = vrot.slane %v4986_v41, 5 }
 0x2f6   : > { %v6042_v49 = vrot.slane %v4986_v41, 6  ;;  %v6114_v11 = vrot.slane %v4986_v41, 7  ;;  %v10943_v40 = vsel %vm5041_vm9, %v4983_v43, %v5585_v60  ;;  %v5080_v4 = vsel %vm5035_vm7, %v5079_v46, %v10834_v17  ;;  %6336 = vperm.xlu0 %6961, %v6322_v3  }
 0x2f7   : > { %v5755_v39 = vsel %vm5041_vm9, %v5754_v2, %v5753_v37  ;;  %v5827_v45 = vsel %vm5041_vm9, %v5826_v15, %v5825_v16  ;;  %v5899_v5 = vsel %vm5041_vm9, %v5898_v20, %v5897_v57  ;;  %v5971_v48 = vsel %vm5041_vm9, %v5970_v58, %v5969_v54 }
 0x2f8   : > { %v6043_v31 = vsel %vm5041_vm9, %v6042_v49, %v6041_v10  ;;  %v6115_v59 = vsel %vm5041_vm9, %v6114_v11, %v6113_v0  ;;  %5228 = vrot.lane.b32.xlu1 %v5221_v53, %s7169_s14  ;;  %v5082_v28 = vsel %vm5038_vm8, %v5081_v14, %v5080_v4  ;;  %v5083_v26 = vrot.slane %v4983_v43, 1  ;;  %v6132_v0 = vld [vmem:[#allocation2] sm:$0xff] }
 0x2f9   : > { %v5679_v17 = vsel %vm5023_vm3, %v5678_v22, %v11326_v25  ;;  %v11348_v63 = vrot.slane %v11328_v23, 6  ;;  %v5684_v10 = vrot.slane %v11312_v6, 4  ;;  %v11349_v9 = vmov 0.0   ;;  %v6323_v6 = vld [vmem:[%s10879_s24 + $0x18] sm:$0xff] }
 0x2fa   : > { %v6679_v32 = vsel %vm6363_vm2, 1.0, %v11349_v9  ;;  %v6680_v14 = vsel %vm6364_vm1, 1.0, %v11349_v9  ;;  %v5084_v37 = vsel %vm5041_vm9, %v5083_v26, %v5082_v28  ;;  %v5686_v23 = vrot.slane %v10846_v29, 3 }
 0x2fb   : > { %v5681_v46 = vsel %vm5026_vm4, %v11348_v63, %v5679_v17  ;;  %5092 = vst.msk [vmem:[#allocation2 + $0x30] sm:$0xff] %vm3395_vm13, %v5084_v37  ;;  %v5688_v33 = vrot.slane %v11315_v36, 2  ;;  %v6963_v27 = vpack.i.bf16 %v6680_v14, %v6679_v32  ;;  %v5690_v52 = vrot.slane %v4986_v41, 1  ;;  %v6133_v41 = vld [vmem:[#allocation2 + $0x8] sm:$0xff] }
 0x2fc   : > { %v5683_v25 = vsel %vm5029_vm5, %v5682_v50, %v5681_v46  ;;  %5301 = vrot.lane.b32.xlu1 %v5294_v56, %s7170_s15  ;;  %vm6366_vm3 = vcmp.gt.f32.partialorder %v6323_v6, 0.0  ;;  %v5225_v50 = vpop.permute.xlu1 %5224  ;;  %vm6365_vm4 = vcmp.gt.f32.partialorder %v6322_v3, 0.0  ;;  %vm6264_vm5 = vcmask 916480  }
 0x2fd   : > { %v5685_v22 = vsel %vm5032_vm6, %v5684_v10, %v5683_v25  ;;  %5236 = vst.msk [vmem:[#allocation2 + $0x10] sm:$0xff] %vm5234_vm10, %v5225_v50  ;;  %6964 = vperm.xlu0 %6961, %v6963_v27   ;;  %v6682_v36 = vsel %vm6366_vm3, 1.0, %v11349_v9  ;;  %v6681_v18 = vsel %vm6365_vm4, 1.0, %v11349_v9 }
 0x2fe   : > { %v5687_v16 = vsel %vm5035_vm7, %v5686_v23, %v5685_v22  ;;  %v6678_v23 = vld [vmem:[%s11074_s10] ss:$0 sm:$0xff] }
 0x2ff   : > { %v5689_v42 = vsel %vm5038_vm8, %v5688_v33, %v5687_v16 }
 0x300   : > { %5374 = vrot.lane.b32.xlu1 %v5367_v34, %s7171_s16  ;;  %v5691_v29 = vsel %vm5041_vm9, %v5690_v52, %v5689_v42  ;;  %v5298_v8 = vpop.permute.xlu1 %5297 }
 0x301   : > { %5699 = vst.msk [vmem:[#allocation2 + $0x38] sm:$0xff] %vm3395_vm13, %v5691_v29  ;;  %6392 = vperm.xlu0 %6961, %v6682_v36   ;;  %vm11350_vm13 = vcmask 1048448  }
 0x302   : > { %5309 = vst.msk [vmem:[#allocation2 + $0x10] sm:$0xff] %vm5307_vm11, %v5298_v8  ;;  %vm11351_vm6 = vmmov %vm11350_vm13 }
 0x303   : > { %vm11352_vm7 = vmmov %vm11351_vm6 }
 0x304   : > { %5447 = vrot.lane.b32.xlu1 %v5440_v55, %s7172_s18  ;;  %v5371_v43 = vpop.permute.xlu1 %5370 }
 0x305   : > { %5382 = vst.msk [vmem:[#allocation2 + $0x10] sm:$0xff] %vm5380_vm12, %v5371_v43 }
 0x308   : > { %5520 = vrot.lane.b32.xlu1 %v5513_v38, %s7173_s19  ;;  %v5444_v21 = vpop.permute.xlu1 %5443 }
 0x309   : > { %5455 = vst.msk [vmem:[#allocation2 + $0x10] sm:$0xff] %vm5453_vm14, %v5444_v21 }
 0x30c   : > { %5762 = vrot.lane.b32.xlu1 %v5755_v39, %s7168_s30  ;;  %v5517_v57 = vpop.permute.xlu1 %5516 }
 0x30d   : > { %5528 = vst.msk [vmem:[#allocation2 + $0x10] sm:$0xff] %vm5526_vm15, %v5517_v57 }
 0x30e   : > { %5601 = vst.msk [vmem:[#allocation2 + $0x10] sm:$0xff] %vm11350_vm13, %v5590_v44 }
 0x310   : > { %5834 = vrot.lane.b32.xlu1 %v5827_v45, %s7169_s14  ;;  %v5759_v54 = vpop.permute.xlu1 %5758 }
 0x311   : > { %5769 = vst.msk [vmem:[#allocation2 + $0x18] sm:$0xff] %vm5161_vm0, %v5759_v54 }
 0x314   : > { %5906 = vrot.lane.b32.xlu1 %v5899_v5, %s7170_s15  ;;  %v5831_v51 = vpop.permute.xlu1 %5830 }
 0x315   : > { %5841 = vst.msk [vmem:[#allocation2 + $0x18] sm:$0xff] %vm5234_vm10, %v5831_v51  ;;  %v6134_v13 = vld [vmem:[#allocation2 + $0x10] sm:$0xff] }
 0x316   : > { %v6140_v60 = vpack.c.bf16 %v6134_v13, %v6132_v0 }
 0x318   : > { %5978 = vrot.lane.b32.xlu1 %v5971_v48, %s7171_s16  ;;  %v5903_v19 = vpop.permute.xlu1 %5902  ;;  %s11047_s16 = scalar_lea.vmem %s11075_s11, %s7297_s17  ;;  %s6595_s17 = sshll.u32 %s11358_s26, 3 }
 0x319   : > { %5913 = vst.msk [vmem:[#allocation2 + $0x18] sm:$0xff] %vm5307_vm11, %v5903_v19  ;;  %s551_s27 = scalar_lea.vmem %s11076_s12, %s6595_s17  ;;  %s555_s21 = scalar_lea.vmem %s11077_s13, %s6595_s17 }
 0x31c   : > { %6050 = vrot.lane.b32.xlu1 %v6043_v31, %s7172_s18  ;;  %v5975_v12 = vpop.permute.xlu1 %5974 }
 0x31d   : > { %5985 = vst.msk [vmem:[#allocation2 + $0x18] sm:$0xff] %vm5380_vm12, %v5975_v12 }
 0x320   : > { %6122 = vrot.lane.b32.xlu1 %v6115_v59, %s7173_s19  ;;  %v6047_v61 = vpop.permute.xlu1 %6046 }
 0x321   : > { %6057 = vst.msk [vmem:[#allocation2 + $0x18] sm:$0xff] %vm5453_vm14, %v6047_v61 }
 0x324   : > { %5593 = vrot.lane.b32.xlu1 %v10943_v40, %s7167_s29  ;;  %v6119_v47 = vpop.permute.xlu1 %6118 }
 0x325   : > { %6129 = vst.msk [vmem:[#allocation2 + $0x18] sm:$0xff] %vm5526_vm15, %v6119_v47 }
 0x328   : > { %6331 = vperm.xlu1 %6962, %v10888_v35  }
 0x32c   : > { %6341 = vperm.xlu1 %6962, %v6323_v6   ;;  %v6135_v24 = vld [vmem:[#allocation2 + $0x18] sm:$0xff] }
 0x32d   : > { %v6141_v1 = vpack.c.bf16 %v6135_v24, %v6133_v41 }
 0x32f   : > { %6676 = vmatprep.mubr.msk.bf16.mxu0 %vm6264_vm5, %v6141_v1 }
 0x330   : > { %6387 = vperm.xlu1 %6962, %v6681_v18   ;;  %6304 = vmatmul.mubr.bf16.vlgmr.msra.gmra.mrb[48].mxu0 %v6140_v60  ;;  %v5154_v7 = vpop.permute.xlu0 %5153 }
 0x331   : > { %5164 = vst.msk [vmem:[#allocation2 + $0x20] sm:$0xff] %vm5161_vm0, %v5154_v7 }
 0x334   : > { %v5227_v35 = vpop.permute.xlu0 %5226 }
 0x335   : > { %5237 = vst.msk [vmem:[#allocation2 + $0x20] sm:$0xff] %vm5234_vm10, %v5227_v35 }
 0x338   : > { %v5300_v30 = vpop.permute.xlu0 %5299 }
 0x339   : > { %5310 = vst.msk [vmem:[#allocation2 + $0x20] sm:$0xff] %vm5307_vm11, %v5300_v30 }
 0x33c   : > { %v5373_v53 = vpop.permute.xlu0 %5372 }
 0x33d   : > { %5383 = vst.msk [vmem:[#allocation2 + $0x20] sm:$0xff] %vm5380_vm12, %v5373_v53 }
 0x340   : > { %v5446_v56 = vpop.permute.xlu0 %5445 }
 0x341   : > { %5456 = vst.msk [vmem:[#allocation2 + $0x20] sm:$0xff] %vm5453_vm14, %v5446_v56 }
 0x344   : > { %v5519_v34 = vpop.permute.xlu0 %5518 }
 0x345   : > { %5529 = vst.msk [vmem:[#allocation2 + $0x20] sm:$0xff] %vm5526_vm15, %v5519_v34 }
 0x348   : > { %v5761_v55 = vpop.permute.xlu0 %5760 }
 0x349   : > { %5770 = vst.msk [vmem:[#allocation2 + $0x28] sm:$0xff] %vm5161_vm0, %v5761_v55 }
 0x34c   : > { %v5833_v38 = vpop.permute.xlu0 %5832 }
 0x34d   : > { %5842 = vst.msk [vmem:[#allocation2 + $0x28] sm:$0xff] %vm5234_vm10, %v5833_v38 }
 0x350   : > { %v5905_v2 = vpop.permute.xlu0 %5904 }
 0x351   : > { %5914 = vst.msk [vmem:[#allocation2 + $0x28] sm:$0xff] %vm5307_vm11, %v5905_v2 }
 0x354   : > { %v5977_v15 = vpop.permute.xlu0 %5976 }
 0x355   : > { %5986 = vst.msk [vmem:[#allocation2 + $0x28] sm:$0xff] %vm5380_vm12, %v5977_v15 }
 0x358   : > { %v6049_v20 = vpop.permute.xlu0 %6048 }
 0x359   : > { %6058 = vst.msk [vmem:[#allocation2 + $0x28] sm:$0xff] %vm5453_vm14, %v6049_v20 }
 0x35c   : > { %v6121_v58 = vpop.permute.xlu0 %6120 }
 0x35d   : > { %6130 = vst.msk [vmem:[#allocation2 + $0x28] sm:$0xff] %vm5526_vm15, %v6121_v58 }
 0x360   : > { %v5592_v11 = vpop.permute.xlu0 %5591 }
 0x361   : > { %5602 = vst.msk [vmem:[#allocation2 + $0x20] sm:$0xff] %vm11351_vm6, %v5592_v11 }
 0x364   : > { %v6137_v63 = vld [vmem:[#allocation2 + $0x28] sm:$0xff] }
 0x366   : > { %v5156_v49 = vpop.permute.xlu1 %5155 }
 0x367   : > { %5165 = vst.msk [vmem:[#allocation2 + $0x30] sm:$0xff] %vm5161_vm0, %v5156_v49 }
 0x368   : > { %v6136_v9 = vld [vmem:[#allocation2 + $0x20] sm:$0xff] }
 0x36a   : > { %v5229_v39 = vpop.permute.xlu1 %5228 }
 0x36b   : > { %5238 = vst.msk [vmem:[#allocation2 + $0x30] sm:$0xff] %vm5234_vm10, %v5229_v39 }
 0x36e   : > { %v5302_v45 = vpop.permute.xlu1 %5301 }
 0x36f   : > { %5311 = vst.msk [vmem:[#allocation2 + $0x30] sm:$0xff] %vm5307_vm11, %v5302_v45 }
 0x371   : > { %v6327_v14 = vpop.permute.xlu0 %6326 }
 0x372   : > { %v5375_v40 = vpop.permute.xlu1 %5374 }
 0x373   : > { %5384 = vst.msk [vmem:[#allocation2 + $0x30] sm:$0xff] %vm5380_vm12, %v5375_v40 }
 0x375   : > { %v6337_v37 = vpop.permute.xlu0 %6336 }
 0x376   : > { %v5448_v4 = vpop.permute.xlu1 %5447 }
 0x377   : > { %5457 = vst.msk [vmem:[#allocation2 + $0x30] sm:$0xff] %vm5453_vm14, %v5448_v4 }
 0x37a   : > { %v5521_v5 = vpop.permute.xlu1 %5520 }
 0x37b   : > { %5530 = vst.msk [vmem:[#allocation2 + $0x30] sm:$0xff] %vm5526_vm15, %v5521_v5 }
 0x37c   : > { %v6965_v62 = vpop.permute.xlu0 %6964 }
 0x37d   : > { %v6966_v16 = vunpack.i.l.bf16 %v6965_v62  ;;  %v6967_v29 = vunpack.i.h.bf16 %v6965_v62 }
 0x37e   : > { %v5763_v48 = vpop.permute.xlu1 %5762 }
 0x37f   : > { %5771 = vst.msk [vmem:[#allocation2 + $0x38] sm:$0xff] %vm5161_vm0, %v5763_v48 }
 0x380   : > { %v6393_v7 = vpop.permute.xlu0 %6392 }
 0x382   : > { %v5835_v31 = vpop.permute.xlu1 %5834 }
 0x383   : > { %5843 = vst.msk [vmem:[#allocation2 + $0x38] sm:$0xff] %vm5234_vm10, %v5835_v31 }
 0x386   : > { %v5907_v59 = vpop.permute.xlu1 %5906 }
 0x387   : > { %5915 = vst.msk [vmem:[#allocation2 + $0x38] sm:$0xff] %vm5307_vm11, %v5907_v59 }
 0x38a   : > { %v5979_v44 = vpop.permute.xlu1 %5978 }
 0x38b   : > { %5987 = vst.msk [vmem:[#allocation2 + $0x38] sm:$0xff] %vm5380_vm12, %v5979_v44 }
 0x38e   : > { %v6051_v28 = vpop.permute.xlu1 %6050 }
 0x38f   : > { %6059 = vst.msk [vmem:[#allocation2 + $0x38] sm:$0xff] %vm5453_vm14, %v6051_v28 }
 0x392   : > { %v6123_v26 = vpop.permute.xlu1 %6122 }
 0x393   : > { %6131 = vst.msk [vmem:[#allocation2 + $0x38] sm:$0xff] %vm5526_vm15, %v6123_v26 }
 0x396   : > { %v5594_v17 = vpop.permute.xlu1 %5593 }
 0x397   : > { %5603 = vst.msk [vmem:[#allocation2 + $0x30] sm:$0xff] %vm11352_vm7, %v5594_v17 }
 0x39a   : > { %v6139_v46 = vld [vmem:[#allocation2 + $0x38] sm:$0xff] }
 0x39b   : > { %v6143_v10 = vpack.c.bf16 %v6139_v46, %v6137_v63 }
 0x39d   : > { %6677 = vmatprep.mubr.msk.bf16.mxu0 %vm6264_vm5, %v6143_v10 }
 0x39e   : > { %v6138_v32 = vld [vmem:[#allocation2 + $0x30] sm:$0xff] }
 0x39f   : > { %v6142_v3 = vpack.c.bf16 %v6138_v32, %v6136_v9 }
 0x3a1   : > { %6312 = vmatmul.mubr.bf16.gmra.mrb[52].mxu0 %v6142_v3 }
 0x3a7   : > { %v6332_v33 = vpop.permute.xlu1 %6331 }
 0x3ab   : > { %v6342_v19 = vpop.permute.xlu1 %6341 }
 0x3af   : > { %v6388_v1 = vpop.permute.xlu1 %6387 }
 0x403   : > { %v6305_v25 = vpop.f32.mrb[48].mxu0 }
 0x404   : > { %v6344_v6 = vmul.f32 %v6327_v14, %v6305_v25  ;;  %v6307_v22 = vpop.f32.mrb[49].mxu0 }
 0x405   : > { %v6308_v27 = vpop.f32.mrb[50].mxu0 }
 0x406   : > { %v6355_v42 = vadd.f32 %v6678_v23, %v6344_v6  ;;  %v6345_v52 = vmul.f32 %v6332_v33, %v6308_v27  ;;  %v6310_v50 = vpop.f32.mrb[51].mxu0 }
 0x408   : > { %6359 = vst [vmem:[%s11047_s16] sm:$0xff] %v6355_v42  ;;  %v6395_v36 = vmul.f32 %v6966_v16, %v6355_v42  ;;  %v6356_v8 = vadd.f32 %v6678_v23, %v6345_v52 }
 0x40a   : > { %6360 = vst [vmem:[%s11047_s16 + $0x8] sm:$0xff] %v6356_v8  ;;  %v6396_v43 = vmul.f32 %v6967_v29, %v6356_v8  ;;  %v6403_v21 = vmul.f32 %v6395_v36, %v6355_v42 }
 0x40c   : > { %v6399_v57 = vadd.f32 %v6396_v43, %v6395_v36  ;;  %v6404_v54 = vmul.f32 %v6396_v43, %v6356_v8 }
 0x40e   : > { %v6407_v51 = vadd.f32 %v6404_v54, %v6403_v21 }
 0x474   : > { %v6313_v12 = vpop.f32.mrb[52].mxu0 }
 0x475   : > { %v6346_v61 = vmul.f32 %v6337_v37, %v6313_v12  ;;  %v6315_v47 = vpop.f32.mrb[53].mxu0 }
 0x476   : > { %v6316_v18 = vpop.f32.mrb[54].mxu0 }
 0x477   : > { %v6357_v13 = vadd.f32 %v6678_v23, %v6346_v61  ;;  %v6347_v41 = vmul.f32 %v6342_v19, %v6316_v18  ;;  %v6318_v24 = vpop.f32.mrb[55].mxu0 }
 0x479   : > { %6361 = vst [vmem:[%s11047_s16 + $0x10] sm:$0xff] %v6357_v13  ;;  %v6397_v0 = vmul.f32 %v6388_v1, %v6357_v13  ;;  %v6358_v60 = vadd.f32 %v6678_v23, %v6347_v41 }
 0x47b   : > { %v6400_v35 = vadd.f32 %v6399_v57, %v6397_v0  ;;  %v6405_v30 = vmul.f32 %v6397_v0, %v6357_v13  ;;  %6362 = vst [vmem:[%s11047_s16 + $0x18] sm:$0xff] %v6358_v60  ;;  %v6398_v53 = vmul.f32 %v6393_v7, %v6358_v60 }
 0x47d   : > { %v6408_v56 = vadd.f32 %v6407_v51, %v6405_v30  ;;  %v6401_v34 = vadd.f32 %v6400_v35, %v6398_v53  ;;  %v6406_v55 = vmul.f32 %v6398_v53, %v6358_v60 }
 0x47f   : > { %6402 = vst [vmem:[%s551_s27] sm:$0xff] %v6401_v34  ;;  %v6409_v38 = vadd.f32 %v6408_v56, %v6406_v55 }
 0x481   : > { %6410 = vst [vmem:[%s555_s21] sm:$0xff] %v6409_v38 }
 0x482 PF: > { %s24_s25 = sadd.s32 1, %s7161_s25  }
 0x483   : > { %p21_p6 = scmp.ge.s32.totalorder %s24_s25, 4  }
 0x485   :  { %23 = sbr.rel (!%p21_p6) target bundleno = 1 (0x1), region = 130 }

</bundles_post_ra>
